<compile_context>
chip_gen: v6e
topology: v6e:2x2x1
jax: 0.10.0
libtpu: 0.0.40
codegen_flags: <defaults>
</compile_context>

<pallas_src>
import functools

import jax
import jax.numpy as jnp
import numpy as np
from jax import lax
from jax.experimental import pallas as pl
from jax.experimental.pallas import tpu as pltpu

RELU_CLIP = 20.0          # python float -> literal inside kernels (no captured consts)
NEG_MASK = -1e30          # python float
LANE = 128                # lane width: feature/hidden/class dims padded to this
SUBLANE = 8               # sublane width: batch padded to this
MAX_FC_TILE_ROWS = 512    # target rows per FC grid step
MAX_RNN_CHUNK = 64        # max time steps unrolled per RNN grid step


def _round_up(n, m):
    return ((n + m - 1) // m) * m


def _pad2(a, rows, cols):
    return jnp.pad(a, ((0, rows - a.shape[0]), (0, cols - a.shape[1])))


def _largest_divisor(n, max_val):
    best = 1
    for d in range(1, min(n, max_val) + 1):
        if n % d == 0:
            best = d
    return best


def _vmem_limit(resident_bytes, tile_bytes):
    # resident weights + double-buffered tiles + headroom; clamp to [32, 64] MiB
    # (64 MiB = v7x physical VMEM; defaults are 16/32 MiB scoped).
    est = int(resident_bytes + 2 * tile_bytes + (4 << 20))
    return int(min(max(est, 32 << 20), 64 << 20))


def _clip01(y):
    # relu followed by hardtanh(0, RELU_CLIP) == clip to [0, RELU_CLIP]
    return jnp.minimum(jnp.maximum(y, 0.0), RELU_CLIP)


# ----------------------------- Pallas kernels --------------------------------

def _fc123_proj_kernel(x_ref, w1_ref, b1_ref, w2_ref, b2_ref, w3_ref, b3_ref,
                       wihf_ref, bf_ref, wihb_ref, bb_ref, uf_ref, ub_ref):
    # One row tile: fc1 -> fc2 -> fc3 (Linear + ReLU + hardtanh each), then both
    # RNN input projections u_dir = h3 @ Wih_dir + b_dir.  bf16 matmul operands,
    # f32 accumulation, f32 elementwise; bf16 lane-dense outputs.
    f32 = jnp.float32
    h = jnp.dot(x_ref[...], w1_ref[...], preferred_element_type=f32)
    h = _clip01(h + b1_ref[...])
    h = jnp.dot(h.astype(jnp.bfloat16), w2_ref[...], preferred_element_type=f32)
    h = _clip01(h + b2_ref[...])
    h = jnp.dot(h.astype(jnp.bfloat16), w3_ref[...], preferred_element_type=f32)
    h = _clip01(h + b3_ref[...])
    hq = h.astype(jnp.bfloat16)
    uf_ref[...] = (jnp.dot(hq, wihf_ref[...], preferred_element_type=f32)
                   + bf_ref[...]).astype(uf_ref.dtype)
    ub_ref[...] = (jnp.dot(hq, wihb_ref[...], preferred_element_type=f32)
                   + bb_ref[...]).astype(ub_ref.dtype)


def _birnn_relu_kernel(uf_ref, ub_ref, whhf_ref, whhb_ref, hf_ref, hb_ref,
                       hf_c, hb_c):
    # Bidirectional ReLU RNN over one time chunk.  u_fwd chunks arrive in
    # increasing time order, u_bwd chunks in decreasing order (reversed
    # index_map), so both recurrences stream through VMEM chunk by chunk.
    # Hidden states are carried across grid steps in f32 VMEM scratch.
    tc = uf_ref.shape[0]

    @pl.when(pl.program_id(0) == 0)
    def _():
        hf_c[...] = jnp.zeros_like(hf_c)
        hb_c[...] = jnp.zeros_like(hb_c)

    # Static unroll of the chunk (tc <= MAX_RNN_CHUNK).  The two directions are
    # independent chains, so the scheduler overlaps their small MXU ops.
    # TODO(synk): for large Hp / long chunks use lax.fori_loop(..., unroll=4..8)
    # instead of a full Python unroll.
    for t in range(tc):
        s = tc - 1 - t
        hf = jnp.maximum(
            uf_ref[t].astype(jnp.float32)
            + jnp.dot(hf_c[...].astype(jnp.bfloat16), whhf_ref[...],
                      preferred_element_type=jnp.float32),
            0.0)
        hb = jnp.maximum(
            ub_ref[s].astype(jnp.float32)
            + jnp.dot(hb_c[...].astype(jnp.bfloat16), whhb_ref[...],
                      preferred_element_type=jnp.float32),
            0.0)
        hf_c[...] = hf
        hb_c[...] = hb
        hf_ref[t] = hf.astype(hf_ref.dtype)
        hb_ref[s] = hb.astype(hb_ref.dtype)


def _fc4_out_logsoftmax_kernel(yf_ref, yb_ref, w4_ref, b4_ref, wo_ref, bo_ref,
                               o_ref, *, n_class):
    # (h_fwd + h_bwd) -> fc4 (Linear+ReLU+hardtanh) -> out Linear -> log_softmax.
    # The fwd/bwd sum is folded into this kernel's first read (no extra pass).
    f32 = jnp.float32
    y = yf_ref[...].astype(f32) + yb_ref[...].astype(f32)
    h = jnp.dot(y.astype(jnp.bfloat16), w4_ref[...], preferred_element_type=f32)
    h = _clip01(h + b4_ref[...])
    z = jnp.dot(h.astype(jnp.bfloat16), wo_ref[...], preferred_element_type=f32)
    z = z + bo_ref[...]
    lane = lax.broadcasted_iota(jnp.int32, z.shape, dimension=1)
    z = jnp.where(lane < n_class, z, NEG_MASK)   # mask padded class lanes (f32)
    m = jnp.max(z, axis=-1, keepdims=True)
    s = z - m
    lse = jnp.log(jnp.sum(jnp.exp(s), axis=-1, keepdims=True))
    o_ref[...] = s - lse


# ------------------------------ JAX wrappers ----------------------------------

def fc123_proj(rows, w1, b1, w2, b2, w3, b3, wih_f, b_f, wih_b, b_b, row_tile):
    n, fp = rows.shape
    hp = w1.shape[1]
    const = lambda i: (0, 0)
    row_in = pl.BlockSpec((row_tile, fp), lambda i: (i, 0))
    row_out = pl.BlockSpec((row_tile, hp), lambda i: (i, 0))
    w_bytes = 2 * (fp * hp + 4 * hp * hp) + 4 * 5 * hp
    tile_bytes = 2 * row_tile * (fp + 2 * hp)
    flops = 2 * n * (fp * hp + 4 * hp * hp)
    return pl.pallas_call(
        _fc123_proj_kernel,
        out_shape=(jax.ShapeDtypeStruct((n, hp), jnp.bfloat16),
                   jax.ShapeDtypeStruct((n, hp), jnp.bfloat16)),
        grid=(n // row_tile,),
        in_specs=[
            row_in,
            pl.BlockSpec(w1.shape, const), pl.BlockSpec(b1.shape, const),
            pl.BlockSpec(w2.shape, const), pl.BlockSpec(b2.shape, const),
            pl.BlockSpec(w3.shape, const), pl.BlockSpec(b3.shape, const),
            pl.BlockSpec(wih_f.shape, const), pl.BlockSpec(b_f.shape, const),
            pl.BlockSpec(wih_b.shape, const), pl.BlockSpec(b_b.shape, const),
        ],
        out_specs=[row_out, row_out],
        compiler_params=pltpu.CompilerParams(
            dimension_semantics=("parallel",),
            vmem_limit_bytes=_vmem_limit(w_bytes, tile_bytes)),
        cost_estimate=pl.CostEstimate(
            flops=int(flops), transcendentals=0,
            bytes_accessed=int(w_bytes + 2 * n * fp + 4 * n * hp)),
    )(rows, w1, b1, w2, b2, w3, b3, wih_f, b_f, wih_b, b_b)


def bi_rnn_relu(u_f, u_b, whh_f, whh_b, time_chunk):
    T, bp, hp = u_f.shape
    nc = T // time_chunk
    w_spec = pl.BlockSpec(whh_f.shape, lambda c: (0, 0))
    fwd = pl.BlockSpec((time_chunk, bp, hp), lambda c: (c, 0, 0))
    bwd = pl.BlockSpec((time_chunk, bp, hp), lambda c: (nc - 1 - c, 0, 0))
    w_bytes = 2 * 2 * hp * hp
    tile_bytes = 4 * 2 * time_chunk * bp * hp + 2 * 4 * bp * hp
    flops = 4 * T * bp * hp * hp
    return pl.pallas_call(
        _birnn_relu_kernel,
        out_shape=(jax.ShapeDtypeStruct((T, bp, hp), jnp.bfloat16),
                   jax.ShapeDtypeStruct((T, bp, hp), jnp.bfloat16)),
        grid=(nc,),
        in_specs=[fwd, bwd, w_spec, w_spec],
        out_specs=[fwd, bwd],
        scratch_shapes=[pltpu.VMEM((bp, hp), jnp.float32),
                        pltpu.VMEM((bp, hp), jnp.float32)],
        compiler_params=pltpu.CompilerParams(
            dimension_semantics=("arbitrary",),   # serial recurrence over chunks
            vmem_limit_bytes=_vmem_limit(w_bytes, tile_bytes)),
        cost_estimate=pl.CostEstimate(
            flops=int(flops), transcendentals=0,
            bytes_accessed=int(w_bytes + 8 * T * bp * hp)),
    )(u_f, u_b, whh_f, whh_b)


def fc4_out_logsoftmax(yf, yb, w4, b4, wo, bo, n_class, row_tile):
    n, hp = yf.shape
    cp = wo.shape[1]
    const = lambda i: (0, 0)
    row_in = pl.BlockSpec((row_tile, hp), lambda i: (i, 0))
    row_out = pl.BlockSpec((row_tile, cp), lambda i: (i, 0))
    kernel = functools.partial(_fc4_out_logsoftmax_kernel, n_class=n_class)
    w_bytes = 2 * (hp * hp + hp * cp) + 4 * (hp + cp)
    tile_bytes = 2 * 2 * row_tile * hp + 4 * row_tile * cp
    flops = 2 * n * (hp * hp + hp * cp)
    return pl.pallas_call(
        kernel,
        out_shape=jax.ShapeDtypeStruct((n, cp), jnp.float32),
        grid=(n // row_tile,),
        in_specs=[row_in, row_in,
                  pl.BlockSpec(w4.shape, const), pl.BlockSpec(b4.shape, const),
                  pl.BlockSpec(wo.shape, const), pl.BlockSpec(bo.shape, const)],
        out_specs=row_out,
        compiler_params=pltpu.CompilerParams(
            dimension_semantics=("parallel",),
            vmem_limit_bytes=_vmem_limit(w_bytes, tile_bytes)),
        cost_estimate=pl.CostEstimate(
            flops=int(flops), transcendentals=int(n * cp),
            bytes_accessed=int(w_bytes + 4 * n * hp + 4 * n * cp)),
    )(yf, yb, w4, b4, wo, bo)


def deepspeech_forward(x, p):
    """x: (batch, channel=1, time, feature) f32 -> (batch, time, n_class) log-probs."""
    B, Cin, T, F = x.shape
    assert Cin == 1, "DeepSpeech.forward squeezes the channel axis; channel must be 1"
    H = p["w1"].shape[1]
    C = p["wo"].shape[1]

    Fp = _round_up(F, LANE)
    Hp = _round_up(H, LANE)
    Cp = _round_up(C, LANE)
    Bp = _round_up(B, SUBLANE)
    bf16 = jnp.bfloat16

    # Pad parameters once to lane-dense shapes (zero padding is numerically inert);
    # weights in bf16, biases stay f32 (added to f32 accumulators).
    w1 = _pad2(p["w1"], Fp, Hp).astype(bf16); b1 = _pad2(p["b1"], 1, Hp)
    w2 = _pad2(p["w2"], Hp, Hp).astype(bf16); b2 = _pad2(p["b2"], 1, Hp)
    w3 = _pad2(p["w3"], Hp, Hp).astype(bf16); b3 = _pad2(p["b3"], 1, Hp)
    wih_f = _pad2(p["wih_f"], Hp, Hp).astype(bf16); b_f = _pad2(p["b_f"], 1, Hp)
    wih_b = _pad2(p["wih_b"], Hp, Hp).astype(bf16); b_b = _pad2(p["b_b"], 1, Hp)
    whh_f = _pad2(p["whh_f"], Hp, Hp).astype(bf16)
    whh_b = _pad2(p["whh_b"], Hp, Hp).astype(bf16)
    w4 = _pad2(p["w4"], Hp, Hp).astype(bf16); b4 = _pad2(p["b4"], 1, Hp)
    wo = _pad2(p["wo"], Hp, Cp).astype(bf16); bo = _pad2(p["bo"], 1, Cp)

    # Time-major, padded, bf16 input rows (pad once here; slice once at the end).
    # Padded batch rows carry garbage but are row-independent and sliced off.
    xt = jnp.transpose(x[:, 0], (1, 0, 2))                        # (T, B, F)
    xt = jnp.pad(xt, ((0, 0), (0, Bp - B), (0, Fp - F))).astype(bf16)
    rows = xt.reshape(T * Bp, Fp)
    n_rows = T * Bp

    # FC row tile = (time chunk) * Bp: multiple of Bp, 16-sublane aligned for
    # bf16, capped at MAX_FC_TILE_ROWS; fall back to a single full-dim tile.
    # TODO(synk): for awkward T, pad the row count to a multiple of 256 instead.
    cand = [d for d in range(1, T + 1)
            if T % d == 0 and d * Bp <= MAX_FC_TILE_ROWS and (d * Bp) % 16 == 0]
    t_fc = max(cand) if cand else T
    row_tile = t_fc * Bp

    # fc1 -> fc2 -> fc3 -> both RNN input projections, fused.
    u_f, u_b = fc123_proj(rows, w1, b1, w2, b2, w3, b3,
                          wih_f, b_f, wih_b, b_b, row_tile)        # 2x (T*Bp, Hp) bf16
    u_f = u_f.reshape(T, Bp, Hp)
    u_b = u_b.reshape(T, Bp, Hp)

    # Bidirectional ReLU RNN, time-chunk streamed.
    t_rnn = _largest_divisor(T, MAX_RNN_CHUNK)
    hf, hb = bi_rnn_relu(u_f, u_b, whh_f, whh_b, t_rnn)            # 2x (T, Bp, Hp) bf16

    # (hf + hb) -> fc4 -> out Linear -> log_softmax, fused.
    logp = fc4_out_logsoftmax(hf.reshape(n_rows, Hp), hb.reshape(n_rows, Hp),
                              w4, b4, wo, bo, C, row_tile)         # (T*Bp, Cp) f32
    logp = logp.reshape(T, Bp, Cp)[:, :B, :C]
    return jnp.transpose(logp, (1, 0, 2))                          # (batch, time, class)


# ----------------------------- pure-JAX reference ------------------------------

def deepspeech_reference(x, p, rounding):
    """Pure-JAX DeepSpeech forward.  `rounding` is applied at exactly the points
    where the Pallas kernels round activations/weights to bf16 (identity for the
    full-f32 model)."""
    r = rounding
    f32 = jnp.float32

    def fc(v, w, b):
        return jnp.clip(jnp.dot(r(v), r(w), preferred_element_type=f32) + b,
                        0.0, RELU_CLIP)

    h = fc(x[:, 0], p["w1"], p["b1"])                      # (B, T, H)
    h = fc(h, p["w2"], p["b2"])
    h = fc(h, p["w3"], p["b3"])
    h = jnp.transpose(h, (1, 0, 2))                        # (T, B, H)

    u_f = r(jnp.dot(r(h), r(p["wih_f"]), preferred_element_type=f32) + p["b_f"])
    u_b = r(jnp.dot(r(h), r(p["wih_b"]), preferred_element_type=f32) + p["b_b"])

    def make_step(whh):
        def step(hprev, ut):
            hn = jnp.maximum(
                ut + jnp.dot(r(hprev), r(whh), preferred_element_type=f32), 0.0)
            return hn, r(hn)
        return step

    B = x.shape[0]
    H = p["w1"].shape[1]
    h0 = jnp.zeros((B, H), f32)
    _, hf = lax.scan(make_step(p["whh_f"]), h0, u_f)
    _, hb = lax.scan(make_step(p["whh_b"]), h0, u_b, reverse=True)

    y = r(hf + hb)
    h4 = jnp.clip(jnp.dot(y, r(p["w4"]), preferred_element_type=f32) + p["b4"],
                  0.0, RELU_CLIP)
    z = jnp.dot(r(h4), r(p["wo"]), preferred_element_type=f32) + p["bo"]
    z = jnp.transpose(z, (1, 0, 2))                        # (B, T, C)
    return jax.nn.log_softmax(z, axis=2)


# ---------------------------------- main ---------------------------------------

if __name__ == "__main__":
    # Small shapes consistent with the module: batch=2, channel=1, time=8,
    # n_feature=32, n_hidden=32, n_class=40.
    B, Cin, T, F = 2, 1, 8, 32
    H, C = 32, 40

    key = jax.random.PRNGKey(0)
    ks = jax.random.split(key, 20)

    def w_init(k, fin, fout):
        return (jax.random.normal(k, (fin, fout), jnp.float32) / np.sqrt(fin)).astype(jnp.float32)

    def b_init(k, fout):
        return (0.01 * jax.random.normal(k, (1, fout), jnp.float32)).astype(jnp.float32)

    params = {
        "w1": w_init(ks[0], F, H), "b1": b_init(ks[1], H),
        "w2": w_init(ks[2], H, H), "b2": b_init(ks[3], H),
        "w3": w_init(ks[4], H, H), "b3": b_init(ks[5], H),
        # RNN (relu), forward & backward directions; b_* = b_ih + b_hh combined.
        "wih_f": w_init(ks[6], H, H), "whh_f": w_init(ks[7], H, H), "b_f": b_init(ks[8], H),
        "wih_b": w_init(ks[9], H, H), "whh_b": w_init(ks[10], H, H), "b_b": b_init(ks[11], H),
        "w4": w_init(ks[12], H, H), "b4": b_init(ks[13], H),
        "wo": w_init(ks[14], H, C), "bo": b_init(ks[15], C),
    }
    x = jax.random.normal(ks[16], (B, Cin, T, F), jnp.float32)

    # Weights/input are stored in bf16 by the kernels; round them once so the
    # kernel, the precision-matched reference, and the f32 reference all see the
    # same parameter values.
    bf16_round = lambda a: a.astype(jnp.bfloat16).astype(jnp.float32)
    params = {k: bf16_round(v) for k, v in params.items()}
    x = bf16_round(x)

    forward = jax.jit(deepspeech_forward)
    out = jax.block_until_ready(forward(x, params))
    assert out.shape == (B, T, C), out.shape

    # Tight check vs. a pure-JAX reference with the same bf16 rounding points
    # (validates the Pallas mechanics: tiling, recurrence order, masking, softmax).
    ref_bf16 = jax.block_until_ready(deepspeech_reference(x, params, bf16_round))
    np.testing.assert_allclose(np.asarray(out), np.asarray(ref_bf16),
                               rtol=1e-3, atol=1e-3)

    # Looser check vs. the full-f32 model (bounds the bf16 activation-rounding drift).
    ref_f32 = jax.block_until_ready(deepspeech_reference(x, params, lambda a: a))
    np.testing.assert_allclose(np.asarray(out), np.asarray(ref_f32),
                               rtol=1e-1, atol=1e-1)

    print("KERNEL_OK")
</pallas_src>

<mosaic_0001>
module attributes {stable_mosaic.version = 11 : i64} {
  func.func @_fc123_proj_kernel(%arg0: i32, %arg1: memref<64x128xbf16, #tpu.memory_space<vmem>>, %arg2: memref<128x128xbf16, #tpu.memory_space<vmem>>, %arg3: memref<1x128xf32, #tpu.memory_space<vmem>>, %arg4: memref<128x128xbf16, #tpu.memory_space<vmem>>, %arg5: memref<1x128xf32, #tpu.memory_space<vmem>>, %arg6: memref<128x128xbf16, #tpu.memory_space<vmem>>, %arg7: memref<1x128xf32, #tpu.memory_space<vmem>>, %arg8: memref<128x128xbf16, #tpu.memory_space<vmem>>, %arg9: memref<1x128xf32, #tpu.memory_space<vmem>>, %arg10: memref<128x128xbf16, #tpu.memory_space<vmem>>, %arg11: memref<1x128xf32, #tpu.memory_space<vmem>>, %arg12: memref<64x128xbf16, #tpu.memory_space<vmem>>, %arg13: memref<64x128xbf16, #tpu.memory_space<vmem>>) attributes {dimension_semantics = [#tpu.dimension_semantics<parallel>], iteration_bounds = array<i64: 1>, scalar_prefetch = 0 : i64, scratch_operands = 0 : i64, tpu.core_type = #tpu.core_type<tc>, window_params = [{transform_indices = @transform_0, window_bounds = array<i64: 64, 128>}, {pipeline_mode = #tpu.pipeline_mode<synchronous>, transform_indices = @transform_1, window_bounds = array<i64: 128, 128>}, {pipeline_mode = #tpu.pipeline_mode<synchronous>, transform_indices = @transform_2, window_bounds = array<i64: 1, 128>}, {pipeline_mode = #tpu.pipeline_mode<synchronous>, transform_indices = @transform_3, window_bounds = array<i64: 128, 128>}, {pipeline_mode = #tpu.pipeline_mode<synchronous>, transform_indices = @transform_4, window_bounds = array<i64: 1, 128>}, {pipeline_mode = #tpu.pipeline_mode<synchronous>, transform_indices = @transform_5, window_bounds = array<i64: 128, 128>}, {pipeline_mode = #tpu.pipeline_mode<synchronous>, transform_indices = @transform_6, window_bounds = array<i64: 1, 128>}, {pipeline_mode = #tpu.pipeline_mode<synchronous>, transform_indices = @transform_7, window_bounds = array<i64: 128, 128>}, {pipeline_mode = #tpu.pipeline_mode<synchronous>, transform_indices = @transform_8, window_bounds = array<i64: 1, 128>}, {pipeline_mode = #tpu.pipeline_mode<synchronous>, transform_indices = @transform_9, window_bounds = array<i64: 128, 128>}, {pipeline_mode = #tpu.pipeline_mode<synchronous>, transform_indices = @transform_10, window_bounds = array<i64: 1, 128>}, {transform_indices = @transform_11, window_bounds = array<i64: 64, 128>}, {transform_indices = @transform_12, window_bounds = array<i64: 64, 128>}]} {
    %c0 = arith.constant 0 : index
    %c0_0 = arith.constant 0 : index
    %0 = vector.load %arg1[%c0, %c0_0] : memref<64x128xbf16, #tpu.memory_space<vmem>>, vector<64x128xbf16>
    %c0_1 = arith.constant 0 : index
    %c0_2 = arith.constant 0 : index
    %1 = vector.load %arg2[%c0_1, %c0_2] : memref<128x128xbf16, #tpu.memory_space<vmem>>, vector<128x128xbf16>
    %cst = arith.constant dense<0.000000e+00> : vector<64x128xf32>
    %2 = tpu.matmul %0, %1, %cst {dimension_numbers = #tpu.dot_dimension_numbers<[1], [0], [0], [1], [0, 0, 1, 1], [], []>} : vector<64x128xbf16>, vector<128x128xbf16>, vector<64x128xf32> -> vector<64x128xf32>
    %c0_3 = arith.constant 0 : index
    %c0_4 = arith.constant 0 : index
    %3 = vector.load %arg3[%c0_3, %c0_4] : memref<1x128xf32, #tpu.memory_space<vmem>>, vector<1x128xf32>
    %4 = vector.broadcast %3 : vector<1x128xf32> to vector<64x128xf32>
    %5 = arith.addf %2, %4 : vector<64x128xf32>
    %cst_5 = arith.constant 0.000000e+00 : f32
    %6 = vector.broadcast %cst_5 : f32 to vector<64x128xf32>
    %7 = arith.maximumf %5, %6 : vector<64x128xf32>
    %cst_6 = arith.constant 2.000000e+01 : f32
    %8 = vector.broadcast %cst_6 : f32 to vector<64x128xf32>
    %9 = arith.minimumf %7, %8 : vector<64x128xf32>
    %10 = arith.truncf %9 : vector<64x128xf32> to vector<64x128xbf16>
    %c0_7 = arith.constant 0 : index
    %c0_8 = arith.constant 0 : index
    %11 = vector.load %arg4[%c0_7, %c0_8] : memref<128x128xbf16, #tpu.memory_space<vmem>>, vector<128x128xbf16>
    %cst_9 = arith.constant dense<0.000000e+00> : vector<64x128xf32>
    %12 = tpu.matmul %10, %11, %cst_9 {dimension_numbers = #tpu.dot_dimension_numbers<[1], [0], [0], [1], [0, 0, 1, 1], [], []>} : vector<64x128xbf16>, vector<128x128xbf16>, vector<64x128xf32> -> vector<64x128xf32>
    %c0_10 = arith.constant 0 : index
    %c0_11 = arith.constant 0 : index
    %13 = vector.load %arg5[%c0_10, %c0_11] : memref<1x128xf32, #tpu.memory_space<vmem>>, vector<1x128xf32>
    %14 = vector.broadcast %13 : vector<1x128xf32> to vector<64x128xf32>
    %15 = arith.addf %12, %14 : vector<64x128xf32>
    %cst_12 = arith.constant 0.000000e+00 : f32
    %16 = vector.broadcast %cst_12 : f32 to vector<64x128xf32>
    %17 = arith.maximumf %15, %16 : vector<64x128xf32>
    %cst_13 = arith.constant 2.000000e+01 : f32
    %18 = vector.broadcast %cst_13 : f32 to vector<64x128xf32>
    %19 = arith.minimumf %17, %18 : vector<64x128xf32>
    %20 = arith.truncf %19 : vector<64x128xf32> to vector<64x128xbf16>
    %c0_14 = arith.constant 0 : index
    %c0_15 = arith.constant 0 : index
    %21 = vector.load %arg6[%c0_14, %c0_15] : memref<128x128xbf16, #tpu.memory_space<vmem>>, vector<128x128xbf16>
    %cst_16 = arith.constant dense<0.000000e+00> : vector<64x128xf32>
    %22 = tpu.matmul %20, %21, %cst_16 {dimension_numbers = #tpu.dot_dimension_numbers<[1], [0], [0], [1], [0, 0, 1, 1], [], []>} : vector<64x128xbf16>, vector<128x128xbf16>, vector<64x128xf32> -> vector<64x128xf32>
    %c0_17 = arith.constant 0 : index
    %c0_18 = arith.constant 0 : index
    %23 = vector.load %arg7[%c0_17, %c0_18] : memref<1x128xf32, #tpu.memory_space<vmem>>, vector<1x128xf32>
    %24 = vector.broadcast %23 : vector<1x128xf32> to vector<64x128xf32>
    %25 = arith.addf %22, %24 : vector<64x128xf32>
    %cst_19 = arith.constant 0.000000e+00 : f32
    %26 = vector.broadcast %cst_19 : f32 to vector<64x128xf32>
    %27 = arith.maximumf %25, %26 : vector<64x128xf32>
    %cst_20 = arith.constant 2.000000e+01 : f32
    %28 = vector.broadcast %cst_20 : f32 to vector<64x128xf32>
    %29 = arith.minimumf %27, %28 : vector<64x128xf32>
    %30 = arith.truncf %29 : vector<64x128xf32> to vector<64x128xbf16>
    %c0_21 = arith.constant 0 : index
    %c0_22 = arith.constant 0 : index
    %31 = vector.load %arg8[%c0_21, %c0_22] : memref<128x128xbf16, #tpu.memory_space<vmem>>, vector<128x128xbf16>
    %cst_23 = arith.constant dense<0.000000e+00> : vector<64x128xf32>
    %32 = tpu.matmul %30, %31, %cst_23 {dimension_numbers = #tpu.dot_dimension_numbers<[1], [0], [0], [1], [0, 0, 1, 1], [], []>} : vector<64x128xbf16>, vector<128x128xbf16>, vector<64x128xf32> -> vector<64x128xf32>
    %c0_24 = arith.constant 0 : index
    %c0_25 = arith.constant 0 : index
    %33 = vector.load %arg9[%c0_24, %c0_25] : memref<1x128xf32, #tpu.memory_space<vmem>>, vector<1x128xf32>
    %34 = vector.broadcast %33 : vector<1x128xf32> to vector<64x128xf32>
    %35 = arith.addf %32, %34 : vector<64x128xf32>
    %36 = arith.truncf %35 : vector<64x128xf32> to vector<64x128xbf16>
    %c0_26 = arith.constant 0 : index
    %c0_27 = arith.constant 0 : index
    %37 = vector.load %arg12[%c0_26, %c0_27] : memref<64x128xbf16, #tpu.memory_space<vmem>>, vector<64x128xbf16>
    tpu.vector_store %arg12[%c0_26, %c0_27], %36 {strides = array<i32>} : memref<64x128xbf16, #tpu.memory_space<vmem>>, vector<64x128xbf16>,
    %c0_28 = arith.constant 0 : index
    %c0_29 = arith.constant 0 : index
    %38 = vector.load %arg10[%c0_28, %c0_29] : memref<128x128xbf16, #tpu.memory_space<vmem>>, vector<128x128xbf16>
    %cst_30 = arith.constant dense<0.000000e+00> : vector<64x128xf32>
    %39 = tpu.matmul %30, %38, %cst_30 {dimension_numbers = #tpu.dot_dimension_numbers<[1], [0], [0], [1], [0, 0, 1, 1], [], []>} : vector<64x128xbf16>, vector<128x128xbf16>, vector<64x128xf32> -> vector<64x128xf32>
    %c0_31 = arith.constant 0 : index
    %c0_32 = arith.constant 0 : index
    %40 = vector.load %arg11[%c0_31, %c0_32] : memref<1x128xf32, #tpu.memory_space<vmem>>, vector<1x128xf32>
    %41 = vector.broadcast %40 : vector<1x128xf32> to vector<64x128xf32>
    %42 = arith.addf %39, %41 : vector<64x128xf32>
    %43 = arith.truncf %42 : vector<64x128xf32> to vector<64x128xbf16>
    %c0_33 = arith.constant 0 : index
    %c0_34 = arith.constant 0 : index
    %44 = vector.load %arg13[%c0_33, %c0_34] : memref<64x128xbf16, #tpu.memory_space<vmem>>, vector<64x128xbf16>
    tpu.vector_store %arg13[%c0_33, %c0_34], %43 {strides = array<i32>} : memref<64x128xbf16, #tpu.memory_space<vmem>>, vector<64x128xbf16>,
    return
  }
  func.func @transform_0(%arg0: i32) -> (i32, i32) {
    %c0_i32 = arith.constant 0 : i32
    %c0_i32_0 = arith.constant 0 : i32
    return %arg0, %c0_i32 : i32, i32
  }
  func.func @transform_1(%arg0: i32) -> (i32, i32) {
    %c0_i32 = arith.constant 0 : i32
    %c0_i32_0 = arith.constant 0 : i32
    %c0_i32_1 = arith.constant 0 : i32
    return %c0_i32, %c0_i32_0 : i32, i32
  }
  func.func @transform_2(%arg0: i32) -> (i32, i32) {
    %c0_i32 = arith.constant 0 : i32
    %c0_i32_0 = arith.constant 0 : i32
    %c0_i32_1 = arith.constant 0 : i32
    return %c0_i32, %c0_i32_0 : i32, i32
  }
  func.func @transform_3(%arg0: i32) -> (i32, i32) {
    %c0_i32 = arith.constant 0 : i32
    %c0_i32_0 = arith.constant 0 : i32
    %c0_i32_1 = arith.constant 0 : i32
    return %c0_i32, %c0_i32_0 : i32, i32
  }
  func.func @transform_4(%arg0: i32) -> (i32, i32) {
    %c0_i32 = arith.constant 0 : i32
    %c0_i32_0 = arith.constant 0 : i32
    %c0_i32_1 = arith.constant 0 : i32
    return %c0_i32, %c0_i32_0 : i32, i32
  }
  func.func @transform_5(%arg0: i32) -> (i32, i32) {
    %c0_i32 = arith.constant 0 : i32
    %c0_i32_0 = arith.constant 0 : i32
    %c0_i32_1 = arith.constant 0 : i32
    return %c0_i32, %c0_i32_0 : i32, i32
  }
  func.func @transform_6(%arg0: i32) -> (i32, i32) {
    %c0_i32 = arith.constant 0 : i32
    %c0_i32_0 = arith.constant 0 : i32
    %c0_i32_1 = arith.constant 0 : i32
    return %c0_i32, %c0_i32_0 : i32, i32
  }
  func.func @transform_7(%arg0: i32) -> (i32, i32) {
    %c0_i32 = arith.constant 0 : i32
    %c0_i32_0 = arith.constant 0 : i32
    %c0_i32_1 = arith.constant 0 : i32
    return %c0_i32, %c0_i32_0 : i32, i32
  }
  func.func @transform_8(%arg0: i32) -> (i32, i32) {
    %c0_i32 = arith.constant 0 : i32
    %c0_i32_0 = arith.constant 0 : i32
    %c0_i32_1 = arith.constant 0 : i32
    return %c0_i32, %c0_i32_0 : i32, i32
  }
  func.func @transform_9(%arg0: i32) -> (i32, i32) {
    %c0_i32 = arith.constant 0 : i32
    %c0_i32_0 = arith.constant 0 : i32
    %c0_i32_1 = arith.constant 0 : i32
    return %c0_i32, %c0_i32_0 : i32, i32
  }
  func.func @transform_10(%arg0: i32) -> (i32, i32) {
    %c0_i32 = arith.constant 0 : i32
    %c0_i32_0 = arith.constant 0 : i32
    %c0_i32_1 = arith.constant 0 : i32
    return %c0_i32, %c0_i32_0 : i32, i32
  }
  func.func @transform_11(%arg0: i32) -> (i32, i32) {
    %c0_i32 = arith.constant 0 : i32
    %c0_i32_0 = arith.constant 0 : i32
    return %arg0, %c0_i32 : i32, i32
  }
  func.func @transform_12(%arg0: i32) -> (i32, i32) {
    %c0_i32 = arith.constant 0 : i32
    %c0_i32_0 = arith.constant 0 : i32
    return %arg0, %c0_i32 : i32, i32
  }
}

module attributes {stable_mosaic.version = 11 : i64} {
  func.func @_birnn_relu_kernel(%arg0: i32, %arg1: memref<8x8x128xbf16, #tpu.memory_space<vmem>>, %arg2: memref<8x8x128xbf16, #tpu.memory_space<vmem>>, %arg3: memref<128x128xbf16, #tpu.memory_space<vmem>>, %arg4: memref<128x128xbf16, #tpu.memory_space<vmem>>, %arg5: memref<8x8x128xbf16, #tpu.memory_space<vmem>>, %arg6: memref<8x8x128xbf16, #tpu.memory_space<vmem>>, %arg7: memref<8x128xf32, #tpu.memory_space<vmem>>, %arg8: memref<8x128xf32, #tpu.memory_space<vmem>>) attributes {dimension_semantics = [#tpu.dimension_semantics<arbitrary>], iteration_bounds = array<i64: 1>, scalar_prefetch = 0 : i64, scratch_operands = 2 : i64, tpu.core_type = #tpu.core_type<tc>, window_params = [{transform_indices = @transform_0, window_bounds = array<i64: 8, 8, 128>}, {transform_indices = @transform_1, window_bounds = array<i64: 8, 8, 128>}, {pipeline_mode = #tpu.pipeline_mode<synchronous>, transform_indices = @transform_2, window_bounds = array<i64: 128, 128>}, {pipeline_mode = #tpu.pipeline_mode<synchronous>, transform_indices = @transform_3, window_bounds = array<i64: 128, 128>}, {transform_indices = @transform_4, window_bounds = array<i64: 8, 8, 128>}, {transform_indices = @transform_5, window_bounds = array<i64: 8, 8, 128>}]} {
    %c0_i32 = arith.constant 0 : i32
    %0 = arith.cmpi eq, %arg0, %c0_i32 : i32
    %1 = arith.extui %0 : i1 to i32
    %c0_i32_0 = arith.constant 0 : i32
    %2 = arith.cmpi ne, %1, %c0_i32_0 : i32
    scf.if %2 {
      %cst_216 = arith.constant 0.000000e+00 : f32
      %243 = vector.broadcast %cst_216 : f32 to vector<8x128xf32>
      %c0_217 = arith.constant 0 : index
      %c0_218 = arith.constant 0 : index
      %244 = vector.load %arg7[%c0_217, %c0_218] : memref<8x128xf32, #tpu.memory_space<vmem>>, vector<8x128xf32>
      tpu.vector_store %arg7[%c0_217, %c0_218], %243 {strides = array<i32>} : memref<8x128xf32, #tpu.memory_space<vmem>>, vector<8x128xf32>,
      %cst_219 = arith.constant 0.000000e+00 : f32
      %245 = vector.broadcast %cst_219 : f32 to vector<8x128xf32>
      %c0_220 = arith.constant 0 : index
      %c0_221 = arith.constant 0 : index
      %246 = vector.load %arg8[%c0_220, %c0_221] : memref<8x128xf32, #tpu.memory_space<vmem>>, vector<8x128xf32>
      tpu.vector_store %arg8[%c0_220, %c0_221], %245 {strides = array<i32>} : memref<8x128xf32, #tpu.memory_space<vmem>>, vector<8x128xf32>,
    } else {
    }
    %c0 = arith.constant 0 : index
    %c0_1 = arith.constant 0 : index
    %c0_2 = arith.constant 0 : index
    %3 = vector.load %arg1[%c0, %c0_1, %c0_2] : memref<8x8x128xbf16, #tpu.memory_space<vmem>>, vector<1x8x128xbf16>
    %4 = vector.shape_cast %3 : vector<1x8x128xbf16> to vector<8x128xbf16>
    %5 = arith.extf %4 : vector<8x128xbf16> to vector<8x128xf32>
    %c0_3 = arith.constant 0 : index
    %c0_4 = arith.constant 0 : index
    %6 = vector.load %arg7[%c0_3, %c0_4] : memref<8x128xf32, #tpu.memory_space<vmem>>, vector<8x128xf32>
    %7 = arith.truncf %6 : vector<8x128xf32> to vector<8x128xbf16>
    %c0_5 = arith.constant 0 : index
    %c0_6 = arith.constant 0 : index
    %8 = vector.load %arg3[%c0_5, %c0_6] : memref<128x128xbf16, #tpu.memory_space<vmem>>, vector<128x128xbf16>
    %cst = arith.constant dense<0.000000e+00> : vector<8x128xf32>
    %9 = tpu.matmul %7, %8, %cst {dimension_numbers = #tpu.dot_dimension_numbers<[1], [0], [0], [1], [0, 0, 1, 1], [], []>} : vector<8x128xbf16>, vector<128x128xbf16>, vector<8x128xf32> -> vector<8x128xf32>
    %10 = arith.addf %5, %9 : vector<8x128xf32>
    %cst_7 = arith.constant 0.000000e+00 : f32
    %11 = vector.broadcast %cst_7 : f32 to vector<8x128xf32>
    %12 = arith.maximumf %10, %11 : vector<8x128xf32>
    %c7 = arith.constant 7 : index
    %c0_8 = arith.constant 0 : index
    %c0_9 = arith.constant 0 : index
    %13 = vector.load %arg2[%c7, %c0_8, %c0_9] : memref<8x8x128xbf16, #tpu.memory_space<vmem>>, vector<1x8x128xbf16>
    %14 = vector.shape_cast %13 : vector<1x8x128xbf16> to vector<8x128xbf16>
    %15 = arith.extf %14 : vector<8x128xbf16> to vector<8x128xf32>
    %c0_10 = arith.constant 0 : index
    %c0_11 = arith.constant 0 : index
    %16 = vector.load %arg8[%c0_10, %c0_11] : memref<8x128xf32, #tpu.memory_space<vmem>>, vector<8x128xf32>
    %17 = arith.truncf %16 : vector<8x128xf32> to vector<8x128xbf16>
    %c0_12 = arith.constant 0 : index
    %c0_13 = arith.constant 0 : index
    %18 = vector.load %arg4[%c0_12, %c0_13] : memref<128x128xbf16, #tpu.memory_space<vmem>>, vector<128x128xbf16>
    %cst_14 = arith.constant dense<0.000000e+00> : vector<8x128xf32>
    %19 = tpu.matmul %17, %18, %cst_14 {dimension_numbers = #tpu.dot_dimension_numbers<[1], [0], [0], [1], [0, 0, 1, 1], [], []>} : vector<8x128xbf16>, vector<128x128xbf16>, vector<8x128xf32> -> vector<8x128xf32>
    %20 = arith.addf %15, %19 : vector<8x128xf32>
    %cst_15 = arith.constant 0.000000e+00 : f32
    %21 = vector.broadcast %cst_15 : f32 to vector<8x128xf32>
    %22 = arith.maximumf %20, %21 : vector<8x128xf32>
    %c0_16 = arith.constant 0 : index
    %c0_17 = arith.constant 0 : index
    %23 = vector.load %arg7[%c0_16, %c0_17] : memref<8x128xf32, #tpu.memory_space<vmem>>, vector<8x128xf32>
    tpu.vector_store %arg7[%c0_16, %c0_17], %12 {strides = array<i32>} : memref<8x128xf32, #tpu.memory_space<vmem>>, vector<8x128xf32>,
    %c0_18 = arith.constant 0 : index
    %c0_19 = arith.constant 0 : index
    %24 = vector.load %arg8[%c0_18, %c0_19] : memref<8x128xf32, #tpu.memory_space<vmem>>, vector<8x128xf32>
    tpu.vector_store %arg8[%c0_18, %c0_19], %22 {strides = array<i32>} : memref<8x128xf32, #tpu.memory_space<vmem>>, vector<8x128xf32>,
    %25 = arith.truncf %12 : vector<8x128xf32> to vector<8x128xbf16>
    %c0_20 = arith.constant 0 : index
    %c0_21 = arith.constant 0 : index
    %c0_22 = arith.constant 0 : index
    %26 = vector.load %arg5[%c0_20, %c0_21, %c0_22] : memref<8x8x128xbf16, #tpu.memory_space<vmem>>, vector<1x8x128xbf16>
    %27 = vector.shape_cast %26 : vector<1x8x128xbf16> to vector<8x128xbf16>
    %28 = vector.shape_cast %25 : vector<8x128xbf16> to vector<1x8x128xbf16>
    tpu.vector_store %arg5[%c0_20, %c0_21, %c0_22], %28 {strides = array<i32>} : memref<8x8x128xbf16, #tpu.memory_space<vmem>>, vector<1x8x128xbf16>,
    %29 = arith.truncf %22 : vector<8x128xf32> to vector<8x128xbf16>
    %c7_23 = arith.constant 7 : index
    %c0_24 = arith.constant 0 : index
    %c0_25 = arith.constant 0 : index
    %30 = vector.load %arg6[%c7_23, %c0_24, %c0_25] : memref<8x8x128xbf16, #tpu.memory_space<vmem>>, vector<1x8x128xbf16>
    %31 = vector.shape_cast %30 : vector<1x8x128xbf16> to vector<8x128xbf16>
    %32 = vector.shape_cast %29 : vector<8x128xbf16> to vector<1x8x128xbf16>
    tpu.vector_store %arg6[%c7_23, %c0_24, %c0_25], %32 {strides = array<i32>} : memref<8x8x128xbf16, #tpu.memory_space<vmem>>, vector<1x8x128xbf16>,
    %c1 = arith.constant 1 : index
    %c0_26 = arith.constant 0 : index
    %c0_27 = arith.constant 0 : index
    %33 = vector.load %arg1[%c1, %c0_26, %c0_27] : memref<8x8x128xbf16, #tpu.memory_space<vmem>>, vector<1x8x128xbf16>
    %34 = vector.shape_cast %33 : vector<1x8x128xbf16> to vector<8x128xbf16>
    %35 = arith.extf %34 : vector<8x128xbf16> to vector<8x128xf32>
    %c0_28 = arith.constant 0 : index
    %c0_29 = arith.constant 0 : index
    %36 = vector.load %arg7[%c0_28, %c0_29] : memref<8x128xf32, #tpu.memory_space<vmem>>, vector<8x128xf32>
    %37 = arith.truncf %36 : vector<8x128xf32> to vector<8x128xbf16>
    %c0_30 = arith.constant 0 : index
    %c0_31 = arith.constant 0 : index
    %38 = vector.load %arg3[%c0_30, %c0_31] : memref<128x128xbf16, #tpu.memory_space<vmem>>, vector<128x128xbf16>
    %cst_32 = arith.constant dense<0.000000e+00> : vector<8x128xf32>
    %39 = tpu.matmul %37, %38, %cst_32 {dimension_numbers = #tpu.dot_dimension_numbers<[1], [0], [0], [1], [0, 0, 1, 1], [], []>} : vector<8x128xbf16>, vector<128x128xbf16>, vector<8x128xf32> -> vector<8x128xf32>
    %40 = arith.addf %35, %39 : vector<8x128xf32>
    %cst_33 = arith.constant 0.000000e+00 : f32
    %41 = vector.broadcast %cst_33 : f32 to vector<8x128xf32>
    %42 = arith.maximumf %40, %41 : vector<8x128xf32>
    %c6 = arith.constant 6 : index
    %c0_34 = arith.constant 0 : index
    %c0_35 = arith.constant 0 : index
    %43 = vector.load %arg2[%c6, %c0_34, %c0_35] : memref<8x8x128xbf16, #tpu.memory_space<vmem>>, vector<1x8x128xbf16>
    %44 = vector.shape_cast %43 : vector<1x8x128xbf16> to vector<8x128xbf16>
    %45 = arith.extf %44 : vector<8x128xbf16> to vector<8x128xf32>
    %c0_36 = arith.constant 0 : index
    %c0_37 = arith.constant 0 : index
    %46 = vector.load %arg8[%c0_36, %c0_37] : memref<8x128xf32, #tpu.memory_space<vmem>>, vector<8x128xf32>
    %47 = arith.truncf %46 : vector<8x128xf32> to vector<8x128xbf16>
    %c0_38 = arith.constant 0 : index
    %c0_39 = arith.constant 0 : index
    %48 = vector.load %arg4[%c0_38, %c0_39] : memref<128x128xbf16, #tpu.memory_space<vmem>>, vector<128x128xbf16>
    %cst_40 = arith.constant dense<0.000000e+00> : vector<8x128xf32>
    %49 = tpu.matmul %47, %48, %cst_40 {dimension_numbers = #tpu.dot_dimension_numbers<[1], [0], [0], [1], [0, 0, 1, 1], [], []>} : vector<8x128xbf16>, vector<128x128xbf16>, vector<8x128xf32> -> vector<8x128xf32>
    %50 = arith.addf %45, %49 : vector<8x128xf32>
    %cst_41 = arith.constant 0.000000e+00 : f32
    %51 = vector.broadcast %cst_41 : f32 to vector<8x128xf32>
    %52 = arith.maximumf %50, %51 : vector<8x128xf32>
    %c0_42 = arith.constant 0 : index
    %c0_43 = arith.constant 0 : index
    %53 = vector.load %arg7[%c0_42, %c0_43] : memref<8x128xf32, #tpu.memory_space<vmem>>, vector<8x128xf32>
    tpu.vector_store %arg7[%c0_42, %c0_43], %42 {strides = array<i32>} : memref<8x128xf32, #tpu.memory_space<vmem>>, vector<8x128xf32>,
    %c0_44 = arith.constant 0 : index
    %c0_45 = arith.constant 0 : index
    %54 = vector.load %arg8[%c0_44, %c0_45] : memref<8x128xf32, #tpu.memory_space<vmem>>, vector<8x128xf32>
    tpu.vector_store %arg8[%c0_44, %c0_45], %52 {strides = array<i32>} : memref<8x128xf32, #tpu.memory_space<vmem>>, vector<8x128xf32>,
    %55 = arith.truncf %42 : vector<8x128xf32> to vector<8x128xbf16>
    %c1_46 = arith.constant 1 : index
    %c0_47 = arith.constant 0 : index
    %c0_48 = arith.constant 0 : index
    %56 = vector.load %arg5[%c1_46, %c0_47, %c0_48] : memref<8x8x128xbf16, #tpu.memory_space<vmem>>, vector<1x8x128xbf16>
    %57 = vector.shape_cast %56 : vector<1x8x128xbf16> to vector<8x128xbf16>
    %58 = vector.shape_cast %55 : vector<8x128xbf16> to vector<1x8x128xbf16>
    tpu.vector_store %arg5[%c1_46, %c0_47, %c0_48], %58 {strides = array<i32>} : memref<8x8x128xbf16, #tpu.memory_space<vmem>>, vector<1x8x128xbf16>,
    %59 = arith.truncf %52 : vector<8x128xf32> to vector<8x128xbf16>
    %c6_49 = arith.constant 6 : index
    %c0_50 = arith.constant 0 : index
    %c0_51 = arith.constant 0 : index
    %60 = vector.load %arg6[%c6_49, %c0_50, %c0_51] : memref<8x8x128xbf16, #tpu.memory_space<vmem>>, vector<1x8x128xbf16>
    %61 = vector.shape_cast %60 : vector<1x8x128xbf16> to vector<8x128xbf16>
    %62 = vector.shape_cast %59 : vector<8x128xbf16> to vector<1x8x128xbf16>
    tpu.vector_store %arg6[%c6_49, %c0_50, %c0_51], %62 {strides = array<i32>} : memref<8x8x128xbf16, #tpu.memory_space<vmem>>, vector<1x8x128xbf16>,
    %c2 = arith.constant 2 : index
    %c0_52 = arith.constant 0 : index
    %c0_53 = arith.constant 0 : index
    %63 = vector.load %arg1[%c2, %c0_52, %c0_53] : memref<8x8x128xbf16, #tpu.memory_space<vmem>>, vector<1x8x128xbf16>
    %64 = vector.shape_cast %63 : vector<1x8x128xbf16> to vector<8x128xbf16>
    %65 = arith.extf %64 : vector<8x128xbf16> to vector<8x128xf32>
    %c0_54 = arith.constant 0 : index
    %c0_55 = arith.constant 0 : index
    %66 = vector.load %arg7[%c0_54, %c0_55] : memref<8x128xf32, #tpu.memory_space<vmem>>, vector<8x128xf32>
    %67 = arith.truncf %66 : vector<8x128xf32> to vector<8x128xbf16>
    %c0_56 = arith.constant 0 : index
    %c0_57 = arith.constant 0 : index
    %68 = vector.load %arg3[%c0_56, %c0_57] : memref<128x128xbf16, #tpu.memory_space<vmem>>, vector<128x128xbf16>
    %cst_58 = arith.constant dense<0.000000e+00> : vector<8x128xf32>
    %69 = tpu.matmul %67, %68, %cst_58 {dimension_numbers = #tpu.dot_dimension_numbers<[1], [0], [0], [1], [0, 0, 1, 1], [], []>} : vector<8x128xbf16>, vector<128x128xbf16>, vector<8x128xf32> -> vector<8x128xf32>
    %70 = arith.addf %65, %69 : vector<8x128xf32>
    %cst_59 = arith.constant 0.000000e+00 : f32
    %71 = vector.broadcast %cst_59 : f32 to vector<8x128xf32>
    %72 = arith.maximumf %70, %71 : vector<8x128xf32>
    %c5 = arith.constant 5 : index
    %c0_60 = arith.constant 0 : index
    %c0_61 = arith.constant 0 : index
    %73 = vector.load %arg2[%c5, %c0_60, %c0_61] : memref<8x8x128xbf16, #tpu.memory_space<vmem>>, vector<1x8x128xbf16>
    %74 = vector.shape_cast %73 : vector<1x8x128xbf16> to vector<8x128xbf16>
    %75 = arith.extf %74 : vector<8x128xbf16> to vector<8x128xf32>
    %c0_62 = arith.constant 0 : index
    %c0_63 = arith.constant 0 : index
    %76 = vector.load %arg8[%c0_62, %c0_63] : memref<8x128xf32, #tpu.memory_space<vmem>>, vector<8x128xf32>
    %77 = arith.truncf %76 : vector<8x128xf32> to vector<8x128xbf16>
    %c0_64 = arith.constant 0 : index
    %c0_65 = arith.constant 0 : index
    %78 = vector.load %arg4[%c0_64, %c0_65] : memref<128x128xbf16, #tpu.memory_space<vmem>>, vector<128x128xbf16>
    %cst_66 = arith.constant dense<0.000000e+00> : vector<8x128xf32>
    %79 = tpu.matmul %77, %78, %cst_66 {dimension_numbers = #tpu.dot_dimension_numbers<[1], [0], [0], [1], [0, 0, 1, 1], [], []>} : vector<8x128xbf16>, vector<128x128xbf16>, vector<8x128xf32> -> vector<8x128xf32>
    %80 = arith.addf %75, %79 : vector<8x128xf32>
    %cst_67 = arith.constant 0.000000e+00 : f32
    %81 = vector.broadcast %cst_67 : f32 to vector<8x128xf32>
    %82 = arith.maximumf %80, %81 : vector<8x128xf32>
    %c0_68 = arith.constant 0 : index
    %c0_69 = arith.constant 0 : index
    %83 = vector.load %arg7[%c0_68, %c0_69] : memref<8x128xf32, #tpu.memory_space<vmem>>, vector<8x128xf32>
    tpu.vector_store %arg7[%c0_68, %c0_69], %72 {strides = array<i32>} : memref<8x128xf32, #tpu.memory_space<vmem>>, vector<8x128xf32>,
    %c0_70 = arith.constant 0 : index
    %c0_71 = arith.constant 0 : index
    %84 = vector.load %arg8[%c0_70, %c0_71] : memref<8x128xf32, #tpu.memory_space<vmem>>, vector<8x128xf32>
    tpu.vector_store %arg8[%c0_70, %c0_71], %82 {strides = array<i32>} : memref<8x128xf32, #tpu.memory_space<vmem>>, vector<8x128xf32>,
    %85 = arith.truncf %72 : vector<8x128xf32> to vector<8x128xbf16>
    %c2_72 = arith.constant 2 : index
    %c0_73 = arith.constant 0 : index
    %c0_74 = arith.constant 0 : index
    %86 = vector.load %arg5[%c2_72, %c0_73, %c0_74] : memref<8x8x128xbf16, #tpu.memory_space<vmem>>, vector<1x8x128xbf16>
    %87 = vector.shape_cast %86 : vector<1x8x128xbf16> to vector<8x128xbf16>
    %88 = vector.shape_cast %85 : vector<8x128xbf16> to vector<1x8x128xbf16>
    tpu.vector_store %arg5[%c2_72, %c0_73, %c0_74], %88 {strides = array<i32>} : memref<8x8x128xbf16, #tpu.memory_space<vmem>>, vector<1x8x128xbf16>,
    %89 = arith.truncf %82 : vector<8x128xf32> to vector<8x128xbf16>
    %c5_75 = arith.constant 5 : index
    %c0_76 = arith.constant 0 : index
    %c0_77 = arith.constant 0 : index
    %90 = vector.load %arg6[%c5_75, %c0_76, %c0_77] : memref<8x8x128xbf16, #tpu.memory_space<vmem>>, vector<1x8x128xbf16>
    %91 = vector.shape_cast %90 : vector<1x8x128xbf16> to vector<8x128xbf16>
    %92 = vector.shape_cast %89 : vector<8x128xbf16> to vector<1x8x128xbf16>
    tpu.vector_store %arg6[%c5_75, %c0_76, %c0_77], %92 {strides = array<i32>} : memref<8x8x128xbf16, #tpu.memory_space<vmem>>, vector<1x8x128xbf16>,
    %c3 = arith.constant 3 : index
    %c0_78 = arith.constant 0 : index
    %c0_79 = arith.constant 0 : index
    %93 = vector.load %arg1[%c3, %c0_78, %c0_79] : memref<8x8x128xbf16, #tpu.memory_space<vmem>>, vector<1x8x128xbf16>
    %94 = vector.shape_cast %93 : vector<1x8x128xbf16> to vector<8x128xbf16>
    %95 = arith.extf %94 : vector<8x128xbf16> to vector<8x128xf32>
    %c0_80 = arith.constant 0 : index
    %c0_81 = arith.constant 0 : index
    %96 = vector.load %arg7[%c0_80, %c0_81] : memref<8x128xf32, #tpu.memory_space<vmem>>, vector<8x128xf32>
    %97 = arith.truncf %96 : vector<8x128xf32> to vector<8x128xbf16>
    %c0_82 = arith.constant 0 : index
    %c0_83 = arith.constant 0 : index
    %98 = vector.load %arg3[%c0_82, %c0_83] : memref<128x128xbf16, #tpu.memory_space<vmem>>, vector<128x128xbf16>
    %cst_84 = arith.constant dense<0.000000e+00> : vector<8x128xf32>
    %99 = tpu.matmul %97, %98, %cst_84 {dimension_numbers = #tpu.dot_dimension_numbers<[1], [0], [0], [1], [0, 0, 1, 1], [], []>} : vector<8x128xbf16>, vector<128x128xbf16>, vector<8x128xf32> -> vector<8x128xf32>
    %100 = arith.addf %95, %99 : vector<8x128xf32>
    %cst_85 = arith.constant 0.000000e+00 : f32
    %101 = vector.broadcast %cst_85 : f32 to vector<8x128xf32>
    %102 = arith.maximumf %100, %101 : vector<8x128xf32>
    %c4 = arith.constant 4 : index
    %c0_86 = arith.constant 0 : index
    %c0_87 = arith.constant 0 : index
    %103 = vector.load %arg2[%c4, %c0_86, %c0_87] : memref<8x8x128xbf16, #tpu.memory_space<vmem>>, vector<1x8x128xbf16>
    %104 = vector.shape_cast %103 : vector<1x8x128xbf16> to vector<8x128xbf16>
    %105 = arith.extf %104 : vector<8x128xbf16> to vector<8x128xf32>
    %c0_88 = arith.constant 0 : index
    %c0_89 = arith.constant 0 : index
    %106 = vector.load %arg8[%c0_88, %c0_89] : memref<8x128xf32, #tpu.memory_space<vmem>>, vector<8x128xf32>
    %107 = arith.truncf %106 : vector<8x128xf32> to vector<8x128xbf16>
    %c0_90 = arith.constant 0 : index
    %c0_91 = arith.constant 0 : index
    %108 = vector.load %arg4[%c0_90, %c0_91] : memref<128x128xbf16, #tpu.memory_space<vmem>>, vector<128x128xbf16>
    %cst_92 = arith.constant dense<0.000000e+00> : vector<8x128xf32>
    %109 = tpu.matmul %107, %108, %cst_92 {dimension_numbers = #tpu.dot_dimension_numbers<[1], [0], [0], [1], [0, 0, 1, 1], [], []>} : vector<8x128xbf16>, vector<128x128xbf16>, vector<8x128xf32> -> vector<8x128xf32>
    %110 = arith.addf %105, %109 : vector<8x128xf32>
    %cst_93 = arith.constant 0.000000e+00 : f32
    %111 = vector.broadcast %cst_93 : f32 to vector<8x128xf32>
    %112 = arith.maximumf %110, %111 : vector<8x128xf32>
    %c0_94 = arith.constant 0 : index
    %c0_95 = arith.constant 0 : index
    %113 = vector.load %arg7[%c0_94, %c0_95] : memref<8x128xf32, #tpu.memory_space<vmem>>, vector<8x128xf32>
    tpu.vector_store %arg7[%c0_94, %c0_95], %102 {strides = array<i32>} : memref<8x128xf32, #tpu.memory_space<vmem>>, vector<8x128xf32>,
    %c0_96 = arith.constant 0 : index
    %c0_97 = arith.constant 0 : index
    %114 = vector.load %arg8[%c0_96, %c0_97] : memref<8x128xf32, #tpu.memory_space<vmem>>, vector<8x128xf32>
    tpu.vector_store %arg8[%c0_96, %c0_97], %112 {strides = array<i32>} : memref<8x128xf32, #tpu.memory_space<vmem>>, vector<8x128xf32>,
    %115 = arith.truncf %102 : vector<8x128xf32> to vector<8x128xbf16>
    %c3_98 = arith.constant 3 : index
    %c0_99 = arith.constant 0 : index
    %c0_100 = arith.constant 0 : index
    %116 = vector.load %arg5[%c3_98, %c0_99, %c0_100] : memref<8x8x128xbf16, #tpu.memory_space<vmem>>, vector<1x8x128xbf16>
    %117 = vector.shape_cast %116 : vector<1x8x128xbf16> to vector<8x128xbf16>
    %118 = vector.shape_cast %115 : vector<8x128xbf16> to vector<1x8x128xbf16>
    tpu.vector_store %arg5[%c3_98, %c0_99, %c0_100], %118 {strides = array<i32>} : memref<8x8x128xbf16, #tpu.memory_space<vmem>>, vector<1x8x128xbf16>,
    %119 = arith.truncf %112 : vector<8x128xf32> to vector<8x128xbf16>
    %c4_101 = arith.constant 4 : index
    %c0_102 = arith.constant 0 : index
    %c0_103 = arith.constant 0 : index
    %120 = vector.load %arg6[%c4_101, %c0_102, %c0_103] : memref<8x8x128xbf16, #tpu.memory_space<vmem>>, vector<1x8x128xbf16>
    %121 = vector.shape_cast %120 : vector<1x8x128xbf16> to vector<8x128xbf16>
    %122 = vector.shape_cast %119 : vector<8x128xbf16> to vector<1x8x128xbf16>
    tpu.vector_store %arg6[%c4_101, %c0_102, %c0_103], %122 {strides = array<i32>} : memref<8x8x128xbf16, #tpu.memory_space<vmem>>, vector<1x8x128xbf16>,
    %c4_104 = arith.constant 4 : index
    %c0_105 = arith.constant 0 : index
    %c0_106 = arith.constant 0 : index
    %123 = vector.load %arg1[%c4_104, %c0_105, %c0_106] : memref<8x8x128xbf16, #tpu.memory_space<vmem>>, vector<1x8x128xbf16>
    %124 = vector.shape_cast %123 : vector<1x8x128xbf16> to vector<8x128xbf16>
    %125 = arith.extf %124 : vector<8x128xbf16> to vector<8x128xf32>
    %c0_107 = arith.constant 0 : index
    %c0_108 = arith.constant 0 : index
    %126 = vector.load %arg7[%c0_107, %c0_108] : memref<8x128xf32, #tpu.memory_space<vmem>>, vector<8x128xf32>
    %127 = arith.truncf %126 : vector<8x128xf32> to vector<8x128xbf16>
    %c0_109 = arith.constant 0 : index
    %c0_110 = arith.constant 0 : index
    %128 = vector.load %arg3[%c0_109, %c0_110] : memref<128x128xbf16, #tpu.memory_space<vmem>>, vector<128x128xbf16>
    %cst_111 = arith.constant dense<0.000000e+00> : vector<8x128xf32>
    %129 = tpu.matmul %127, %128, %cst_111 {dimension_numbers = #tpu.dot_dimension_numbers<[1], [0], [0], [1], [0, 0, 1, 1], [], []>} : vector<8x128xbf16>, vector<128x128xbf16>, vector<8x128xf32> -> vector<8x128xf32>
    %130 = arith.addf %125, %129 : vector<8x128xf32>
    %cst_112 = arith.constant 0.000000e+00 : f32
    %131 = vector.broadcast %cst_112 : f32 to vector<8x128xf32>
    %132 = arith.maximumf %130, %131 : vector<8x128xf32>
    %c3_113 = arith.constant 3 : index
    %c0_114 = arith.constant 0 : index
    %c0_115 = arith.constant 0 : index
    %133 = vector.load %arg2[%c3_113, %c0_114, %c0_115] : memref<8x8x128xbf16, #tpu.memory_space<vmem>>, vector<1x8x128xbf16>
    %134 = vector.shape_cast %133 : vector<1x8x128xbf16> to vector<8x128xbf16>
    %135 = arith.extf %134 : vector<8x128xbf16> to vector<8x128xf32>
    %c0_116 = arith.constant 0 : index
    %c0_117 = arith.constant 0 : index
    %136 = vector.load %arg8[%c0_116, %c0_117] : memref<8x128xf32, #tpu.memory_space<vmem>>, vector<8x128xf32>
    %137 = arith.truncf %136 : vector<8x128xf32> to vector<8x128xbf16>
    %c0_118 = arith.constant 0 : index
    %c0_119 = arith.constant 0 : index
    %138 = vector.load %arg4[%c0_118, %c0_119] : memref<128x128xbf16, #tpu.memory_space<vmem>>, vector<128x128xbf16>
    %cst_120 = arith.constant dense<0.000000e+00> : vector<8x128xf32>
    %139 = tpu.matmul %137, %138, %cst_120 {dimension_numbers = #tpu.dot_dimension_numbers<[1], [0], [0], [1], [0, 0, 1, 1], [], []>} : vector<8x128xbf16>, vector<128x128xbf16>, vector<8x128xf32> -> vector<8x128xf32>
    %140 = arith.addf %135, %139 : vector<8x128xf32>
    %cst_121 = arith.constant 0.000000e+00 : f32
    %141 = vector.broadcast %cst_121 : f32 to vector<8x128xf32>
    %142 = arith.maximumf %140, %141 : vector<8x128xf32>
    %c0_122 = arith.constant 0 : index
    %c0_123 = arith.constant 0 : index
    %143 = vector.load %arg7[%c0_122, %c0_123] : memref<8x128xf32, #tpu.memory_space<vmem>>, vector<8x128xf32>
    tpu.vector_store %arg7[%c0_122, %c0_123], %132 {strides = array<i32>} : memref<8x128xf32, #tpu.memory_space<vmem>>, vector<8x128xf32>,
    %c0_124 = arith.constant 0 : index
    %c0_125 = arith.constant 0 : index
    %144 = vector.load %arg8[%c0_124, %c0_125] : memref<8x128xf32, #tpu.memory_space<vmem>>, vector<8x128xf32>
    tpu.vector_store %arg8[%c0_124, %c0_125], %142 {strides = array<i32>} : memref<8x128xf32, #tpu.memory_space<vmem>>, vector<8x128xf32>,
    %145 = arith.truncf %132 : vector<8x128xf32> to vector<8x128xbf16>
    %c4_126 = arith.constant 4 : index
    %c0_127 = arith.constant 0 : index
    %c0_128 = arith.constant 0 : index
    %146 = vector.load %arg5[%c4_126, %c0_127, %c0_128] : memref<8x8x128xbf16, #tpu.memory_space<vmem>>, vector<1x8x128xbf16>
    %147 = vector.shape_cast %146 : vector<1x8x128xbf16> to vector<8x128xbf16>
    %148 = vector.shape_cast %145 : vector<8x128xbf16> to vector<1x8x128xbf16>
    tpu.vector_store %arg5[%c4_126, %c0_127, %c0_128], %148 {strides = array<i32>} : memref<8x8x128xbf16, #tpu.memory_space<vmem>>, vector<1x8x128xbf16>,
    %149 = arith.truncf %142 : vector<8x128xf32> to vector<8x128xbf16>
    %c3_129 = arith.constant 3 : index
    %c0_130 = arith.constant 0 : index
    %c0_131 = arith.constant 0 : index
    %150 = vector.load %arg6[%c3_129, %c0_130, %c0_131] : memref<8x8x128xbf16, #tpu.memory_space<vmem>>, vector<1x8x128xbf16>
    %151 = vector.shape_cast %150 : vector<1x8x128xbf16> to vector<8x128xbf16>
    %152 = vector.shape_cast %149 : vector<8x128xbf16> to vector<1x8x128xbf16>
    tpu.vector_store %arg6[%c3_129, %c0_130, %c0_131], %152 {strides = array<i32>} : memref<8x8x128xbf16, #tpu.memory_space<vmem>>, vector<1x8x128xbf16>,
    %c5_132 = arith.constant 5 : index
    %c0_133 = arith.constant 0 : index
    %c0_134 = arith.constant 0 : index
    %153 = vector.load %arg1[%c5_132, %c0_133, %c0_134] : memref<8x8x128xbf16, #tpu.memory_space<vmem>>, vector<1x8x128xbf16>
    %154 = vector.shape_cast %153 : vector<1x8x128xbf16> to vector<8x128xbf16>
    %155 = arith.extf %154 : vector<8x128xbf16> to vector<8x128xf32>
    %c0_135 = arith.constant 0 : index
    %c0_136 = arith.constant 0 : index
    %156 = vector.load %arg7[%c0_135, %c0_136] : memref<8x128xf32, #tpu.memory_space<vmem>>, vector<8x128xf32>
    %157 = arith.truncf %156 : vector<8x128xf32> to vector<8x128xbf16>
    %c0_137 = arith.constant 0 : index
    %c0_138 = arith.constant 0 : index
    %158 = vector.load %arg3[%c0_137, %c0_138] : memref<128x128xbf16, #tpu.memory_space<vmem>>, vector<128x128xbf16>
    %cst_139 = arith.constant dense<0.000000e+00> : vector<8x128xf32>
    %159 = tpu.matmul %157, %158, %cst_139 {dimension_numbers = #tpu.dot_dimension_numbers<[1], [0], [0], [1], [0, 0, 1, 1], [], []>} : vector<8x128xbf16>, vector<128x128xbf16>, vector<8x128xf32> -> vector<8x128xf32>
    %160 = arith.addf %155, %159 : vector<8x128xf32>
    %cst_140 = arith.constant 0.000000e+00 : f32
    %161 = vector.broadcast %cst_140 : f32 to vector<8x128xf32>
    %162 = arith.maximumf %160, %161 : vector<8x128xf32>
    %c2_141 = arith.constant 2 : index
    %c0_142 = arith.constant 0 : index
    %c0_143 = arith.constant 0 : index
    %163 = vector.load %arg2[%c2_141, %c0_142, %c0_143] : memref<8x8x128xbf16, #tpu.memory_space<vmem>>, vector<1x8x128xbf16>
    %164 = vector.shape_cast %163 : vector<1x8x128xbf16> to vector<8x128xbf16>
    %165 = arith.extf %164 : vector<8x128xbf16> to vector<8x128xf32>
    %c0_144 = arith.constant 0 : index
    %c0_145 = arith.constant 0 : index
    %166 = vector.load %arg8[%c0_144, %c0_145] : memref<8x128xf32, #tpu.memory_space<vmem>>, vector<8x128xf32>
    %167 = arith.truncf %166 : vector<8x128xf32> to vector<8x128xbf16>
    %c0_146 = arith.constant 0 : index
    %c0_147 = arith.constant 0 : index
    %168 = vector.load %arg4[%c0_146, %c0_147] : memref<128x128xbf16, #tpu.memory_space<vmem>>, vector<128x128xbf16>
    %cst_148 = arith.constant dense<0.000000e+00> : vector<8x128xf32>
    %169 = tpu.matmul %167, %168, %cst_148 {dimension_numbers = #tpu.dot_dimension_numbers<[1], [0], [0], [1], [0, 0, 1, 1], [], []>} : vector<8x128xbf16>, vector<128x128xbf16>, vector<8x128xf32> -> vector<8x128xf32>
    %170 = arith.addf %165, %169 : vector<8x128xf32>
    %cst_149 = arith.constant 0.000000e+00 : f32
    %171 = vector.broadcast %cst_149 : f32 to vector<8x128xf32>
    %172 = arith.maximumf %170, %171 : vector<8x128xf32>
    %c0_150 = arith.constant 0 : index
    %c0_151 = arith.constant 0 : index
    %173 = vector.load %arg7[%c0_150, %c0_151] : memref<8x128xf32, #tpu.memory_space<vmem>>, vector<8x128xf32>
    tpu.vector_store %arg7[%c0_150, %c0_151], %162 {strides = array<i32>} : memref<8x128xf32, #tpu.memory_space<vmem>>, vector<8x128xf32>,
    %c0_152 = arith.constant 0 : index
    %c0_153 = arith.constant 0 : index
    %174 = vector.load %arg8[%c0_152, %c0_153] : memref<8x128xf32, #tpu.memory_space<vmem>>, vector<8x128xf32>
    tpu.vector_store %arg8[%c0_152, %c0_153], %172 {strides = array<i32>} : memref<8x128xf32, #tpu.memory_space<vmem>>, vector<8x128xf32>,
    %175 = arith.truncf %162 : vector<8x128xf32> to vector<8x128xbf16>
    %c5_154 = arith.constant 5 : index
    %c0_155 = arith.constant 0 : index
    %c0_156 = arith.constant 0 : index
    %176 = vector.load %arg5[%c5_154, %c0_155, %c0_156] : memref<8x8x128xbf16, #tpu.memory_space<vmem>>, vector<1x8x128xbf16>
    %177 = vector.shape_cast %176 : vector<1x8x128xbf16> to vector<8x128xbf16>
    %178 = vector.shape_cast %175 : vector<8x128xbf16> to vector<1x8x128xbf16>
    tpu.vector_store %arg5[%c5_154, %c0_155, %c0_156], %178 {strides = array<i32>} : memref<8x8x128xbf16, #tpu.memory_space<vmem>>, vector<1x8x128xbf16>,
    %179 = arith.truncf %172 : vector<8x128xf32> to vector<8x128xbf16>
    %c2_157 = arith.constant 2 : index
    %c0_158 = arith.constant 0 : index
    %c0_159 = arith.constant 0 : index
    %180 = vector.load %arg6[%c2_157, %c0_158, %c0_159] : memref<8x8x128xbf16, #tpu.memory_space<vmem>>, vector<1x8x128xbf16>
    %181 = vector.shape_cast %180 : vector<1x8x128xbf16> to vector<8x128xbf16>
    %182 = vector.shape_cast %179 : vector<8x128xbf16> to vector<1x8x128xbf16>
    tpu.vector_store %arg6[%c2_157, %c0_158, %c0_159], %182 {strides = array<i32>} : memref<8x8x128xbf16, #tpu.memory_space<vmem>>, vector<1x8x128xbf16>,
    %c6_160 = arith.constant 6 : index
    %c0_161 = arith.constant 0 : index
    %c0_162 = arith.constant 0 : index
    %183 = vector.load %arg1[%c6_160, %c0_161, %c0_162] : memref<8x8x128xbf16, #tpu.memory_space<vmem>>, vector<1x8x128xbf16>
    %184 = vector.shape_cast %183 : vector<1x8x128xbf16> to vector<8x128xbf16>
    %185 = arith.extf %184 : vector<8x128xbf16> to vector<8x128xf32>
    %c0_163 = arith.constant 0 : index
    %c0_164 = arith.constant 0 : index
    %186 = vector.load %arg7[%c0_163, %c0_164] : memref<8x128xf32, #tpu.memory_space<vmem>>, vector<8x128xf32>
    %187 = arith.truncf %186 : vector<8x128xf32> to vector<8x128xbf16>
    %c0_165 = arith.constant 0 : index
    %c0_166 = arith.constant 0 : index
    %188 = vector.load %arg3[%c0_165, %c0_166] : memref<128x128xbf16, #tpu.memory_space<vmem>>, vector<128x128xbf16>
    %cst_167 = arith.constant dense<0.000000e+00> : vector<8x128xf32>
    %189 = tpu.matmul %187, %188, %cst_167 {dimension_numbers = #tpu.dot_dimension_numbers<[1], [0], [0], [1], [0, 0, 1, 1], [], []>} : vector<8x128xbf16>, vector<128x128xbf16>, vector<8x128xf32> -> vector<8x128xf32>
    %190 = arith.addf %185, %189 : vector<8x128xf32>
    %cst_168 = arith.constant 0.000000e+00 : f32
    %191 = vector.broadcast %cst_168 : f32 to vector<8x128xf32>
    %192 = arith.maximumf %190, %191 : vector<8x128xf32>
    %c1_169 = arith.constant 1 : index
    %c0_170 = arith.constant 0 : index
    %c0_171 = arith.constant 0 : index
    %193 = vector.load %arg2[%c1_169, %c0_170, %c0_171] : memref<8x8x128xbf16, #tpu.memory_space<vmem>>, vector<1x8x128xbf16>
    %194 = vector.shape_cast %193 : vector<1x8x128xbf16> to vector<8x128xbf16>
    %195 = arith.extf %194 : vector<8x128xbf16> to vector<8x128xf32>
    %c0_172 = arith.constant 0 : index
    %c0_173 = arith.constant 0 : index
    %196 = vector.load %arg8[%c0_172, %c0_173] : memref<8x128xf32, #tpu.memory_space<vmem>>, vector<8x128xf32>
    %197 = arith.truncf %196 : vector<8x128xf32> to vector<8x128xbf16>
    %c0_174 = arith.constant 0 : index
    %c0_175 = arith.constant 0 : index
    %198 = vector.load %arg4[%c0_174, %c0_175] : memref<128x128xbf16, #tpu.memory_space<vmem>>, vector<128x128xbf16>
    %cst_176 = arith.constant dense<0.000000e+00> : vector<8x128xf32>
    %199 = tpu.matmul %197, %198, %cst_176 {dimension_numbers = #tpu.dot_dimension_numbers<[1], [0], [0], [1], [0, 0, 1, 1], [], []>} : vector<8x128xbf16>, vector<128x128xbf16>, vector<8x128xf32> -> vector<8x128xf32>
    %200 = arith.addf %195, %199 : vector<8x128xf32>
    %cst_177 = arith.constant 0.000000e+00 : f32
    %201 = vector.broadcast %cst_177 : f32 to vector<8x128xf32>
    %202 = arith.maximumf %200, %201 : vector<8x128xf32>
    %c0_178 = arith.constant 0 : index
    %c0_179 = arith.constant 0 : index
    %203 = vector.load %arg7[%c0_178, %c0_179] : memref<8x128xf32, #tpu.memory_space<vmem>>, vector<8x128xf32>
    tpu.vector_store %arg7[%c0_178, %c0_179], %192 {strides = array<i32>} : memref<8x128xf32, #tpu.memory_space<vmem>>, vector<8x128xf32>,
    %c0_180 = arith.constant 0 : index
    %c0_181 = arith.constant 0 : index
    %204 = vector.load %arg8[%c0_180, %c0_181] : memref<8x128xf32, #tpu.memory_space<vmem>>, vector<8x128xf32>
    tpu.vector_store %arg8[%c0_180, %c0_181], %202 {strides = array<i32>} : memref<8x128xf32, #tpu.memory_space<vmem>>, vector<8x128xf32>,
    %205 = arith.truncf %192 : vector<8x128xf32> to vector<8x128xbf16>
    %c6_182 = arith.constant 6 : index
    %c0_183 = arith.constant 0 : index
    %c0_184 = arith.constant 0 : index
    %206 = vector.load %arg5[%c6_182, %c0_183, %c0_184] : memref<8x8x128xbf16, #tpu.memory_space<vmem>>, vector<1x8x128xbf16>
    %207 = vector.shape_cast %206 : vector<1x8x128xbf16> to vector<8x128xbf16>
    %208 = vector.shape_cast %205 : vector<8x128xbf16> to vector<1x8x128xbf16>
    tpu.vector_store %arg5[%c6_182, %c0_183, %c0_184], %208 {strides = array<i32>} : memref<8x8x128xbf16, #tpu.memory_space<vmem>>, vector<1x8x128xbf16>,
    %209 = arith.truncf %202 : vector<8x128xf32> to vector<8x128xbf16>
    %c1_185 = arith.constant 1 : index
    %c0_186 = arith.constant 0 : index
    %c0_187 = arith.constant 0 : index
    %210 = vector.load %arg6[%c1_185, %c0_186, %c0_187] : memref<8x8x128xbf16, #tpu.memory_space<vmem>>, vector<1x8x128xbf16>
    %211 = vector.shape_cast %210 : vector<1x8x128xbf16> to vector<8x128xbf16>
    %212 = vector.shape_cast %209 : vector<8x128xbf16> to vector<1x8x128xbf16>
    tpu.vector_store %arg6[%c1_185, %c0_186, %c0_187], %212 {strides = array<i32>} : memref<8x8x128xbf16, #tpu.memory_space<vmem>>, vector<1x8x128xbf16>,
    %c7_188 = arith.constant 7 : index
    %c0_189 = arith.constant 0 : index
    %c0_190 = arith.constant 0 : index
    %213 = vector.load %arg1[%c7_188, %c0_189, %c0_190] : memref<8x8x128xbf16, #tpu.memory_space<vmem>>, vector<1x8x128xbf16>
    %214 = vector.shape_cast %213 : vector<1x8x128xbf16> to vector<8x128xbf16>
    %215 = arith.extf %214 : vector<8x128xbf16> to vector<8x128xf32>
    %c0_191 = arith.constant 0 : index
    %c0_192 = arith.constant 0 : index
    %216 = vector.load %arg7[%c0_191, %c0_192] : memref<8x128xf32, #tpu.memory_space<vmem>>, vector<8x128xf32>
    %217 = arith.truncf %216 : vector<8x128xf32> to vector<8x128xbf16>
    %c0_193 = arith.constant 0 : index
    %c0_194 = arith.constant 0 : index
    %218 = vector.load %arg3[%c0_193, %c0_194] : memref<128x128xbf16, #tpu.memory_space<vmem>>, vector<128x128xbf16>
    %cst_195 = arith.constant dense<0.000000e+00> : vector<8x128xf32>
    %219 = tpu.matmul %217, %218, %cst_195 {dimension_numbers = #tpu.dot_dimension_numbers<[1], [0], [0], [1], [0, 0, 1, 1], [], []>} : vector<8x128xbf16>, vector<128x128xbf16>, vector<8x128xf32> -> vector<8x128xf32>
    %220 = arith.addf %215, %219 : vector<8x128xf32>
    %cst_196 = arith.constant 0.000000e+00 : f32
    %221 = vector.broadcast %cst_196 : f32 to vector<8x128xf32>
    %222 = arith.maximumf %220, %221 : vector<8x128xf32>
    %c0_197 = arith.constant 0 : index
    %c0_198 = arith.constant 0 : index
    %c0_199 = arith.constant 0 : index
    %223 = vector.load %arg2[%c0_197, %c0_198, %c0_199] : memref<8x8x128xbf16, #tpu.memory_space<vmem>>, vector<1x8x128xbf16>
    %224 = vector.shape_cast %223 : vector<1x8x128xbf16> to vector<8x128xbf16>
    %225 = arith.extf %224 : vector<8x128xbf16> to vector<8x128xf32>
    %c0_200 = arith.constant 0 : index
    %c0_201 = arith.constant 0 : index
    %226 = vector.load %arg8[%c0_200, %c0_201] : memref<8x128xf32, #tpu.memory_space<vmem>>, vector<8x128xf32>
    %227 = arith.truncf %226 : vector<8x128xf32> to vector<8x128xbf16>
    %c0_202 = arith.constant 0 : index
    %c0_203 = arith.constant 0 : index
    %228 = vector.load %arg4[%c0_202, %c0_203] : memref<128x128xbf16, #tpu.memory_space<vmem>>, vector<128x128xbf16>
    %cst_204 = arith.constant dense<0.000000e+00> : vector<8x128xf32>
    %229 = tpu.matmul %227, %228, %cst_204 {dimension_numbers = #tpu.dot_dimension_numbers<[1], [0], [0], [1], [0, 0, 1, 1], [], []>} : vector<8x128xbf16>, vector<128x128xbf16>, vector<8x128xf32> -> vector<8x128xf32>
    %230 = arith.addf %225, %229 : vector<8x128xf32>
    %cst_205 = arith.constant 0.000000e+00 : f32
    %231 = vector.broadcast %cst_205 : f32 to vector<8x128xf32>
    %232 = arith.maximumf %230, %231 : vector<8x128xf32>
    %c0_206 = arith.constant 0 : index
    %c0_207 = arith.constant 0 : index
    %233 = vector.load %arg7[%c0_206, %c0_207] : memref<8x128xf32, #tpu.memory_space<vmem>>, vector<8x128xf32>
    tpu.vector_store %arg7[%c0_206, %c0_207], %222 {strides = array<i32>} : memref<8x128xf32, #tpu.memory_space<vmem>>, vector<8x128xf32>,
    %c0_208 = arith.constant 0 : index
    %c0_209 = arith.constant 0 : index
    %234 = vector.load %arg8[%c0_208, %c0_209] : memref<8x128xf32, #tpu.memory_space<vmem>>, vector<8x128xf32>
    tpu.vector_store %arg8[%c0_208, %c0_209], %232 {strides = array<i32>} : memref<8x128xf32, #tpu.memory_space<vmem>>, vector<8x128xf32>,
    %235 = arith.truncf %222 : vector<8x128xf32> to vector<8x128xbf16>
    %c7_210 = arith.constant 7 : index
    %c0_211 = arith.constant 0 : index
    %c0_212 = arith.constant 0 : index
    %236 = vector.load %arg5[%c7_210, %c0_211, %c0_212] : memref<8x8x128xbf16, #tpu.memory_space<vmem>>, vector<1x8x128xbf16>
    %237 = vector.shape_cast %236 : vector<1x8x128xbf16> to vector<8x128xbf16>
    %238 = vector.shape_cast %235 : vector<8x128xbf16> to vector<1x8x128xbf16>
    tpu.vector_store %arg5[%c7_210, %c0_211, %c0_212], %238 {strides = array<i32>} : memref<8x8x128xbf16, #tpu.memory_space<vmem>>, vector<1x8x128xbf16>,
    %239 = arith.truncf %232 : vector<8x128xf32> to vector<8x128xbf16>
    %c0_213 = arith.constant 0 : index
    %c0_214 = arith.constant 0 : index
    %c0_215 = arith.constant 0 : index
    %240 = vector.load %arg6[%c0_213, %c0_214, %c0_215] : memref<8x8x128xbf16, #tpu.memory_space<vmem>>, vector<1x8x128xbf16>
    %241 = vector.shape_cast %240 : vector<1x8x128xbf16> to vector<8x128xbf16>
    %242 = vector.shape_cast %239 : vector<8x128xbf16> to vector<1x8x128xbf16>
    tpu.vector_store %arg6[%c0_213, %c0_214, %c0_215], %242 {strides = array<i32>} : memref<8x8x128xbf16, #tpu.memory_space<vmem>>, vector<1x8x128xbf16>,
    return
  }
  func.func @transform_0(%arg0: i32) -> (i32, i32, i32) {
    %c0_i32 = arith.constant 0 : i32
    %c0_i32_0 = arith.constant 0 : i32
    %c0_i32_1 = arith.constant 0 : i32
    return %arg0, %c0_i32, %c0_i32_0 : i32, i32, i32
  }
  func.func @transform_1(%arg0: i32) -> (i32, i32, i32) {
    %c0_i32 = arith.constant 0 : i32
    %0 = arith.subi %c0_i32, %arg0 : i32
    %c0_i32_0 = arith.constant 0 : i32
    %c0_i32_1 = arith.constant 0 : i32
    %c0_i32_2 = arith.constant 0 : i32
    return %0, %c0_i32_0, %c0_i32_1 : i32, i32, i32
  }
  func.func @transform_2(%arg0: i32) -> (i32, i32) {
    %c0_i32 = arith.constant 0 : i32
    %c0_i32_0 = arith.constant 0 : i32
    %c0_i32_1 = arith.constant 0 : i32
    return %c0_i32, %c0_i32_0 : i32, i32
  }
  func.func @transform_3(%arg0: i32) -> (i32, i32) {
    %c0_i32 = arith.constant 0 : i32
    %c0_i32_0 = arith.constant 0 : i32
    %c0_i32_1 = arith.constant 0 : i32
    return %c0_i32, %c0_i32_0 : i32, i32
  }
  func.func @transform_4(%arg0: i32) -> (i32, i32, i32) {
    %c0_i32 = arith.constant 0 : i32
    %c0_i32_0 = arith.constant 0 : i32
    %c0_i32_1 = arith.constant 0 : i32
    return %arg0, %c0_i32, %c0_i32_0 : i32, i32, i32
  }
  func.func @transform_5(%arg0: i32) -> (i32, i32, i32) {
    %c0_i32 = arith.constant 0 : i32
    %0 = arith.subi %c0_i32, %arg0 : i32
    %c0_i32_0 = arith.constant 0 : i32
    %c0_i32_1 = arith.constant 0 : i32
    %c0_i32_2 = arith.constant 0 : i32
    return %0, %c0_i32_0, %c0_i32_1 : i32, i32, i32
  }
}

module attributes {stable_mosaic.version = 11 : i64} {
  func.func @_fc4_out_logsoftmax_kernel(%arg0: i32, %arg1: memref<64x128xbf16, #tpu.memory_space<vmem>>, %arg2: memref<64x128xbf16, #tpu.memory_space<vmem>>, %arg3: memref<128x128xbf16, #tpu.memory_space<vmem>>, %arg4: memref<1x128xf32, #tpu.memory_space<vmem>>, %arg5: memref<128x128xbf16, #tpu.memory_space<vmem>>, %arg6: memref<1x128xf32, #tpu.memory_space<vmem>>, %arg7: memref<64x128xf32, #tpu.memory_space<vmem>>) attributes {dimension_semantics = [#tpu.dimension_semantics<parallel>], iteration_bounds = array<i64: 1>, scalar_prefetch = 0 : i64, scratch_operands = 0 : i64, tpu.core_type = #tpu.core_type<tc>, window_params = [{transform_indices = @transform_0, window_bounds = array<i64: 64, 128>}, {transform_indices = @transform_1, window_bounds = array<i64: 64, 128>}, {pipeline_mode = #tpu.pipeline_mode<synchronous>, transform_indices = @transform_2, window_bounds = array<i64: 128, 128>}, {pipeline_mode = #tpu.pipeline_mode<synchronous>, transform_indices = @transform_3, window_bounds = array<i64: 1, 128>}, {pipeline_mode = #tpu.pipeline_mode<synchronous>, transform_indices = @transform_4, window_bounds = array<i64: 128, 128>}, {pipeline_mode = #tpu.pipeline_mode<synchronous>, transform_indices = @transform_5, window_bounds = array<i64: 1, 128>}, {transform_indices = @transform_6, window_bounds = array<i64: 64, 128>}]} {
    %c0 = arith.constant 0 : index
    %c0_0 = arith.constant 0 : index
    %0 = vector.load %arg1[%c0, %c0_0] : memref<64x128xbf16, #tpu.memory_space<vmem>>, vector<64x128xbf16>
    %1 = arith.extf %0 : vector<64x128xbf16> to vector<64x128xf32>
    %c0_1 = arith.constant 0 : index
    %c0_2 = arith.constant 0 : index
    %2 = vector.load %arg2[%c0_1, %c0_2] : memref<64x128xbf16, #tpu.memory_space<vmem>>, vector<64x128xbf16>
    %3 = arith.extf %2 : vector<64x128xbf16> to vector<64x128xf32>
    %4 = arith.addf %1, %3 : vector<64x128xf32>
    %5 = arith.truncf %4 : vector<64x128xf32> to vector<64x128xbf16>
    %c0_3 = arith.constant 0 : index
    %c0_4 = arith.constant 0 : index
    %6 = vector.load %arg3[%c0_3, %c0_4] : memref<128x128xbf16, #tpu.memory_space<vmem>>, vector<128x128xbf16>
    %cst = arith.constant dense<0.000000e+00> : vector<64x128xf32>
    %7 = tpu.matmul %5, %6, %cst {dimension_numbers = #tpu.dot_dimension_numbers<[1], [0], [0], [1], [0, 0, 1, 1], [], []>} : vector<64x128xbf16>, vector<128x128xbf16>, vector<64x128xf32> -> vector<64x128xf32>
    %c0_5 = arith.constant 0 : index
    %c0_6 = arith.constant 0 : index
    %8 = vector.load %arg4[%c0_5, %c0_6] : memref<1x128xf32, #tpu.memory_space<vmem>>, vector<1x128xf32>
    %9 = vector.broadcast %8 : vector<1x128xf32> to vector<64x128xf32>
    %10 = arith.addf %7, %9 : vector<64x128xf32>
    %cst_7 = arith.constant 0.000000e+00 : f32
    %11 = vector.broadcast %cst_7 : f32 to vector<64x128xf32>
    %12 = arith.maximumf %10, %11 : vector<64x128xf32>
    %cst_8 = arith.constant 2.000000e+01 : f32
    %13 = vector.broadcast %cst_8 : f32 to vector<64x128xf32>
    %14 = arith.minimumf %12, %13 : vector<64x128xf32>
    %15 = arith.truncf %14 : vector<64x128xf32> to vector<64x128xbf16>
    %c0_9 = arith.constant 0 : index
    %c0_10 = arith.constant 0 : index
    %16 = vector.load %arg5[%c0_9, %c0_10] : memref<128x128xbf16, #tpu.memory_space<vmem>>, vector<128x128xbf16>
    %cst_11 = arith.constant dense<0.000000e+00> : vector<64x128xf32>
    %17 = tpu.matmul %15, %16, %cst_11 {dimension_numbers = #tpu.dot_dimension_numbers<[1], [0], [0], [1], [0, 0, 1, 1], [], []>} : vector<64x128xbf16>, vector<128x128xbf16>, vector<64x128xf32> -> vector<64x128xf32>
    %c0_12 = arith.constant 0 : index
    %c0_13 = arith.constant 0 : index
    %18 = vector.load %arg6[%c0_12, %c0_13] : memref<1x128xf32, #tpu.memory_space<vmem>>, vector<1x128xf32>
    %19 = vector.broadcast %18 : vector<1x128xf32> to vector<64x128xf32>
    %20 = arith.addf %17, %19 : vector<64x128xf32>
    %21 = tpu.iota {dimensions = array<i32: 1>} : vector<64x128xi32>
    %c40_i32 = arith.constant 40 : i32
    %22 = vector.broadcast %c40_i32 : i32 to vector<64x128xi32>
    %23 = arith.cmpi slt, %21, %22 : vector<64x128xi32>
    %cst_14 = arith.constant -1.000000e+30 : f32
    %24 = vector.broadcast %cst_14 : f32 to vector<64x128xf32>
    %25 = arith.select %23, %20, %24 : vector<64x128xi1>, vector<64x128xf32>
    %cst_15 = arith.constant dense<0xFF800000> : vector<64xf32>
    %26 = vector.multi_reduction <maximumf>, %25, %cst_15 [1] : vector<64x128xf32> to vector<64xf32>
    %27 = vector.shape_cast %26 : vector<64xf32> to vector<64x1xf32>
    %28 = vector.broadcast %27 : vector<64x1xf32> to vector<64x128xf32>
    %29 = arith.subf %25, %28 : vector<64x128xf32>
    %30 = math.exp %29 : vector<64x128xf32>
    %cst_16 = arith.constant dense<0.000000e+00> : vector<64xf32>
    %31 = vector.multi_reduction <add>, %30, %cst_16 [1] : vector<64x128xf32> to vector<64xf32>
    %32 = vector.shape_cast %31 : vector<64xf32> to vector<64x1xf32>
    %33 = math.log %32 : vector<64x1xf32>
    %34 = vector.broadcast %33 : vector<64x1xf32> to vector<64x128xf32>
    %35 = arith.subf %29, %34 : vector<64x128xf32>
    %c0_17 = arith.constant 0 : index
    %c0_18 = arith.constant 0 : index
    %36 = vector.load %arg7[%c0_17, %c0_18] : memref<64x128xf32, #tpu.memory_space<vmem>>, vector<64x128xf32>
    tpu.vector_store %arg7[%c0_17, %c0_18], %35 {strides = array<i32>} : memref<64x128xf32, #tpu.memory_space<vmem>>, vector<64x128xf32>,
    return
  }
  func.func @transform_0(%arg0: i32) -> (i32, i32) {
    %c0_i32 = arith.constant 0 : i32
    %c0_i32_0 = arith.constant 0 : i32
    return %arg0, %c0_i32 : i32, i32
  }
  func.func @transform_1(%arg0: i32) -> (i32, i32) {
    %c0_i32 = arith.constant 0 : i32
    %c0_i32_0 = arith.constant 0 : i32
    return %arg0, %c0_i32 : i32, i32
  }
  func.func @transform_2(%arg0: i32) -> (i32, i32) {
    %c0_i32 = arith.constant 0 : i32
    %c0_i32_0 = arith.constant 0 : i32
    %c0_i32_1 = arith.constant 0 : i32
    return %c0_i32, %c0_i32_0 : i32, i32
  }
  func.func @transform_3(%arg0: i32) -> (i32, i32) {
    %c0_i32 = arith.constant 0 : i32
    %c0_i32_0 = arith.constant 0 : i32
    %c0_i32_1 = arith.constant 0 : i32
    return %c0_i32, %c0_i32_0 : i32, i32
  }
  func.func @transform_4(%arg0: i32) -> (i32, i32) {
    %c0_i32 = arith.constant 0 : i32
    %c0_i32_0 = arith.constant 0 : i32
    %c0_i32_1 = arith.constant 0 : i32
    return %c0_i32, %c0_i32_0 : i32, i32
  }
  func.func @transform_5(%arg0: i32) -> (i32, i32) {
    %c0_i32 = arith.constant 0 : i32
    %c0_i32_0 = arith.constant 0 : i32
    %c0_i32_1 = arith.constant 0 : i32
    return %c0_i32, %c0_i32_0 : i32, i32
  }
  func.func @transform_6(%arg0: i32) -> (i32, i32) {
    %c0_i32 = arith.constant 0 : i32
    %c0_i32_0 = arith.constant 0 : i32
    return %arg0, %c0_i32 : i32, i32
  }
}

</mosaic_0001>

<bundles_post_ra>
// kernel: deepspeech_forward.5
= control target key start
LH: loop header
LB: loop body
LE: loop exit
PB: predicated region body
PF: predicated region fallthrough
CT: control target
= control target key end

     0   :  { %s816_s2 = inlined_call_operand.vmem [shape: bf16[128,128], index: 2, kind: input, shape index: {}]   ;;  %s817_s0 = inlined_call_operand.vmem [shape: bf16[64,128], index: 0, kind: input, shape index: {}]   ;;  %s818_s1 = inlined_call_operand.vmem [shape: bf16[64,128], index: 1, kind: input, shape index: {}]   ;;  %s819_s4 = inlined_call_operand.vmem [shape: bf16[128,128], index: 4, kind: input, shape index: {}]   ;;  %s820_s3 = inlined_call_operand.vmem [shape: f32[1,128], index: 3, kind: input, shape index: {}]   ;;  %s821_s5 = inlined_call_operand.vmem [shape: f32[1,128], index: 5, kind: input, shape index: {}]   ;;  %s822_s6 = inlined_call_operand.vmem [shape: f32[64,128], index: 6, kind: output, shape index: {}]  }
   0x1   :  { %v591_v0 = vld [vmem:[%s816_s2 + $0x38] sm:$0xff]   ;;  %v592_v1 = vld [vmem:[%s816_s2 + $0x30] sm:$0xff]   ;;  %v593_v2 = vld [vmem:[%s816_s2 + $0x28] sm:$0xff]  }
   0x2   :  { %543 = vmatprep.subr.bf16.mxu0 %v591_v0  ;;  %v594_v3 = vld [vmem:[%s816_s2 + $0x20] sm:$0xff]   ;;  %v595_v10 = vld [vmem:[%s816_s2 + $0x18] sm:$0xff]   ;;  %v600_v14 = vld [vmem:[%s819_s4 + $0x30] sm:$0xff]  }
   0x3   :  { %544 = vmatpush3.bf16.msra.mxu0 %v591_v0  ;;  %v482_v4 = vld [vmem:[%s817_s0] sm:$0xff]   ;;  %v599_v13 = vld [vmem:[%s819_s4 + $0x38] sm:$0xff]   ;;  %v596_v16 = vld [vmem:[%s816_s2 + $0x10] sm:$0xff]  }
   0x4   :  { %545 = vmatprep.subr.bf16.mxu0 %v592_v1  ;;  %v498_v5 = vld [vmem:[%s818_s1] sm:$0xff]   ;;  %v483_v6 = vunpack.c.l.bf16 %v482_v4  ;;  %v484_v7 = vunpack.c.h.bf16 %v482_v4  ;;  %567 = vmatprep.subr.bf16.mxu1 %v599_v13  ;;  %v601_v17 = vld [vmem:[%s819_s4 + $0x28] sm:$0xff]   ;;  %v514_v22 = vld [vmem:[%s817_s0 + $0x10] sm:$0xff]  }
   0x5   :  { %v499_v8 = vunpack.c.l.bf16 %v498_v5  ;;  %v500_v9 = vunpack.c.h.bf16 %v498_v5  ;;  %568 = vmatpush3.bf16.msra.mxu1 %v599_v13  ;;  %v513_v18 = vld [vmem:[%s817_s0 + $0x8] sm:$0xff]   ;;  %v602_v20 = vld [vmem:[%s819_s4 + $0x20] sm:$0xff]   ;;  %v517_v23 = vld [vmem:[%s818_s1 + $0x10] sm:$0xff]   ;;  %v491_v28 = vunpack.c.l.bf16 %v514_v22  ;;  %v492_v29 = vunpack.c.h.bf16 %v514_v22 }
   0x6   :  { %569 = vmatprep.subr.bf16.mxu1 %v600_v14  ;;  %v516_v19 = vld [vmem:[%s818_s1 + $0x8] sm:$0xff]   ;;  %v487_v24 = vunpack.c.l.bf16 %v513_v18  ;;  %v488_v25 = vunpack.c.h.bf16 %v513_v18  ;;  %v507_v30 = vunpack.c.l.bf16 %v517_v23  ;;  %v508_v31 = vunpack.c.h.bf16 %v517_v23  ;;  %v598_v32 = vld [vmem:[%s816_s2] sm:$0xff]   ;;  %v515_v35 = vld [vmem:[%s817_s0 + $0x18] sm:$0xff]  }
   0x7   :  { %546 = vmatpush3.bf16.msra.mxu0 %v592_v1  ;;  %v56_v11 = vadd.f32 %v499_v8, %v483_v6  ;;  %v57_v12 = vadd.f32 %v500_v9, %v484_v7  ;;  %v597_v21 = vld [vmem:[%s816_s2 + $0x8] sm:$0xff]   ;;  %v503_v26 = vunpack.c.l.bf16 %v516_v19  ;;  %v504_v27 = vunpack.c.h.bf16 %v516_v19  ;;  %v518_v38 = vld [vmem:[%s818_s1 + $0x18] sm:$0xff]   ;;  %v604_v49 = vld [vmem:[%s819_s4 + $0x10] sm:$0xff]  }
   0x8   :  { %547 = vmatprep.subr.bf16.mxu0 %v593_v2  ;;  %v60_v36 = vadd.f32 %v507_v30, %v491_v28  ;;  %v61_v37 = vadd.f32 %v508_v31, %v492_v29  ;;  %v495_v39 = vunpack.c.l.bf16 %v515_v35  ;;  %v496_v41 = vunpack.c.h.bf16 %v515_v35  ;;  %v603_v48 = vld [vmem:[%s819_s4 + $0x18] sm:$0xff]   ;;  %v605_v50 = vld [vmem:[%s819_s4 + $0x8] sm:$0xff]   ;;  %v606_v51 = vld [vmem:[%s819_s4] sm:$0xff]  }
   0x9   :  { %v64_v15 = vpack.c.bf16 %v57_v12, %v56_v11  ;;  %570 = vmatpush3.bf16.msra.mxu1 %v600_v14  ;;  %v58_v33 = vadd.f32 %v503_v26, %v487_v24  ;;  %v59_v34 = vadd.f32 %v504_v27, %v488_v25  ;;  %v511_v42 = vunpack.c.l.bf16 %v518_v38  ;;  %v463_v53 = vld [vmem:[%s820_s3] ss:$0 sm:$0xff] }
   0xa   :  { %571 = vmatprep.subr.bf16.mxu1 %v601_v17  ;;  %v512_v43 = vunpack.c.h.bf16 %v518_v38  ;;  %v66_v44 = vpack.c.bf16 %v61_v37, %v60_v36  ;;  %v360_v25 = vlaneseq  ;;  %v472_v27 = vld [vmem:[%s821_s5] ss:$0 sm:$0xff] }
   0xb   :  { %548 = vmatpush3.bf16.msra.mxu0 %v593_v2  ;;  %559 = vmatprep.mubr.bf16.mxu0 %v64_v15  ;;  %v65_v40 = vpack.c.bf16 %v59_v34, %v58_v33  ;;  %v62_v45 = vadd.f32 %v511_v42, %v495_v39 }
   0xc   :  { %549 = vmatprep.subr.bf16.mxu0 %v594_v3  ;;  %v63_v46 = vadd.f32 %v512_v43, %v496_v41  ;;  %v361_v26 = vand.u32 127, %v360_v25 }
   0xd   :  { %572 = vmatpush3.bf16.msra.mxu1 %v601_v17 }
   0xe   :  { %573 = vmatprep.subr.bf16.mxu1 %v602_v20  ;;  %v67_v47 = vpack.c.bf16 %v63_v46, %v62_v45  ;;  %vm362_vm0 = vcmp.lt.s32.totalorder %v361_v26, 40 }
   0xf   :  { %550 = vmatpush3.bf16.msra.mxu0 %v594_v3 }
  0x10   :  { %551 = vmatprep.subr.bf16.mxu0 %v595_v10 }
  0x11   :  { %574 = vmatpush3.bf16.msra.mxu1 %v602_v20 }
  0x12   :  { %575 = vmatprep.subr.bf16.mxu1 %v603_v48 }
  0x13   :  { %552 = vmatpush3.bf16.msra.mxu0 %v595_v10 }
  0x14   :  { %553 = vmatprep.subr.bf16.mxu0 %v596_v16 }
  0x15   :  { %576 = vmatpush3.bf16.msra.mxu1 %v603_v48 }
  0x16   :  { %577 = vmatprep.subr.bf16.mxu1 %v604_v49 }
  0x17   :  { %554 = vmatpush3.bf16.msra.mxu0 %v596_v16 }
  0x18   :  { %555 = vmatprep.subr.bf16.mxu0 %v597_v21 }
  0x19   :  { %578 = vmatpush3.bf16.msra.mxu1 %v604_v49 }
  0x1a   :  { %579 = vmatprep.subr.bf16.mxu1 %v605_v50 }
  0x1b   :  { %556 = vmatpush3.bf16.msra.mxu0 %v597_v21 }
  0x1c   :  { %557 = vmatprep.subr.bf16.mxu0 %v598_v32 }
  0x1d   :  { %580 = vmatpush3.bf16.msra.mxu1 %v605_v50 }
  0x1e   :  { %581 = vmatprep.subr.bf16.mxu1 %v606_v51 }
  0x1f   :  { %558 = vmatpush3.bf16.msra.mxu0 %v598_v32 }
  0x21   :  { %582 = vmatpush3.bf16.msra.mxu1 %v606_v51 }
  0x22   :  { %560 = vmatmul.mubr.bf16.vlgmr.msra.gmra.mxu0 %v65_v40 }
  0x23   :  { %563 = vmatprep.mubr.bf16.mxu0 %v66_v44 }
  0x2a   :  { %564 = vmatmul.mubr.bf16.gmra.mxu0 %v67_v47 }
  0xe2   :  { %v561_v52 = vpop.f32.mrf.mxu0 }
  0xe3   :  { %v182_v56 = vadd.f32 %v561_v52, %v463_v53 }
  0xe4   :  { %v173_v54 = vpop.f32.mrf.mxu0 }
  0xe5   :  { %v174_v55 = vadd.f32 %v463_v53, %v173_v54  ;;  %v206_v63 = vmax.f32 %v182_v56, 0.0 }
  0xe6   :  { %v562_v57 = vpop.f32.mrf.mxu0 }
  0xe7   :  { %v185_v58 = vadd.f32 %v562_v57, %v463_v53  ;;  %v204_v60 = vmax.f32 %v174_v55, 0.0  ;;  %v214_v7 = vmin.f32 %v206_v63, 20.0 }
  0xe8   :  { %v176_v59 = vpop.f32.mrf.mxu0 }
  0xe9   :  { %v207_v61 = vmax.f32 %v185_v58, 0.0  ;;  %v177_v62 = vadd.f32 %v463_v53, %v176_v59  ;;  %v212_v4 = vmin.f32 %v204_v60, 20.0 }
  0xea   :  { %v565_v0 = vpop.f32.mrf.mxu0 }
  0xeb   :  { %v205_v1 = vmax.f32 %v177_v62, 0.0  ;;  %v215_v2 = vmin.f32 %v207_v61, 20.0  ;;  %v198_v8 = vadd.f32 %v565_v0, %v463_v53 }
  0xec   :  { %v189_v3 = vpop.f32.mrf.mxu0 }
  0xed   :  { %v213_v5 = vmin.f32 %v205_v1, 20.0  ;;  %v190_v6 = vadd.f32 %v463_v53, %v189_v3  ;;  %v221_v12 = vpack.c.bf16 %v215_v2, %v214_v7  ;;  %v210_v17 = vmax.f32 %v198_v8, 0.0 }
  0xee   :  { %v566_v9 = vpop.f32.mrf.mxu0 }
  0xef   :  { %v201_v10 = vadd.f32 %v566_v9, %v463_v53  ;;  %v220_v11 = vpack.c.bf16 %v213_v5, %v212_v4  ;;  %v208_v14 = vmax.f32 %v190_v6, 0.0  ;;  %v218_v22 = vmin.f32 %v210_v17, 20.0 }
  0xf0   :  { %v192_v13 = vpop.f32.mrf.mxu0 }
  0xf1   :  { %v211_v15 = vmax.f32 %v201_v10, 0.0  ;;  %v193_v16 = vadd.f32 %v463_v53, %v192_v13  ;;  %583 = vmatprep.mubr.bf16.mxu1 %v220_v11  ;;  %v216_v20 = vmin.f32 %v208_v14, 20.0 }
  0xf2   :  { %584 = vmatmul.mubr.bf16.vlgmr.msra.gmra.mxu1 %v221_v12 }
  0xf3   :  { %v209_v18 = vmax.f32 %v193_v16, 0.0  ;;  %v219_v19 = vmin.f32 %v211_v15, 20.0 }
  0xf5   :  { %v217_v21 = vmin.f32 %v209_v18, 20.0  ;;  %v223_v24 = vpack.c.bf16 %v219_v19, %v218_v22 }
  0xf7   :  { %v222_v23 = vpack.c.bf16 %v217_v21, %v216_v20 }
  0xf9   :  { %587 = vmatprep.mubr.bf16.mxu1 %v222_v23 }
  0xfa   :  { %588 = vmatmul.mubr.bf16.gmra.mxu1 %v223_v24 }
 0x1b2   :  { %v585_v28 = vpop.f32.mrf.mxu1 }
 0x1b3   :  { %v338_v29 = vadd.f32 %v585_v28, %v472_v27 }
 0x1b4   :  { %v329_v30 = vpop.f32.mrf.mxu1 }
 0x1b5   :  { %v330_v31 = vadd.f32 %v472_v27, %v329_v30  ;;  %v365_v32 = vsel %vm362_vm0, %v338_v29, -1e+30 }
 0x1b6   :  { %375 = vmax.xlane.f32.xlu1 %v365_v32  ;;  %v586_v33 = vpop.f32.mrf.mxu1 }
 0x1b7   :  { %v341_v34 = vadd.f32 %v586_v33, %v472_v27  ;;  %v363_v35 = vsel %vm362_vm0, %v330_v31, -1e+30 }
 0x1b8   :  { %v332_v36 = vpop.f32.mrf.mxu1  ;;  %371 = vmax.xlane.f32.xlu0 %v363_v35 }
 0x1b9   :  { %v333_v37 = vadd.f32 %v472_v27, %v332_v36  ;;  %v366_v38 = vsel %vm362_vm0, %v341_v34, -1e+30 }
 0x1ba   :  { %377 = vmax.xlane.f32.xlu1 %v366_v38  ;;  %v589_v39 = vpop.f32.mrf.mxu1 }
 0x1bb   :  { %v364_v40 = vsel %vm362_vm0, %v333_v37, -1e+30  ;;  %v354_v44 = vadd.f32 %v589_v39, %v472_v27 }
 0x1bc   :  { %v345_v41 = vpop.f32.mrf.mxu1  ;;  %373 = vmax.xlane.f32.xlu0 %v364_v40 }
 0x1bd   :  { %v346_v42 = vadd.f32 %v472_v27, %v345_v41  ;;  %v369_v50 = vsel %vm362_vm0, %v354_v44, -1e+30 }
 0x1be   :  { %v590_v43 = vpop.f32.mrf.mxu1 }
 0x1bf   :  { %v367_v45 = vsel %vm362_vm0, %v346_v42, -1e+30  ;;  %v357_v48 = vadd.f32 %v590_v43, %v472_v27 }
 0x1c0   :  { %v348_v46 = vpop.f32.mrf.mxu1  ;;  %379 = vmax.xlane.f32.xlu0 %v367_v45 }
 0x1c1   :  { %v349_v47 = vadd.f32 %v472_v27, %v348_v46  ;;  %v370_v51 = vsel %vm362_vm0, %v357_v48, -1e+30 }
 0x1c3   :  { %v368_v49 = vsel %vm362_vm0, %v349_v47, -1e+30 }
 0x1c4   :  { %381 = vmax.xlane.f32.xlu1 %v368_v49  ;;  %383 = vmax.xlane.f32.xlu0 %v369_v50 }
 0x1c8   :  { %385 = vmax.xlane.f32.xlu1 %v370_v51 }
 0x23f   :  { %v376_v52 = vpop.xlane.xlu1 %375 }
 0x240   :  { %v760_v53 = vsub.f32 %v365_v32, %v376_v52 }
 0x241   :  { %v372_v54 = vpop.xlane.xlu0 %371 }
 0x242   :  { %v399_v55 = vmul.f32 1.442695, %v760_v53  ;;  %v763_v56 = vsub.f32 %v363_v35, %v372_v54 }
 0x243   :  { %v378_v57 = vpop.xlane.xlu1 %377 }
 0x244   :  { %607 = vpow2.f32 %v399_v55  ;;  %v395_v58 = vmul.f32 1.442695, %v763_v56  ;;  %v766_v59 = vsub.f32 %v366_v38, %v378_v57 }
 0x245   :  { %v374_v60 = vpop.xlane.xlu0 %373 }
 0x246   :  { %v401_v61 = vmul.f32 1.442695, %v766_v59  ;;  %v769_v62 = vsub.f32 %v364_v40, %v374_v60  ;;  %609 = vpow2.f32 %v395_v58 }
 0x248   :  { %611 = vpow2.f32 %v401_v61  ;;  %v397_v63 = vmul.f32 1.442695, %v769_v62 }
 0x249   :  { %v380_v0 = vpop.xlane.xlu0 %379 }
 0x24a   :  { %v772_v1 = vsub.f32 %v367_v45, %v380_v0  ;;  %613 = vpow2.f32 %v397_v63 }
 0x24c   :  { %v403_v2 = vmul.f32 1.442695, %v772_v1 }
 0x24d   :  { %v382_v3 = vpop.xlane.xlu1 %381  ;;  %v384_v4 = vpop.xlane.xlu0 %383 }
 0x24e   :  { %615 = vpow2.f32 %v403_v2  ;;  %v775_v5 = vsub.f32 %v368_v49, %v382_v3  ;;  %v777_v6 = vsub.f32 %v369_v50, %v384_v4 }
 0x250   :  { %v405_v7 = vmul.f32 1.442695, %v775_v5  ;;  %v407_v8 = vmul.f32 1.442695, %v777_v6 }
 0x251   :  { %v608_v9 = vpop.eup %607  ;;  %v386_v10 = vpop.xlane.xlu1 %385 }
 0x252   :  { %617 = vpow2.f32 %v405_v7  ;;  %v781_v11 = vsub.f32 %v370_v51, %v386_v10  ;;  %415 = vadd.xlane.f32.xlu0 %v608_v9 }
 0x253   :  { %619 = vpow2.f32 %v407_v8  ;;  %v610_v12 = vpop.eup %609 }
 0x254   :  { %v409_v13 = vmul.f32 1.442695, %v781_v11 }
 0x255   :  { %v612_v14 = vpop.eup %611 }
 0x256   :  { %621 = vpow2.f32 %v409_v13  ;;  %417 = vadd.xlane.f32.xlu1 %v612_v14  ;;  %411 = vadd.xlane.f32.xlu0 %v610_v12 }
 0x257   :  { %v614_v15 = vpop.eup %613 }
 0x25a   :  { %413 = vadd.xlane.f32.xlu1 %v614_v15 }
 0x25b   :  { %v616_v16 = vpop.eup %615 }
 0x25c   :  { %419 = vadd.xlane.f32.xlu0 %v616_v16 }
 0x25f   :  { %v618_v17 = vpop.eup %617 }
 0x260   :  { %v620_v18 = vpop.eup %619  ;;  %421 = vadd.xlane.f32.xlu1 %v618_v17 }
 0x261   :  { %423 = vadd.xlane.f32.xlu0 %v620_v18 }
 0x263   :  { %v622_v19 = vpop.eup %621 }
 0x264   :  { %425 = vadd.xlane.f32.xlu1 %v622_v19 }
 0x2db   :  { %v416_v20 = vpop.xlane.xlu0 %415 }
 0x2dc   :  { %623 = vlog2.f32 %v416_v20 }
 0x2df   :  { %v418_v21 = vpop.xlane.xlu1 %417  ;;  %v412_v22 = vpop.xlane.xlu0 %411 }
 0x2e0   :  { %625 = vlog2.f32 %v418_v21 }
 0x2e1   :  { %627 = vlog2.f32 %v412_v22 }
 0x2e3   :  { %v414_v23 = vpop.xlane.xlu1 %413 }
 0x2e4   :  { %629 = vlog2.f32 %v414_v23 }
 0x2e5   :  { %v420_v24 = vpop.xlane.xlu0 %419 }
 0x2e6   :  { %631 = vlog2.f32 %v420_v24 }
 0x2e9   :  { %v624_v25 = vpop.eup %623  ;;  %v422_v26 = vpop.xlane.xlu1 %421 }
 0x2ea   :  { %v432_v27 = vmul.f32 0.6931472, %v624_v25  ;;  %633 = vlog2.f32 %v422_v26  ;;  %v424_v28 = vpop.xlane.xlu0 %423 }
 0x2eb   :  { %635 = vlog2.f32 %v424_v28 }
 0x2ec   :  { %v445_v29 = vsub.f32 %v760_v53, %v432_v27 }
 0x2ed   :  { %v626_v30 = vpop.eup %625  ;;  %v426_v31 = vpop.xlane.xlu1 %425 }
 0x2ee   :  { %v628_v32 = vpop.eup %627  ;;  %453 = vst [vmem:[%s822_s6 + $0x10] sm:$0xff] %v445_v29  ;;  %v434_v33 = vmul.f32 0.6931472, %v626_v30  ;;  %637 = vlog2.f32 %v426_v31 }
 0x2ef   :  { %v428_v34 = vmul.f32 0.6931472, %v628_v32 }
 0x2f0   :  { %v446_v35 = vsub.f32 %v766_v59, %v434_v33 }
 0x2f1   :  { %v630_v36 = vpop.eup %629  ;;  %v443_v37 = vsub.f32 %v763_v56, %v428_v34 }
 0x2f2   :  { %454 = vst [vmem:[%s822_s6 + $0x18] sm:$0xff] %v446_v35  ;;  %v430_v38 = vmul.f32 0.6931472, %v630_v36 }
 0x2f3   :  { %v632_v39 = vpop.eup %631  ;;  %451 = vst [vmem:[%s822_s6] sm:$0xff] %v443_v37 }
 0x2f4   :  { %v444_v40 = vsub.f32 %v769_v62, %v430_v38  ;;  %v436_v41 = vmul.f32 0.6931472, %v632_v39 }
 0x2f6   :  { %452 = vst [vmem:[%s822_s6 + $0x8] sm:$0xff] %v444_v40  ;;  %v447_v42 = vsub.f32 %v772_v1, %v436_v41 }
 0x2f7   :  { %v634_v43 = vpop.eup %633 }
 0x2f8   :  { %v636_v44 = vpop.eup %635  ;;  %455 = vst [vmem:[%s822_s6 + $0x20] sm:$0xff] %v447_v42  ;;  %v438_v45 = vmul.f32 0.6931472, %v634_v43 }
 0x2f9   :  { %v440_v46 = vmul.f32 0.6931472, %v636_v44 }
 0x2fa   :  { %v448_v47 = vsub.f32 %v775_v5, %v438_v45 }
 0x2fb   :  { %v638_v48 = vpop.eup %637  ;;  %v449_v49 = vsub.f32 %v777_v6, %v440_v46 }
 0x2fc   :  { %456 = vst [vmem:[%s822_s6 + $0x28] sm:$0xff] %v448_v47  ;;  %v442_v50 = vmul.f32 0.6931472, %v638_v48 }
 0x2fd   :  { %457 = vst [vmem:[%s822_s6 + $0x30] sm:$0xff] %v449_v49 }
 0x2fe   :  { %v450_v51 = vsub.f32 %v781_v11, %v442_v50 }
 0x300   :  { %458 = vst [vmem:[%s822_s6 + $0x38] sm:$0xff] %v450_v51 }

// kernel: deepspeech_forward.3
= control target key start
LH: loop header
LB: loop body
LE: loop exit
PB: predicated region body
PF: predicated region fallthrough
CT: control target
= control target key end

     0   :  { %s1552_s1 = inlined_call_operand.vmem [shape: bf16[128,128], index: 1, kind: input, shape index: {}]   ;;  %s1553_s0 = inlined_call_operand.vmem [shape: bf16[64,128], index: 0, kind: input, shape index: {}]   ;;  %s1554_s3 = inlined_call_operand.vmem [shape: bf16[128,128], index: 3, kind: input, shape index: {}]   ;;  %s1555_s5 = inlined_call_operand.vmem [shape: bf16[128,128], index: 5, kind: input, shape index: {}]   ;;  %s1556_s2 = inlined_call_operand.vmem [shape: f32[1,128], index: 2, kind: input, shape index: {}]   ;;  %s1557_s7 = inlined_call_operand.vmem [shape: bf16[128,128], index: 7, kind: input, shape index: {}]   ;;  %s1558_s9 = inlined_call_operand.vmem [shape: bf16[128,128], index: 9, kind: input, shape index: {}]   ;;  %s1559_s4 = inlined_call_operand.vmem [shape: f32[1,128], index: 4, kind: input, shape index: {}]   ;;  %s1560_s6 = inlined_call_operand.vmem [shape: f32[1,128], index: 6, kind: input, shape index: {}]   ;;  %s1561_s8 = inlined_call_operand.vmem [shape: f32[1,128], index: 8, kind: input, shape index: {}]   ;;  %s1562_s10 = inlined_call_operand.vmem [shape: f32[1,128], index: 10, kind: input, shape index: {}]   ;;  %s1563_s11 = inlined_call_operand.vmem [shape: bf16[64,128], index: 11, kind: output, shape index: {0}]   ;;  %s1564_s12 = inlined_call_operand.vmem [shape: bf16[64,128], index: 12, kind: output, shape index: {1}]  }
   0x1   :  { %v1224_v0 = vld [vmem:[%s1552_s1 + $0x38] sm:$0xff]   ;;  %v1225_v1 = vld [vmem:[%s1552_s1 + $0x30] sm:$0xff]   ;;  %v1226_v2 = vld [vmem:[%s1552_s1 + $0x28] sm:$0xff]  }
   0x2   :  { %1088 = vmatprep.subr.bf16.mxu0 %v1224_v0  ;;  %v1227_v3 = vld [vmem:[%s1552_s1 + $0x20] sm:$0xff]   ;;  %v1228_v5 = vld [vmem:[%s1552_s1 + $0x18] sm:$0xff]   ;;  %v1237_v7 = vld [vmem:[%s1554_s3 + $0x30] sm:$0xff]  }
   0x3   :  { %1089 = vmatpush3.bf16.msra.mxu0 %v1224_v0  ;;  %v1232_v4 = vld [vmem:[%s1553_s0] sm:$0xff]   ;;  %v1236_v6 = vld [vmem:[%s1554_s3 + $0x38] sm:$0xff]   ;;  %v1229_v8 = vld [vmem:[%s1552_s1 + $0x10] sm:$0xff]  }
   0x4   :  { %1090 = vmatprep.subr.bf16.mxu0 %v1225_v1  ;;  %1104 = vmatprep.mubr.bf16.mxu0 %v1232_v4  ;;  %v1238_v9 = vld [vmem:[%s1554_s3 + $0x28] sm:$0xff]   ;;  %v1239_v11 = vld [vmem:[%s1554_s3 + $0x20] sm:$0xff]   ;;  %v1234_v14 = vld [vmem:[%s1553_s0 + $0x10] sm:$0xff]  }
   0x5   :  { %1112 = vmatprep.subr.bf16.mxu1 %v1236_v6  ;;  %v1230_v10 = vld [vmem:[%s1552_s1 + $0x8] sm:$0xff]   ;;  %v1231_v12 = vld [vmem:[%s1552_s1] sm:$0xff]   ;;  %v1235_v15 = vld [vmem:[%s1553_s0 + $0x18] sm:$0xff]  }
   0x6   :  { %1113 = vmatpush3.bf16.msra.mxu1 %v1236_v6  ;;  %v1233_v13 = vld [vmem:[%s1553_s0 + $0x8] sm:$0xff]   ;;  %v1240_v16 = vld [vmem:[%s1554_s3 + $0x18] sm:$0xff]   ;;  %v1241_v17 = vld [vmem:[%s1554_s3 + $0x10] sm:$0xff]  }
   0x7   :  { %1091 = vmatpush3.bf16.msra.mxu0 %v1225_v1  ;;  %1114 = vmatprep.subr.bf16.mxu1 %v1237_v7  ;;  %v1242_v18 = vld [vmem:[%s1554_s3 + $0x8] sm:$0xff]   ;;  %v1243_v19 = vld [vmem:[%s1554_s3] sm:$0xff]   ;;  %v1244_v20 = vld [vmem:[%s1555_s5 + $0x38] sm:$0xff]  }
   0x8   :  { %1092 = vmatprep.subr.bf16.mxu0 %v1226_v2  ;;  %v1245_v21 = vld [vmem:[%s1555_s5 + $0x30] sm:$0xff]   ;;  %v1246_v22 = vld [vmem:[%s1555_s5 + $0x28] sm:$0xff]   ;;  %v1247_v23 = vld [vmem:[%s1555_s5 + $0x20] sm:$0xff]  }
   0x9   :  { %v901_v25 = vld [vmem:[%s1556_s2] ss:$0 sm:$0xff]  ;;  %v1248_v61 = vld [vmem:[%s1555_s5 + $0x18] sm:$0xff]   ;;  %v1249_v62 = vld [vmem:[%s1555_s5 + $0x10] sm:$0xff]  }
   0xa   :  { %1115 = vmatpush3.bf16.msra.mxu1 %v1237_v7  ;;  %v1250_v63 = vld [vmem:[%s1555_s5 + $0x8] sm:$0xff]   ;;  %v1251_v0 = vld [vmem:[%s1555_s5] sm:$0xff]   ;;  %v1252_v1 = vld [vmem:[%s1557_s7 + $0x38] sm:$0xff]  }
   0xb   :  { %1093 = vmatpush3.bf16.msra.mxu0 %v1226_v2  ;;  %1116 = vmatprep.subr.bf16.mxu1 %v1238_v9  ;;  %v1426_v2 = vld [vmem:[%s1558_s9 + $0x38] sm:$0xff]   ;;  %v1256_v4 = vld [vmem:[%s1557_s7 + $0x28] sm:$0xff]  }
   0xc   :  { %1094 = vmatprep.subr.bf16.mxu0 %v1227_v3  ;;  %v1260_v6 = vld [vmem:[%s1557_s7 + $0x18] sm:$0xff]  }
   0xe   :  { %1117 = vmatpush3.bf16.msra.mxu1 %v1238_v9 }
   0xf   :  { %1095 = vmatpush3.bf16.msra.mxu0 %v1227_v3  ;;  %1118 = vmatprep.subr.bf16.mxu1 %v1239_v11  ;;  %v1254_v3 = vld [vmem:[%s1557_s7 + $0x30] sm:$0xff]  }
  0x10   :  { %1096 = vmatprep.subr.bf16.mxu0 %v1228_v5 }
  0x12   :  { %1119 = vmatpush3.bf16.msra.mxu1 %v1239_v11 }
  0x13   :  { %1097 = vmatpush3.bf16.msra.mxu0 %v1228_v5  ;;  %1120 = vmatprep.subr.bf16.mxu1 %v1240_v16  ;;  %v1258_v5 = vld [vmem:[%s1557_s7 + $0x20] sm:$0xff]  }
  0x14   :  { %1098 = vmatprep.subr.bf16.mxu0 %v1229_v8 }
  0x16   :  { %1121 = vmatpush3.bf16.msra.mxu1 %v1240_v16 }
  0x17   :  { %1099 = vmatpush3.bf16.msra.mxu0 %v1229_v8  ;;  %1122 = vmatprep.subr.bf16.mxu1 %v1241_v17  ;;  %v914_v8 = vld [vmem:[%s1559_s4] ss:$0 sm:$0xff] }
  0x18   :  { %1100 = vmatprep.subr.bf16.mxu0 %v1230_v10 }
  0x1a   :  { %1123 = vmatpush3.bf16.msra.mxu1 %v1241_v17 }
  0x1b   :  { %1101 = vmatpush3.bf16.msra.mxu0 %v1230_v10  ;;  %1124 = vmatprep.subr.bf16.mxu1 %v1242_v18 }
  0x1c   :  { %1102 = vmatprep.subr.bf16.mxu0 %v1231_v12 }
  0x1e   :  { %1125 = vmatpush3.bf16.msra.mxu1 %v1242_v18 }
  0x1f   :  { %1103 = vmatpush3.bf16.msra.mxu0 %v1231_v12  ;;  %1126 = vmatprep.subr.bf16.mxu1 %v1243_v19 }
  0x20   :  { %1136 = vmatprep.subr.bf16.mxu0 %v1244_v20 }
  0x22   :  { %1105 = vmatmul.mubr.bf16.vlgmr.msra.gmra.mxu0 %v1233_v13  ;;  %1127 = vmatpush3.bf16.msra.mxu1 %v1243_v19 }
  0x23   :  { %1108 = vmatprep.mubr.bf16.mxu0 %v1234_v14  ;;  %1137 = vmatpush3.bf16.msra.mxu0 %v1244_v20 }
  0x24   :  { %1138 = vmatprep.subr.bf16.mxu0 %v1245_v21  ;;  %1160 = vmatprep.subr.bf16.mxu1 %v1252_v1 }
  0x27   :  { %1139 = vmatpush3.bf16.msra.mxu0 %v1245_v21 }
  0x28   :  { %1140 = vmatprep.subr.bf16.mxu0 %v1246_v22 }
  0x2a   :  { %1109 = vmatmul.mubr.bf16.gmra.mxu0 %v1235_v15 }
  0x2b   :  { %1141 = vmatpush3.bf16.msra.mxu0 %v1246_v22 }
  0x2c   :  { %1142 = vmatprep.subr.bf16.mxu0 %v1247_v23 }
  0x2f   :  { %1143 = vmatpush3.bf16.msra.mxu0 %v1247_v23 }
  0x30   :  { %1144 = vmatprep.subr.bf16.mxu0 %v1248_v61 }
  0x33   :  { %1145 = vmatpush3.bf16.msra.mxu0 %v1248_v61 }
  0x34   :  { %1146 = vmatprep.subr.bf16.mxu0 %v1249_v62 }
  0x37   :  { %1147 = vmatpush3.bf16.msra.mxu0 %v1249_v62 }
  0x38   :  { %1148 = vmatprep.subr.bf16.mxu0 %v1250_v63 }
  0x3b   :  { %1149 = vmatpush3.bf16.msra.mxu0 %v1250_v63 }
  0x3c   :  { %1150 = vmatprep.subr.bf16.mxu0 %v1251_v0 }
  0x3f   :  { %1151 = vmatpush3.bf16.msra.mxu0 %v1251_v0 }
  0x40   :  { %1184 = vmatprep.subr.bf16.mxu0 %v1426_v2 }
  0xe2   :  { %v1106_v24 = vpop.f32.mrf.mxu0 }
  0xe3   :  { %v187_v28 = vadd.f32 %v1106_v24, %v901_v25 }
  0xe4   :  { %v178_v26 = vpop.f32.mrf.mxu0 }
  0xe5   :  { %v179_v27 = vadd.f32 %v901_v25, %v178_v26  ;;  %v211_v35 = vmax.f32 %v187_v28, 0.0 }
  0xe6   :  { %v1107_v29 = vpop.f32.mrf.mxu0 }
  0xe7   :  { %v190_v30 = vadd.f32 %v1107_v29, %v901_v25  ;;  %v209_v32 = vmax.f32 %v179_v27, 0.0  ;;  %v219_v44 = vmin.f32 %v211_v35, 20.0  ;;  %v1447_v35 = vld [vmem:[%s1558_s9 + $0x30] sm:$0xff]  }
  0xe8   :  { %v181_v31 = vpop.f32.mrf.mxu0 }
  0xe9   :  { %v212_v33 = vmax.f32 %v190_v30, 0.0  ;;  %v182_v34 = vadd.f32 %v901_v25, %v181_v31  ;;  %v217_v41 = vmin.f32 %v209_v32, 20.0 }
  0xea   :  { %v1110_v36 = vpop.f32.mrf.mxu0 }
  0xeb   :  { %v210_v37 = vmax.f32 %v182_v34, 0.0  ;;  %v203_v38 = vadd.f32 %v1110_v36, %v901_v25  ;;  %v220_v39 = vmin.f32 %v212_v33, 20.0 }
  0xec   :  { %v194_v40 = vpop.f32.mrf.mxu0 }
  0xed   :  { %v218_v42 = vmin.f32 %v210_v37, 20.0  ;;  %v195_v43 = vadd.f32 %v901_v25, %v194_v40  ;;  %v215_v45 = vmax.f32 %v203_v38, 0.0  ;;  %v226_v50 = vpack.c.bf16 %v220_v39, %v219_v44 }
  0xee   :  { %v1111_v46 = vpop.f32.mrf.mxu0 }
  0xef   :  { %v213_v47 = vmax.f32 %v195_v43, 0.0  ;;  %v206_v48 = vadd.f32 %v1111_v46, %v901_v25  ;;  %v225_v49 = vpack.c.bf16 %v218_v42, %v217_v41  ;;  %v223_v54 = vmin.f32 %v215_v45, 20.0  ;;  %v1454_v42 = vld [vmem:[%s1558_s9 + $0x28] sm:$0xff]   ;;  %v1461_v46 = vld [vmem:[%s1558_s9 + $0x20] sm:$0xff]  }
  0xf0   :  { %v197_v51 = vpop.f32.mrf.mxu0 }
  0xf1   :  { %v216_v52 = vmax.f32 %v206_v48, 0.0  ;;  %v198_v53 = vadd.f32 %v901_v25, %v197_v51  ;;  %1128 = vmatprep.mubr.bf16.mxu1 %v225_v49  ;;  %v221_v55 = vmin.f32 %v213_v47, 20.0  ;;  %v1469_v47 = vld [vmem:[%s1558_s9 + $0x18] sm:$0xff]   ;;  %v1262_v48 = vld [vmem:[%s1557_s7 + $0x10] sm:$0xff]   ;;  %v1489_v51 = vld [vmem:[%s1558_s9 + $0x8] sm:$0xff]  }
  0xf2   :  { %1129 = vmatmul.mubr.bf16.vlgmr.msra.gmra.mxu1 %v226_v50  ;;  %v1479_v49 = vld [vmem:[%s1558_s9 + $0x10] sm:$0xff]   ;;  %v1264_v50 = vld [vmem:[%s1557_s7 + $0x8] sm:$0xff]  }
  0xf3   :  { %v224_v56 = vmin.f32 %v216_v52, 20.0  ;;  %v214_v57 = vmax.f32 %v198_v53, 0.0  ;;  %1161 = vmatpush3.bf16.msra.mxu1 %v1252_v1  ;;  %v1266_v52 = vld [vmem:[%s1557_s7] sm:$0xff]  }
  0xf4   :  { %1162 = vmatprep.subr.bf16.mxu1 %v1254_v3  ;;  %v1499_v53 = vld [vmem:[%s1558_s9] sm:$0xff]  }
  0xf5   :  { %v222_v58 = vmin.f32 %v214_v57, 20.0  ;;  %v228_v59 = vpack.c.bf16 %v224_v56, %v223_v54 }
  0xf7   :  { %v227_v60 = vpack.c.bf16 %v222_v58, %v221_v55  ;;  %1163 = vmatpush3.bf16.msra.mxu1 %v1254_v3  ;;  %v923_v55 = vld [vmem:[%s1560_s6] ss:$0 sm:$0xff] }
  0xf8   :  { %1164 = vmatprep.subr.bf16.mxu1 %v1256_v4 }
  0xf9   :  { %1132 = vmatprep.mubr.bf16.mxu1 %v227_v60 }
  0xfa   :  { %1133 = vmatmul.mubr.bf16.gmra.mxu1 %v228_v59 }
  0xfb   :  { %1165 = vmatpush3.bf16.msra.mxu1 %v1256_v4 }
  0xfc   :  { %1166 = vmatprep.subr.bf16.mxu1 %v1258_v5 }
  0xff   :  { %1167 = vmatpush3.bf16.msra.mxu1 %v1258_v5 }
 0x100   :  { %1168 = vmatprep.subr.bf16.mxu1 %v1260_v6 }
 0x103   :  { %1169 = vmatpush3.bf16.msra.mxu1 %v1260_v6 }
 0x104   :  { %1170 = vmatprep.subr.bf16.mxu1 %v1262_v48 }
 0x107   :  { %1171 = vmatpush3.bf16.msra.mxu1 %v1262_v48 }
 0x108   :  { %1172 = vmatprep.subr.bf16.mxu1 %v1264_v50 }
 0x10b   :  { %1173 = vmatpush3.bf16.msra.mxu1 %v1264_v50 }
 0x10c   :  { %1174 = vmatprep.subr.bf16.mxu1 %v1266_v52 }
 0x10f   :  { %1175 = vmatpush3.bf16.msra.mxu1 %v1266_v52 }
 0x110   :  { %1208 = vmatprep.subr.bf16.mxu1 %v1426_v2 }
 0x1b2   :  { %v1130_v7 = vpop.f32.mrf.mxu1 }
 0x1b3   :  { %v343_v11 = vadd.f32 %v1130_v7, %v914_v8 }
 0x1b4   :  { %v334_v9 = vpop.f32.mrf.mxu1 }
 0x1b5   :  { %v335_v10 = vadd.f32 %v914_v8, %v334_v9  ;;  %v367_v18 = vmax.f32 %v343_v11, 0.0 }
 0x1b6   :  { %v1131_v12 = vpop.f32.mrf.mxu1 }
 0x1b7   :  { %v346_v13 = vadd.f32 %v1131_v12, %v914_v8  ;;  %v365_v15 = vmax.f32 %v335_v10, 0.0  ;;  %v375_v27 = vmin.f32 %v367_v18, 20.0 }
 0x1b8   :  { %v337_v14 = vpop.f32.mrf.mxu1 }
 0x1b9   :  { %v368_v16 = vmax.f32 %v346_v13, 0.0  ;;  %v338_v17 = vadd.f32 %v914_v8, %v337_v14  ;;  %v373_v24 = vmin.f32 %v365_v15, 20.0 }
 0x1ba   :  { %v1134_v19 = vpop.f32.mrf.mxu1 }
 0x1bb   :  { %v366_v20 = vmax.f32 %v338_v17, 0.0  ;;  %v359_v21 = vadd.f32 %v1134_v19, %v914_v8  ;;  %v376_v22 = vmin.f32 %v368_v16, 20.0 }
 0x1bc   :  { %v350_v23 = vpop.f32.mrf.mxu1 }
 0x1bd   :  { %v374_v25 = vmin.f32 %v366_v20, 20.0  ;;  %v351_v26 = vadd.f32 %v914_v8, %v350_v23  ;;  %v371_v28 = vmax.f32 %v359_v21, 0.0  ;;  %v382_v33 = vpack.c.bf16 %v376_v22, %v375_v27 }
 0x1be   :  { %v1135_v29 = vpop.f32.mrf.mxu1 }
 0x1bf   :  { %v381_v30 = vpack.c.bf16 %v374_v25, %v373_v24  ;;  %v369_v31 = vmax.f32 %v351_v26, 0.0  ;;  %v362_v32 = vadd.f32 %v1135_v29, %v914_v8  ;;  %v379_v38 = vmin.f32 %v371_v28, 20.0  ;;  %v932_v29 = vld [vmem:[%s1561_s8] ss:$0 sm:$0xff] }
 0x1c0   :  { %v353_v34 = vpop.f32.mrf.mxu1 }
 0x1c1   :  { %v372_v36 = vmax.f32 %v362_v32, 0.0  ;;  %v354_v37 = vadd.f32 %v914_v8, %v353_v34  ;;  %1152 = vmatprep.mubr.bf16.mxu0 %v381_v30  ;;  %v377_v39 = vmin.f32 %v369_v31, 20.0  ;;  %v949_v30 = vld [vmem:[%s1562_s10] ss:$0 sm:$0xff] }
 0x1c2   :  { %1153 = vmatmul.mubr.bf16.vlgmr.msra.gmra.mxu0 %v382_v33 }
 0x1c3   :  { %v380_v40 = vmin.f32 %v372_v36, 20.0  ;;  %v370_v41 = vmax.f32 %v354_v37, 0.0  ;;  %1185 = vmatpush3.bf16.msra.mxu0 %v1426_v2 }
 0x1c4   :  { %1186 = vmatprep.subr.bf16.mxu0 %v1447_v35 }
 0x1c5   :  { %v378_v43 = vmin.f32 %v370_v41, 20.0  ;;  %v384_v44 = vpack.c.bf16 %v380_v40, %v379_v38 }
 0x1c7   :  { %v383_v45 = vpack.c.bf16 %v378_v43, %v377_v39  ;;  %1187 = vmatpush3.bf16.msra.mxu0 %v1447_v35 }
 0x1c8   :  { %1188 = vmatprep.subr.bf16.mxu0 %v1454_v42 }
 0x1c9   :  { %1156 = vmatprep.mubr.bf16.mxu0 %v383_v45 }
 0x1ca   :  { %1157 = vmatmul.mubr.bf16.gmra.mxu0 %v384_v44 }
 0x1cb   :  { %1189 = vmatpush3.bf16.msra.mxu0 %v1454_v42 }
 0x1cc   :  { %1190 = vmatprep.subr.bf16.mxu0 %v1461_v46 }
 0x1cf   :  { %1191 = vmatpush3.bf16.msra.mxu0 %v1461_v46 }
 0x1d0   :  { %1192 = vmatprep.subr.bf16.mxu0 %v1469_v47 }
 0x1d3   :  { %1193 = vmatpush3.bf16.msra.mxu0 %v1469_v47 }
 0x1d4   :  { %1194 = vmatprep.subr.bf16.mxu0 %v1479_v49 }
 0x1d7   :  { %1195 = vmatpush3.bf16.msra.mxu0 %v1479_v49 }
 0x1d8   :  { %1196 = vmatprep.subr.bf16.mxu0 %v1489_v51 }
 0x1db   :  { %1197 = vmatpush3.bf16.msra.mxu0 %v1489_v51 }
 0x1dc   :  { %1198 = vmatprep.subr.bf16.mxu0 %v1499_v53 }
 0x1df   :  { %1199 = vmatpush3.bf16.msra.mxu0 %v1499_v53 }
 0x282   :  { %v1154_v54 = vpop.f32.mrf.mxu0 }
 0x283   :  { %v499_v58 = vadd.f32 %v1154_v54, %v923_v55 }
 0x284   :  { %v490_v56 = vpop.f32.mrf.mxu0 }
 0x285   :  { %v491_v57 = vadd.f32 %v923_v55, %v490_v56  ;;  %v523_v1 = vmax.f32 %v499_v58, 0.0 }
 0x286   :  { %v1155_v59 = vpop.f32.mrf.mxu0 }
 0x287   :  { %v502_v60 = vadd.f32 %v1155_v59, %v923_v55  ;;  %v521_v62 = vmax.f32 %v491_v57, 0.0  ;;  %v531_v10 = vmin.f32 %v523_v1, 20.0 }
 0x288   :  { %v493_v61 = vpop.f32.mrf.mxu0 }
 0x289   :  { %v524_v63 = vmax.f32 %v502_v60, 0.0  ;;  %v494_v0 = vadd.f32 %v923_v55, %v493_v61  ;;  %v529_v7 = vmin.f32 %v521_v62, 20.0 }
 0x28a   :  { %v1158_v3 = vpop.f32.mrf.mxu0 }
 0x28b   :  { %v522_v4 = vmax.f32 %v494_v0, 0.0  ;;  %v532_v5 = vmin.f32 %v524_v63, 20.0  ;;  %v515_v11 = vadd.f32 %v1158_v3, %v923_v55 }
 0x28c   :  { %v506_v6 = vpop.f32.mrf.mxu0 }
 0x28d   :  { %v530_v8 = vmin.f32 %v522_v4, 20.0  ;;  %v507_v9 = vadd.f32 %v923_v55, %v506_v6  ;;  %v538_v15 = vpack.c.bf16 %v532_v5, %v531_v10  ;;  %v527_v20 = vmax.f32 %v515_v11, 0.0 }
 0x28e   :  { %v1159_v12 = vpop.f32.mrf.mxu0 }
 0x28f   :  { %v537_v13 = vpack.c.bf16 %v530_v8, %v529_v7  ;;  %v518_v14 = vadd.f32 %v1159_v12, %v923_v55  ;;  %v525_v17 = vmax.f32 %v507_v9, 0.0  ;;  %v535_v25 = vmin.f32 %v527_v20, 20.0 }
 0x290   :  { %v509_v16 = vpop.f32.mrf.mxu0 }
 0x291   :  { %v528_v18 = vmax.f32 %v518_v14, 0.0  ;;  %v510_v19 = vadd.f32 %v923_v55, %v509_v16  ;;  %1176 = vmatprep.mubr.bf16.mxu1 %v537_v13  ;;  %1200 = vmatprep.mubr.bf16.mxu0 %v537_v13  ;;  %v533_v23 = vmin.f32 %v525_v17, 20.0 }
 0x292   :  { %1177 = vmatmul.mubr.bf16.vlgmr.msra.gmra.mxu1 %v538_v15  ;;  %1201 = vmatmul.mubr.bf16.vlgmr.msra.gmra.mxu0 %v538_v15 }
 0x293   :  { %v526_v21 = vmax.f32 %v510_v19, 0.0  ;;  %1216 = vmatpush3.bf16.msra.mxu1 %v1426_v2  ;;  %v536_v22 = vmin.f32 %v528_v18, 20.0 }
 0x294   :  { %1209 = vmatprep.subr.bf16.mxu1 %v1447_v35 }
 0x295   :  { %v534_v24 = vmin.f32 %v526_v21, 20.0  ;;  %v540_v27 = vpack.c.bf16 %v536_v22, %v535_v25 }
 0x297   :  { %v539_v26 = vpack.c.bf16 %v534_v24, %v533_v23  ;;  %1217 = vmatpush3.bf16.msra.mxu1 %v1447_v35 }
 0x298   :  { %1210 = vmatprep.subr.bf16.mxu1 %v1454_v42 }
 0x299   :  { %1180 = vmatprep.mubr.bf16.mxu1 %v539_v26 }
 0x29a   :  { %1181 = vmatmul.mubr.bf16.gmra.mxu1 %v540_v27 }
 0x29b   :  { %1218 = vmatpush3.bf16.msra.mxu1 %v1454_v42  ;;  %1204 = vmatprep.mubr.bf16.mxu1 %v539_v26 }
 0x29c   :  { %1211 = vmatprep.subr.bf16.mxu1 %v1461_v46 }
 0x29f   :  { %1219 = vmatpush3.bf16.msra.mxu1 %v1461_v46 }
 0x2a0   :  { %1212 = vmatprep.subr.bf16.mxu1 %v1469_v47 }
 0x2a3   :  { %1220 = vmatpush3.bf16.msra.mxu1 %v1469_v47 }
 0x2a4   :  { %1213 = vmatprep.subr.bf16.mxu1 %v1479_v49 }
 0x2a7   :  { %1221 = vmatpush3.bf16.msra.mxu1 %v1479_v49 }
 0x2a8   :  { %1214 = vmatprep.subr.bf16.mxu1 %v1489_v51 }
 0x2ab   :  { %1222 = vmatpush3.bf16.msra.mxu1 %v1489_v51 }
 0x2ac   :  { %1215 = vmatprep.subr.bf16.mxu1 %v1499_v53 }
 0x2af   :  { %1223 = vmatpush3.bf16.msra.mxu1 %v1499_v53 }
 0x2b2   :  { %1205 = vmatmul.mubr.bf16.vlgmr.msra.gmra.mxu1 %v540_v27 }
 0x352   :  { %v1178_v2 = vpop.f32.mrf.mxu1  ;;  %v1202_v28 = vpop.f32.mrf.mxu0 }
 0x353   :  { %v655_v35 = vadd.f32 %v1178_v2, %v932_v29  ;;  %v831_v36 = vadd.f32 %v1202_v28, %v949_v30 }
 0x354   :  { %v646_v31 = vpop.f32.mrf.mxu1  ;;  %v822_v32 = vpop.f32.mrf.mxu0 }
 0x355   :  { %v647_v39 = vadd.f32 %v932_v29, %v646_v31  ;;  %v823_v40 = vadd.f32 %v949_v30, %v822_v32 }
 0x356   :  { %v1179_v33 = vpop.f32.mrf.mxu1  ;;  %v1203_v34 = vpop.f32.mrf.mxu0 }
 0x357   :  { %v658_v37 = vadd.f32 %v1179_v33, %v932_v29  ;;  %v834_v38 = vadd.f32 %v1203_v34, %v949_v30 }
 0x358   :  { %v649_v41 = vpop.f32.mrf.mxu1  ;;  %v825_v42 = vpop.f32.mrf.mxu0 }
 0x359   :  { %v990_v43 = vpack.c.bf16 %v658_v37, %v655_v35  ;;  %v1010_v44 = vpack.c.bf16 %v834_v38, %v831_v36  ;;  %v650_v45 = vadd.f32 %v932_v29, %v649_v41  ;;  %v826_v46 = vadd.f32 %v949_v30, %v825_v42 }
 0x35a   :  { %v1182_v47 = vpop.f32.mrf.mxu1 }
 0x35b   :  { %1022 = vst [vmem:[%s1563_s11 + $0x8] sm:$0xff] %v990_v43   ;;  %1025 = vst [vmem:[%s1564_s12 + $0x8] sm:$0xff] %v1010_v44   ;;  %v985_v48 = vpack.c.bf16 %v650_v45, %v647_v39  ;;  %v1005_v49 = vpack.c.bf16 %v826_v46, %v823_v40  ;;  %v671_v52 = vadd.f32 %v1182_v47, %v932_v29 }
 0x35c   :  { %v662_v50 = vpop.f32.mrf.mxu1 }
 0x35d   :  { %986 = vst [vmem:[%s1563_s11] sm:$0xff] %v985_v48   ;;  %1006 = vst [vmem:[%s1564_s12] sm:$0xff] %v1005_v49   ;;  %v663_v55 = vadd.f32 %v932_v29, %v662_v50 }
 0x35e   :  { %v1183_v51 = vpop.f32.mrf.mxu1 }
 0x35f   :  { %v674_v53 = vadd.f32 %v1183_v51, %v932_v29 }
 0x360   :  { %v665_v54 = vpop.f32.mrf.mxu1 }
 0x361   :  { %v1000_v56 = vpack.c.bf16 %v674_v53, %v671_v52  ;;  %v666_v57 = vadd.f32 %v932_v29, %v665_v54 }
 0x363   :  { %1024 = vst [vmem:[%s1563_s11 + $0x18] sm:$0xff] %v1000_v56   ;;  %v995_v58 = vpack.c.bf16 %v666_v57, %v663_v55 }
 0x365   :  { %1023 = vst [vmem:[%s1563_s11 + $0x10] sm:$0xff] %v995_v58  }
 0x372   :  { %v1206_v59 = vpop.f32.mrf.mxu1 }
 0x373   :  { %v847_v62 = vadd.f32 %v1206_v59, %v949_v30 }
 0x374   :  { %v838_v60 = vpop.f32.mrf.mxu1 }
 0x375   :  { %v839_v1 = vadd.f32 %v949_v30, %v838_v60 }
 0x376   :  { %v1207_v61 = vpop.f32.mrf.mxu1 }
 0x377   :  { %v850_v63 = vadd.f32 %v1207_v61, %v949_v30 }
 0x378   :  { %v841_v0 = vpop.f32.mrf.mxu1 }
 0x379   :  { %v1020_v3 = vpack.c.bf16 %v850_v63, %v847_v62  ;;  %v842_v4 = vadd.f32 %v949_v30, %v841_v0 }
 0x37b   :  { %1027 = vst [vmem:[%s1564_s12 + $0x18] sm:$0xff] %v1020_v3   ;;  %v1015_v5 = vpack.c.bf16 %v842_v4, %v839_v1 }
 0x37d   :  { %1026 = vst [vmem:[%s1564_s12 + $0x10] sm:$0xff] %v1015_v5  }

// kernel: deepspeech_forward.4
= control target key start
LH: loop header
LB: loop body
LE: loop exit
PB: predicated region body
PF: predicated region fallthrough
CT: control target
= control target key end

     0   :  { %v2685_v0 = vmov 0.0   ;;  %vm2686_vm0 = vmmov 0   ;;  %v2687_v20 = vmov 0.0|0.0   ;;  %s3361_s2 = inlined_call_operand.vmem [shape: bf16[128,128], index: 2, kind: input, shape index: {}]   ;;  %s3362_s3 = inlined_call_operand.vmem [shape: bf16[128,128], index: 3, kind: input, shape index: {}]   ;;  %s3363_s0 = inlined_call_operand.vmem [shape: bf16[8,8,128], index: 0, kind: input, shape index: {}]   ;;  %s3364_s1 = inlined_call_operand.vmem [shape: bf16[8,8,128], index: 1, kind: input, shape index: {}]   ;;  %s3365_s4 = inlined_call_operand.vmem [shape: bf16[8,8,128], index: 4, kind: output, shape index: {0}]   ;;  %s3366_s5 = inlined_call_operand.vmem [shape: bf16[8,8,128], index: 5, kind: output, shape index: {1}]  }
   0x1   :  { %2234 = vmatprep.subr.bf16.mxu0 %v2685_v0  ;;  %2254 = vmatprep.subr.bf16.mxu1 %v2685_v0  ;;  %v2557_v1 = vld [vmem:[%s3361_s2 + $0x38] sm:$0xff]   ;;  %v2559_v3 = vld [vmem:[%s3361_s2 + $0x30] sm:$0xff]   ;;  %v2561_v5 = vld [vmem:[%s3361_s2 + $0x28] sm:$0xff]  }
   0x2   :  { %v2558_v2 = vld [vmem:[%s3362_s3 + $0x38] sm:$0xff]   ;;  %2250 = vmatprep.mubr.msk.bf16.mxu0 %vm2686_vm0, %v2685_v0  ;;  %2270 = vmatprep.mubr.msk.bf16.mxu1 %vm2686_vm0, %v2685_v0  ;;  %v2560_v4 = vld [vmem:[%s3362_s3 + $0x30] sm:$0xff]   ;;  %v2562_v6 = vld [vmem:[%s3362_s3 + $0x28] sm:$0xff]  }
   0x3   :  { %2235 = vmatpush3.bf16.msra.mxu0 %v2557_v1  ;;  %2255 = vmatpush3.bf16.msra.mxu1 %v2558_v2  ;;  %v2563_v7 = vld [vmem:[%s3361_s2 + $0x20] sm:$0xff]   ;;  %v2565_v9 = vld [vmem:[%s3361_s2 + $0x18] sm:$0xff]   ;;  %v2567_v11 = vld [vmem:[%s3361_s2 + $0x10] sm:$0xff]  }
   0x4   :  { %2236 = vmatprep.subr.bf16.mxu0 %v2685_v0  ;;  %2256 = vmatprep.subr.bf16.mxu1 %v2685_v0  ;;  %v2564_v8 = vld [vmem:[%s3362_s3 + $0x20] sm:$0xff]   ;;  %v2566_v10 = vld [vmem:[%s3362_s3 + $0x18] sm:$0xff]   ;;  %v2568_v12 = vld [vmem:[%s3362_s3 + $0x10] sm:$0xff]  }
   0x5   :  { %v2569_v13 = vld [vmem:[%s3361_s2 + $0x8] sm:$0xff]   ;;  %v2571_v15 = vld [vmem:[%s3361_s2] sm:$0xff]   ;;  %v2573_v17 = vld [vmem:[%s3361_s2 + $0x38] sm:$0xff]  }
   0x6   :  { %v2570_v14 = vld [vmem:[%s3362_s3 + $0x8] sm:$0xff]   ;;  %v2572_v16 = vld [vmem:[%s3362_s3] sm:$0xff]   ;;  %v2574_v18 = vld [vmem:[%s3362_s3 + $0x38] sm:$0xff]  }
   0x7   :  { %2237 = vmatpush3.bf16.msra.mxu0 %v2559_v3  ;;  %2257 = vmatpush3.bf16.msra.mxu1 %v2560_v4  ;;  %v2575_v19 = vld [vmem:[%s3361_s2 + $0x30] sm:$0xff]   ;;  %v2577_v22 = vld [vmem:[%s3361_s2 + $0x28] sm:$0xff]   ;;  %v2579_v24 = vld [vmem:[%s3361_s2 + $0x20] sm:$0xff]  }
   0x8   :  { %2238 = vmatprep.subr.bf16.mxu0 %v2685_v0  ;;  %2258 = vmatprep.subr.bf16.mxu1 %v2685_v0  ;;  %v2576_v21 = vld [vmem:[%s3362_s3 + $0x30] sm:$0xff]   ;;  %v2578_v23 = vld [vmem:[%s3362_s3 + $0x28] sm:$0xff]   ;;  %v2580_v25 = vld [vmem:[%s3362_s3 + $0x20] sm:$0xff]  }
   0x9   :  { %v2581_v26 = vld [vmem:[%s3361_s2 + $0x18] sm:$0xff]   ;;  %v2583_v28 = vld [vmem:[%s3361_s2 + $0x10] sm:$0xff]   ;;  %v2585_v30 = vld [vmem:[%s3361_s2 + $0x8] sm:$0xff]  }
   0xa   :  { %v2582_v27 = vld [vmem:[%s3362_s3 + $0x18] sm:$0xff]   ;;  %v2584_v29 = vld [vmem:[%s3362_s3 + $0x10] sm:$0xff]   ;;  %v2586_v31 = vld [vmem:[%s3362_s3 + $0x8] sm:$0xff]  }
   0xb   :  { %2239 = vmatpush3.bf16.msra.mxu0 %v2561_v5  ;;  %2259 = vmatpush3.bf16.msra.mxu1 %v2562_v6  ;;  %v2587_v32 = vld [vmem:[%s3361_s2] sm:$0xff]   ;;  %v2862_v35 = vld [vmem:[%s3364_s1 + $0x18] sm:$0xff]   ;;  %v2591_v54 = vld [vmem:[%s3361_s2 + $0x30] sm:$0xff]  }
   0xc   :  { %2240 = vmatprep.subr.bf16.mxu0 %v2685_v0  ;;  %2260 = vmatprep.subr.bf16.mxu1 %v2685_v0  ;;  %v2588_v33 = vld [vmem:[%s3362_s3] sm:$0xff]   ;;  %v174_v37 = vunpack.c.h.bf16 %v2862_v35  ;;  %v2589_v47 = vld [vmem:[%s3361_s2 + $0x38] sm:$0xff]   ;;  %v2592_v55 = vld [vmem:[%s3362_s3 + $0x30] sm:$0xff]  }
   0xd   :  { %v62_v34 = vld [vmem:[%s3363_s0] sm:$0xf]  ;;  %v2590_v50 = vld [vmem:[%s3362_s3 + $0x38] sm:$0xff]   ;;  %v2593_v56 = vld [vmem:[%s3361_s2 + $0x28] sm:$0xff]  }
   0xe   :  { %v63_v36 = vunpack.c.l.bf16 %v62_v34  ;;  %v2594_v57 = vld [vmem:[%s3362_s3 + $0x28] sm:$0xff]   ;;  %v2595_v58 = vld [vmem:[%s3361_s2 + $0x20] sm:$0xff]   ;;  %v2597_v60 = vld [vmem:[%s3361_s2 + $0x18] sm:$0xff]  }
   0xf   :  { %2241 = vmatpush3.bf16.msra.mxu0 %v2563_v7  ;;  %2261 = vmatpush3.bf16.msra.mxu1 %v2564_v8  ;;  %v2596_v59 = vld [vmem:[%s3362_s3 + $0x20] sm:$0xff]   ;;  %v2598_v61 = vld [vmem:[%s3362_s3 + $0x18] sm:$0xff]   ;;  %v2599_v62 = vld [vmem:[%s3361_s2 + $0x10] sm:$0xff]   ;;  %v403_v7 = vunpack.c.l.bf16 %v2862_v35 }
  0x10   :  { %2242 = vmatprep.subr.bf16.mxu0 %v2685_v0  ;;  %2262 = vmatprep.subr.bf16.mxu1 %v2685_v0  ;;  %v2600_v63 = vld [vmem:[%s3362_s3 + $0x10] sm:$0xff]   ;;  %v2601_v1 = vld [vmem:[%s3361_s2 + $0x8] sm:$0xff]   ;;  %v2603_v3 = vld [vmem:[%s3361_s2] sm:$0xff]  }
  0x11   :  { %v2602_v2 = vld [vmem:[%s3362_s3 + $0x8] sm:$0xff]   ;;  %v2604_v4 = vld [vmem:[%s3362_s3] sm:$0xff]  }
  0x12   :  { %v2942_v5 = vld [vmem:[%s3363_s0 + $0x4] sm:$0xff]  }
  0x13   :  { %2243 = vmatpush3.bf16.msra.mxu0 %v2565_v9  ;;  %2263 = vmatpush3.bf16.msra.mxu1 %v2566_v10  ;;  %v292_v6 = vunpack.c.l.bf16 %v2942_v5  ;;  %v2617_v34 = vld [vmem:[%s3361_s2 + $0x8] sm:$0xff]  }
  0x14   :  { %2244 = vmatprep.subr.bf16.mxu0 %v2685_v0  ;;  %2264 = vmatprep.subr.bf16.mxu1 %v2685_v0  ;;  %v2618_v35 = vld [vmem:[%s3362_s3 + $0x8] sm:$0xff]  }
  0x17   :  { %2245 = vmatpush3.bf16.msra.mxu0 %v2567_v11  ;;  %2265 = vmatpush3.bf16.msra.mxu1 %v2568_v12 }
  0x18   :  { %2246 = vmatprep.subr.bf16.mxu0 %v2685_v0  ;;  %2266 = vmatprep.subr.bf16.mxu1 %v2685_v0 }
  0x1b   :  { %2247 = vmatpush3.bf16.msra.mxu0 %v2569_v13  ;;  %2267 = vmatpush3.bf16.msra.mxu1 %v2570_v14 }
  0x1c   :  { %2248 = vmatprep.subr.bf16.mxu0 %v2685_v0  ;;  %2268 = vmatprep.subr.bf16.mxu1 %v2685_v0 }
  0x1f   :  { %2249 = vmatpush3.bf16.msra.mxu0 %v2571_v15  ;;  %2269 = vmatpush3.bf16.msra.mxu1 %v2572_v16 }
  0x20   :  { %2274 = vmatprep.subr.bf16.mxu0 %v2685_v0  ;;  %2294 = vmatprep.subr.bf16.mxu1 %v2685_v0 }
  0x22   :  { %2251 = vmatmul.mubr.bf16.vlgmr.msra.gmra.mxu0 %v2687_v20  ;;  %2271 = vmatmul.mubr.bf16.vlgmr.msra.gmra.mxu1 %v2687_v20  ;;  %v2606_v20 = vld [vmem:[%s3362_s3 + $0x38] sm:$0xff]  }
  0x23   :  { %2275 = vmatpush3.bf16.msra.mxu0 %v2573_v17  ;;  %2295 = vmatpush3.bf16.msra.mxu1 %v2574_v18  ;;  %v2605_v17 = vld [vmem:[%s3361_s2 + $0x38] sm:$0xff]  }
  0x24   :  { %2276 = vmatprep.subr.bf16.mxu0 %v2685_v0  ;;  %2296 = vmatprep.subr.bf16.mxu1 %v2685_v0 }
  0x25   :  { %2290 = vmatprep.mubr.msk.bf16.mxu0 %vm2686_vm0, %v2685_v0  ;;  %2310 = vmatprep.mubr.msk.bf16.mxu1 %vm2686_vm0, %v2685_v0 }
  0x27   :  { %2277 = vmatpush3.bf16.msra.mxu0 %v2575_v19  ;;  %2297 = vmatpush3.bf16.msra.mxu1 %v2576_v21 }
  0x28   :  { %2278 = vmatprep.subr.bf16.mxu0 %v2685_v0  ;;  %2298 = vmatprep.subr.bf16.mxu1 %v2685_v0 }
  0x2b   :  { %2279 = vmatpush3.bf16.msra.mxu0 %v2577_v22  ;;  %2299 = vmatpush3.bf16.msra.mxu1 %v2578_v23 }
  0x2c   :  { %2280 = vmatprep.subr.bf16.mxu0 %v2685_v0  ;;  %2300 = vmatprep.subr.bf16.mxu1 %v2685_v0 }
  0x2f   :  { %2281 = vmatpush3.bf16.msra.mxu0 %v2579_v24  ;;  %2301 = vmatpush3.bf16.msra.mxu1 %v2580_v25  ;;  %v2607_v24 = vld [vmem:[%s3361_s2 + $0x30] sm:$0xff]  }
  0x30   :  { %2282 = vmatprep.subr.bf16.mxu0 %v2685_v0  ;;  %2302 = vmatprep.subr.bf16.mxu1 %v2685_v0  ;;  %v2608_v25 = vld [vmem:[%s3362_s3 + $0x30] sm:$0xff]  }
  0x33   :  { %2283 = vmatpush3.bf16.msra.mxu0 %v2581_v26  ;;  %2303 = vmatpush3.bf16.msra.mxu1 %v2582_v27  ;;  %v2609_v26 = vld [vmem:[%s3361_s2 + $0x28] sm:$0xff]  }
  0x34   :  { %2284 = vmatprep.subr.bf16.mxu0 %v2685_v0  ;;  %2304 = vmatprep.subr.bf16.mxu1 %v2685_v0  ;;  %v2610_v27 = vld [vmem:[%s3362_s3 + $0x28] sm:$0xff]  }
  0x37   :  { %2285 = vmatpush3.bf16.msra.mxu0 %v2583_v28  ;;  %2305 = vmatpush3.bf16.msra.mxu1 %v2584_v29  ;;  %v2611_v28 = vld [vmem:[%s3361_s2 + $0x20] sm:$0xff]  }
  0x38   :  { %2286 = vmatprep.subr.bf16.mxu0 %v2685_v0  ;;  %2306 = vmatprep.subr.bf16.mxu1 %v2685_v0  ;;  %v2612_v29 = vld [vmem:[%s3362_s3 + $0x20] sm:$0xff]  }
  0x3b   :  { %2287 = vmatpush3.bf16.msra.mxu0 %v2585_v30  ;;  %2307 = vmatpush3.bf16.msra.mxu1 %v2586_v31  ;;  %v2613_v30 = vld [vmem:[%s3361_s2 + $0x18] sm:$0xff]  }
  0x3c   :  { %2288 = vmatprep.subr.bf16.mxu0 %v2685_v0  ;;  %2308 = vmatprep.subr.bf16.mxu1 %v2685_v0  ;;  %v2614_v31 = vld [vmem:[%s3362_s3 + $0x18] sm:$0xff]  }
  0x3f   :  { %2289 = vmatpush3.bf16.msra.mxu0 %v2587_v32  ;;  %2309 = vmatpush3.bf16.msra.mxu1 %v2588_v33  ;;  %v2615_v32 = vld [vmem:[%s3361_s2 + $0x10] sm:$0xff]  }
  0x40   :  { %2314 = vmatprep.subr.bf16.mxu0 %v2685_v0  ;;  %2334 = vmatprep.subr.bf16.mxu1 %v2685_v0  ;;  %v2616_v33 = vld [vmem:[%s3362_s3 + $0x10] sm:$0xff]  }
  0xe2   :  { %v164_v38 = vpop.f32.mrf.mxu0  ;;  %v275_v40 = vpop.f32.mrf.mxu1 }
  0xe3   :  { %v170_v39 = vadd.f32 %v164_v38, %v63_v36  ;;  %v281_v41 = vadd.f32 %v275_v40, %v174_v37  ;;  %v2619_v36 = vld [vmem:[%s3361_s2] sm:$0xff]   ;;  %v3023_v38 = vld [vmem:[%s3364_s1 + $0x10] sm:$0xff]  }
  0xe4   :  { %v2252_v42 = vpop.f32.mrf.mxu0  ;;  %v2272_v44 = vpop.f32.mrf.mxu1  ;;  %v2620_v37 = vld [vmem:[%s3362_s3] sm:$0xff]   ;;  %v633_v40 = vunpack.c.h.bf16 %v3023_v38 }
  0xe5   :  { %v171_v43 = vmax.f32 %v170_v39, 0.0  ;;  %v282_v45 = vmax.f32 %v281_v41, 0.0  ;;  %v522_v39 = vunpack.c.h.bf16 %v2942_v5  ;;  %v2634_v5 = vld [vmem:[%s3362_s3 + $0x8] sm:$0xff]  }
  0xe6   :  { %v167_v46 = vpop.f32.mrf.mxu0  ;;  %v278_v49 = vpop.f32.mrf.mxu1 }
  0xe7   :  { %v285_v48 = vpack.c.bf16 %v171_v43, %v171_v43  ;;  %v287_v51 = vpack.c.bf16 %v282_v45, %v282_v45 }
  0xe8   :  { %v2253_v52 = vpop.f32.mrf.mxu0  ;;  %v2273_v53 = vpop.f32.mrf.mxu1 }
  0xe9   :  { %286 = vst [vmem:[%s3365_s4] sm:$0xf] %v285_v48  ;;  %2291 = vmatmul.mubr.bf16.vlgmr.msra.gmra.mxu0 %v285_v48  ;;  %1951 = vst [vmem:[%s3366_s5 + $0x1c] sm:$0xf] %v287_v51  ;;  %2311 = vmatmul.mubr.bf16.vlgmr.msra.gmra.mxu1 %v287_v51  ;;  %v2622_v53 = vld [vmem:[%s3362_s3 + $0x38] sm:$0xff]  }
  0xea   :  { %2315 = vmatpush3.bf16.msra.mxu0 %v2589_v47  ;;  %2335 = vmatpush3.bf16.msra.mxu1 %v2590_v50  ;;  %v2621_v50 = vld [vmem:[%s3361_s2 + $0x38] sm:$0xff]  }
  0xeb   :  { %2316 = vmatprep.subr.bf16.mxu0 %v2685_v0  ;;  %2336 = vmatprep.subr.bf16.mxu1 %v2685_v0 }
  0xec   :  { %2330 = vmatprep.mubr.msk.bf16.mxu0 %vm2686_vm0, %v2685_v0  ;;  %2350 = vmatprep.mubr.msk.bf16.mxu1 %vm2686_vm0, %v2685_v0 }
  0xee   :  { %2317 = vmatpush3.bf16.msra.mxu0 %v2591_v54  ;;  %2337 = vmatpush3.bf16.msra.mxu1 %v2592_v55 }
  0xef   :  { %2318 = vmatprep.subr.bf16.mxu0 %v2685_v0  ;;  %2338 = vmatprep.subr.bf16.mxu1 %v2685_v0 }
  0xf2   :  { %2319 = vmatpush3.bf16.msra.mxu0 %v2593_v56  ;;  %2339 = vmatpush3.bf16.msra.mxu1 %v2594_v57  ;;  %v2623_v57 = vld [vmem:[%s3361_s2 + $0x30] sm:$0xff]  }
  0xf3   :  { %2320 = vmatprep.subr.bf16.mxu0 %v2685_v0  ;;  %2340 = vmatprep.subr.bf16.mxu1 %v2685_v0 }
  0xf6   :  { %2321 = vmatpush3.bf16.msra.mxu0 %v2595_v58  ;;  %2341 = vmatpush3.bf16.msra.mxu1 %v2596_v59  ;;  %v2624_v58 = vld [vmem:[%s3362_s3 + $0x30] sm:$0xff]   ;;  %v2625_v59 = vld [vmem:[%s3361_s2 + $0x28] sm:$0xff]  }
  0xf7   :  { %2322 = vmatprep.subr.bf16.mxu0 %v2685_v0  ;;  %2342 = vmatprep.subr.bf16.mxu1 %v2685_v0 }
  0xfa   :  { %2323 = vmatpush3.bf16.msra.mxu0 %v2597_v60  ;;  %2343 = vmatpush3.bf16.msra.mxu1 %v2598_v61  ;;  %v2626_v60 = vld [vmem:[%s3362_s3 + $0x28] sm:$0xff]   ;;  %v2627_v61 = vld [vmem:[%s3361_s2 + $0x20] sm:$0xff]  }
  0xfb   :  { %2324 = vmatprep.subr.bf16.mxu0 %v2685_v0  ;;  %2344 = vmatprep.subr.bf16.mxu1 %v2685_v0 }
  0xfe   :  { %2325 = vmatpush3.bf16.msra.mxu0 %v2599_v62  ;;  %2345 = vmatpush3.bf16.msra.mxu1 %v2600_v63  ;;  %v2628_v62 = vld [vmem:[%s3362_s3 + $0x20] sm:$0xff]   ;;  %v2629_v63 = vld [vmem:[%s3361_s2 + $0x18] sm:$0xff]  }
  0xff   :  { %2326 = vmatprep.subr.bf16.mxu0 %v2685_v0  ;;  %2346 = vmatprep.subr.bf16.mxu1 %v2685_v0 }
 0x102   :  { %2327 = vmatpush3.bf16.msra.mxu0 %v2601_v1  ;;  %2347 = vmatpush3.bf16.msra.mxu1 %v2602_v2  ;;  %v2630_v1 = vld [vmem:[%s3362_s3 + $0x18] sm:$0xff]   ;;  %v2631_v2 = vld [vmem:[%s3361_s2 + $0x10] sm:$0xff]  }
 0x103   :  { %2328 = vmatprep.subr.bf16.mxu0 %v2685_v0  ;;  %2348 = vmatprep.subr.bf16.mxu1 %v2685_v0 }
 0x106   :  { %2329 = vmatpush3.bf16.msra.mxu0 %v2603_v3  ;;  %2349 = vmatpush3.bf16.msra.mxu1 %v2604_v4  ;;  %v2632_v3 = vld [vmem:[%s3362_s3 + $0x10] sm:$0xff]   ;;  %v2633_v4 = vld [vmem:[%s3361_s2 + $0x8] sm:$0xff]  }
 0x107   :  { %2354 = vmatprep.subr.bf16.mxu0 %v2685_v0  ;;  %2374 = vmatprep.subr.bf16.mxu1 %v2685_v0 }
 0x1a9   :  { %v393_v8 = vpop.f32.mrf.mxu0  ;;  %v504_v10 = vpop.f32.mrf.mxu1 }
 0x1aa   :  { %v399_v9 = vadd.f32 %v393_v8, %v292_v6  ;;  %v510_v11 = vadd.f32 %v504_v10, %v403_v7  ;;  %v2635_v6 = vld [vmem:[%s3361_s2] sm:$0xff]   ;;  %v3104_v8 = vld [vmem:[%s3363_s0 + $0xc] sm:$0xff]   ;;  %v863_v10 = vunpack.c.l.bf16 %v3023_v38 }
 0x1ab   :  { %v2292_v12 = vpop.f32.mrf.mxu0  ;;  %v2312_v14 = vpop.f32.mrf.mxu1  ;;  %v2636_v7 = vld [vmem:[%s3362_s3] sm:$0xff]   ;;  %v2650_v38 = vld [vmem:[%s3362_s3 + $0x8] sm:$0xff]  }
 0x1ac   :  { %v400_v13 = vmax.f32 %v399_v9, 0.0  ;;  %v511_v15 = vmax.f32 %v510_v11, 0.0  ;;  %v752_v9 = vunpack.c.l.bf16 %v3104_v8 }
 0x1ad   :  { %v396_v16 = vpop.f32.mrf.mxu0  ;;  %v507_v19 = vpop.f32.mrf.mxu1 }
 0x1ae   :  { %v514_v18 = vpack.c.bf16 %v400_v13, %v400_v13  ;;  %v517_v21 = vpack.c.bf16 %v511_v15, %v511_v15 }
 0x1af   :  { %v2293_v22 = vpop.f32.mrf.mxu0  ;;  %v2313_v23 = vpop.f32.mrf.mxu1 }
 0x1b0   :  { %1970 = vst [vmem:[%s3365_s4 + $0x4] sm:$0xf] %v514_v18  ;;  %2331 = vmatmul.mubr.bf16.vlgmr.msra.gmra.mxu0 %v514_v18  ;;  %1971 = vst [vmem:[%s3366_s5 + $0x18] sm:$0xf] %v517_v21  ;;  %2351 = vmatmul.mubr.bf16.vlgmr.msra.gmra.mxu1 %v517_v21  ;;  %v2638_v23 = vld [vmem:[%s3362_s3 + $0x38] sm:$0xff]  }
 0x1b1   :  { %2355 = vmatpush3.bf16.msra.mxu0 %v2605_v17  ;;  %2375 = vmatpush3.bf16.msra.mxu1 %v2606_v20  ;;  %v2637_v20 = vld [vmem:[%s3361_s2 + $0x38] sm:$0xff]  }
 0x1b2   :  { %2356 = vmatprep.subr.bf16.mxu0 %v2685_v0  ;;  %2376 = vmatprep.subr.bf16.mxu1 %v2685_v0 }
 0x1b3   :  { %2370 = vmatprep.mubr.msk.bf16.mxu0 %vm2686_vm0, %v2685_v0  ;;  %2390 = vmatprep.mubr.msk.bf16.mxu1 %vm2686_vm0, %v2685_v0 }
 0x1b5   :  { %2357 = vmatpush3.bf16.msra.mxu0 %v2607_v24  ;;  %2377 = vmatpush3.bf16.msra.mxu1 %v2608_v25 }
 0x1b6   :  { %2358 = vmatprep.subr.bf16.mxu0 %v2685_v0  ;;  %2378 = vmatprep.subr.bf16.mxu1 %v2685_v0 }
 0x1b9   :  { %2359 = vmatpush3.bf16.msra.mxu0 %v2609_v26  ;;  %2379 = vmatpush3.bf16.msra.mxu1 %v2610_v27  ;;  %v2639_v27 = vld [vmem:[%s3361_s2 + $0x30] sm:$0xff]  }
 0x1ba   :  { %2360 = vmatprep.subr.bf16.mxu0 %v2685_v0  ;;  %2380 = vmatprep.subr.bf16.mxu1 %v2685_v0 }
 0x1bd   :  { %2361 = vmatpush3.bf16.msra.mxu0 %v2611_v28  ;;  %2381 = vmatpush3.bf16.msra.mxu1 %v2612_v29  ;;  %v2640_v28 = vld [vmem:[%s3362_s3 + $0x30] sm:$0xff]   ;;  %v2641_v29 = vld [vmem:[%s3361_s2 + $0x28] sm:$0xff]  }
 0x1be   :  { %2362 = vmatprep.subr.bf16.mxu0 %v2685_v0  ;;  %2382 = vmatprep.subr.bf16.mxu1 %v2685_v0 }
 0x1c1   :  { %2363 = vmatpush3.bf16.msra.mxu0 %v2613_v30  ;;  %2383 = vmatpush3.bf16.msra.mxu1 %v2614_v31  ;;  %v2642_v30 = vld [vmem:[%s3362_s3 + $0x28] sm:$0xff]   ;;  %v2643_v31 = vld [vmem:[%s3361_s2 + $0x20] sm:$0xff]  }
 0x1c2   :  { %2364 = vmatprep.subr.bf16.mxu0 %v2685_v0  ;;  %2384 = vmatprep.subr.bf16.mxu1 %v2685_v0 }
 0x1c5   :  { %2365 = vmatpush3.bf16.msra.mxu0 %v2615_v32  ;;  %2385 = vmatpush3.bf16.msra.mxu1 %v2616_v33  ;;  %v2644_v32 = vld [vmem:[%s3362_s3 + $0x20] sm:$0xff]   ;;  %v2645_v33 = vld [vmem:[%s3361_s2 + $0x18] sm:$0xff]  }
 0x1c6   :  { %2366 = vmatprep.subr.bf16.mxu0 %v2685_v0  ;;  %2386 = vmatprep.subr.bf16.mxu1 %v2685_v0 }
 0x1c9   :  { %2367 = vmatpush3.bf16.msra.mxu0 %v2617_v34  ;;  %2387 = vmatpush3.bf16.msra.mxu1 %v2618_v35  ;;  %v2646_v34 = vld [vmem:[%s3362_s3 + $0x18] sm:$0xff]   ;;  %v2647_v35 = vld [vmem:[%s3361_s2 + $0x10] sm:$0xff]  }
 0x1ca   :  { %2368 = vmatprep.subr.bf16.mxu0 %v2685_v0  ;;  %2388 = vmatprep.subr.bf16.mxu1 %v2685_v0 }
 0x1cd   :  { %2369 = vmatpush3.bf16.msra.mxu0 %v2619_v36  ;;  %2389 = vmatpush3.bf16.msra.mxu1 %v2620_v37  ;;  %v2648_v36 = vld [vmem:[%s3362_s3 + $0x10] sm:$0xff]   ;;  %v2649_v37 = vld [vmem:[%s3361_s2 + $0x8] sm:$0xff]  }
 0x1ce   :  { %2394 = vmatprep.subr.bf16.mxu0 %v2685_v0  ;;  %2414 = vmatprep.subr.bf16.mxu1 %v2685_v0 }
 0x270   :  { %v623_v41 = vpop.f32.mrf.mxu0  ;;  %v734_v43 = vpop.f32.mrf.mxu1 }
 0x271   :  { %v629_v42 = vadd.f32 %v623_v41, %v522_v39  ;;  %v740_v44 = vadd.f32 %v734_v43, %v633_v40  ;;  %v2651_v39 = vld [vmem:[%s3361_s2] sm:$0xff]   ;;  %v3185_v41 = vld [vmem:[%s3364_s1 + $0x8] sm:$0xff]  }
 0x272   :  { %v2332_v45 = vpop.f32.mrf.mxu0  ;;  %v2352_v47 = vpop.f32.mrf.mxu1  ;;  %v2652_v40 = vld [vmem:[%s3362_s3] sm:$0xff]   ;;  %v1093_v43 = vunpack.c.h.bf16 %v3185_v41 }
 0x273   :  { %v630_v46 = vmax.f32 %v629_v42, 0.0  ;;  %v741_v48 = vmax.f32 %v740_v44, 0.0  ;;  %v982_v42 = vunpack.c.h.bf16 %v3104_v8  ;;  %v2666_v8 = vld [vmem:[%s3362_s3 + $0x8] sm:$0xff]  }
 0x274   :  { %v626_v49 = vpop.f32.mrf.mxu0  ;;  %v737_v52 = vpop.f32.mrf.mxu1 }
 0x275   :  { %v744_v51 = vpack.c.bf16 %v630_v46, %v630_v46  ;;  %v747_v54 = vpack.c.bf16 %v741_v48, %v741_v48 }
 0x276   :  { %v2333_v55 = vpop.f32.mrf.mxu0  ;;  %v2353_v56 = vpop.f32.mrf.mxu1 }
 0x277   :  { %1990 = vst [vmem:[%s3365_s4 + $0x8] sm:$0xf] %v744_v51  ;;  %2371 = vmatmul.mubr.bf16.vlgmr.msra.gmra.mxu0 %v744_v51  ;;  %1991 = vst [vmem:[%s3366_s5 + $0x14] sm:$0xf] %v747_v54  ;;  %2391 = vmatmul.mubr.bf16.vlgmr.msra.gmra.mxu1 %v747_v54  ;;  %v2654_v56 = vld [vmem:[%s3362_s3 + $0x38] sm:$0xff]  }
 0x278   :  { %2395 = vmatpush3.bf16.msra.mxu0 %v2621_v50  ;;  %2415 = vmatpush3.bf16.msra.mxu1 %v2622_v53  ;;  %v2653_v53 = vld [vmem:[%s3361_s2 + $0x38] sm:$0xff]  }
 0x279   :  { %2396 = vmatprep.subr.bf16.mxu0 %v2685_v0  ;;  %2416 = vmatprep.subr.bf16.mxu1 %v2685_v0 }
 0x27a   :  { %2410 = vmatprep.mubr.msk.bf16.mxu0 %vm2686_vm0, %v2685_v0  ;;  %2430 = vmatprep.mubr.msk.bf16.mxu1 %vm2686_vm0, %v2685_v0 }
 0x27c   :  { %2397 = vmatpush3.bf16.msra.mxu0 %v2623_v57  ;;  %2417 = vmatpush3.bf16.msra.mxu1 %v2624_v58 }
 0x27d   :  { %2398 = vmatprep.subr.bf16.mxu0 %v2685_v0  ;;  %2418 = vmatprep.subr.bf16.mxu1 %v2685_v0 }
 0x280   :  { %2399 = vmatpush3.bf16.msra.mxu0 %v2625_v59  ;;  %2419 = vmatpush3.bf16.msra.mxu1 %v2626_v60  ;;  %v2655_v60 = vld [vmem:[%s3361_s2 + $0x30] sm:$0xff]  }
 0x281   :  { %2400 = vmatprep.subr.bf16.mxu0 %v2685_v0  ;;  %2420 = vmatprep.subr.bf16.mxu1 %v2685_v0 }
 0x284   :  { %2401 = vmatpush3.bf16.msra.mxu0 %v2627_v61  ;;  %2421 = vmatpush3.bf16.msra.mxu1 %v2628_v62  ;;  %v2656_v61 = vld [vmem:[%s3362_s3 + $0x30] sm:$0xff]   ;;  %v2657_v62 = vld [vmem:[%s3361_s2 + $0x28] sm:$0xff]  }
 0x285   :  { %2402 = vmatprep.subr.bf16.mxu0 %v2685_v0  ;;  %2422 = vmatprep.subr.bf16.mxu1 %v2685_v0 }
 0x288   :  { %2403 = vmatpush3.bf16.msra.mxu0 %v2629_v63  ;;  %2423 = vmatpush3.bf16.msra.mxu1 %v2630_v1  ;;  %v2658_v63 = vld [vmem:[%s3362_s3 + $0x28] sm:$0xff]   ;;  %v2659_v1 = vld [vmem:[%s3361_s2 + $0x20] sm:$0xff]  }
 0x289   :  { %2404 = vmatprep.subr.bf16.mxu0 %v2685_v0  ;;  %2424 = vmatprep.subr.bf16.mxu1 %v2685_v0 }
 0x28c   :  { %2405 = vmatpush3.bf16.msra.mxu0 %v2631_v2  ;;  %2425 = vmatpush3.bf16.msra.mxu1 %v2632_v3  ;;  %v2660_v2 = vld [vmem:[%s3362_s3 + $0x20] sm:$0xff]   ;;  %v2661_v3 = vld [vmem:[%s3361_s2 + $0x18] sm:$0xff]  }
 0x28d   :  { %2406 = vmatprep.subr.bf16.mxu0 %v2685_v0  ;;  %2426 = vmatprep.subr.bf16.mxu1 %v2685_v0 }
 0x290   :  { %2407 = vmatpush3.bf16.msra.mxu0 %v2633_v4  ;;  %2427 = vmatpush3.bf16.msra.mxu1 %v2634_v5  ;;  %v2662_v4 = vld [vmem:[%s3362_s3 + $0x18] sm:$0xff]   ;;  %v2663_v5 = vld [vmem:[%s3361_s2 + $0x10] sm:$0xff]  }
 0x291   :  { %2408 = vmatprep.subr.bf16.mxu0 %v2685_v0  ;;  %2428 = vmatprep.subr.bf16.mxu1 %v2685_v0 }
 0x294   :  { %2409 = vmatpush3.bf16.msra.mxu0 %v2635_v6  ;;  %2429 = vmatpush3.bf16.msra.mxu1 %v2636_v7  ;;  %v2664_v6 = vld [vmem:[%s3362_s3 + $0x10] sm:$0xff]   ;;  %v2665_v7 = vld [vmem:[%s3361_s2 + $0x8] sm:$0xff]  }
 0x295   :  { %2434 = vmatprep.subr.bf16.mxu0 %v2685_v0  ;;  %2454 = vmatprep.subr.bf16.mxu1 %v2685_v0 }
 0x337   :  { %v853_v11 = vpop.f32.mrf.mxu0  ;;  %v964_v13 = vpop.f32.mrf.mxu1 }
 0x338   :  { %v859_v12 = vadd.f32 %v853_v11, %v752_v9  ;;  %v970_v14 = vadd.f32 %v964_v13, %v863_v10  ;;  %v2667_v9 = vld [vmem:[%s3361_s2] sm:$0xff]   ;;  %v3266_v11 = vld [vmem:[%s3363_s0 + $0x14] sm:$0xff]   ;;  %v1323_v13 = vunpack.c.l.bf16 %v3185_v41  ;;  %v2682_v41 = vld [vmem:[%s3362_s3 + $0x8] sm:$0xff]  }
 0x339   :  { %v2372_v15 = vpop.f32.mrf.mxu0  ;;  %v2392_v17 = vpop.f32.mrf.mxu1  ;;  %v2668_v10 = vld [vmem:[%s3362_s3] sm:$0xff]  }
 0x33a   :  { %v860_v16 = vmax.f32 %v859_v12, 0.0  ;;  %v971_v18 = vmax.f32 %v970_v14, 0.0  ;;  %v1212_v12 = vunpack.c.l.bf16 %v3266_v11 }
 0x33b   :  { %v856_v19 = vpop.f32.mrf.mxu0  ;;  %v967_v22 = vpop.f32.mrf.mxu1 }
 0x33c   :  { %v974_v21 = vpack.c.bf16 %v860_v16, %v860_v16  ;;  %v977_v24 = vpack.c.bf16 %v971_v18, %v971_v18 }
 0x33d   :  { %v2373_v25 = vpop.f32.mrf.mxu0  ;;  %v2393_v26 = vpop.f32.mrf.mxu1 }
 0x33e   :  { %2010 = vst [vmem:[%s3365_s4 + $0xc] sm:$0xf] %v974_v21  ;;  %2411 = vmatmul.mubr.bf16.vlgmr.msra.gmra.mxu0 %v974_v21  ;;  %2011 = vst [vmem:[%s3366_s5 + $0x10] sm:$0xf] %v977_v24  ;;  %2431 = vmatmul.mubr.bf16.vlgmr.msra.gmra.mxu1 %v977_v24  ;;  %v2670_v26 = vld [vmem:[%s3362_s3 + $0x38] sm:$0xff]  }
 0x33f   :  { %2435 = vmatpush3.bf16.msra.mxu0 %v2637_v20  ;;  %2455 = vmatpush3.bf16.msra.mxu1 %v2638_v23  ;;  %v2669_v23 = vld [vmem:[%s3361_s2 + $0x38] sm:$0xff]  }
 0x340   :  { %2436 = vmatprep.subr.bf16.mxu0 %v2685_v0  ;;  %2456 = vmatprep.subr.bf16.mxu1 %v2685_v0 }
 0x341   :  { %2450 = vmatprep.mubr.msk.bf16.mxu0 %vm2686_vm0, %v2685_v0  ;;  %2470 = vmatprep.mubr.msk.bf16.mxu1 %vm2686_vm0, %v2685_v0 }
 0x343   :  { %2437 = vmatpush3.bf16.msra.mxu0 %v2639_v27  ;;  %2457 = vmatpush3.bf16.msra.mxu1 %v2640_v28 }
 0x344   :  { %2438 = vmatprep.subr.bf16.mxu0 %v2685_v0  ;;  %2458 = vmatprep.subr.bf16.mxu1 %v2685_v0 }
 0x347   :  { %2439 = vmatpush3.bf16.msra.mxu0 %v2641_v29  ;;  %2459 = vmatpush3.bf16.msra.mxu1 %v2642_v30  ;;  %v2671_v30 = vld [vmem:[%s3361_s2 + $0x30] sm:$0xff]  }
 0x348   :  { %2440 = vmatprep.subr.bf16.mxu0 %v2685_v0  ;;  %2460 = vmatprep.subr.bf16.mxu1 %v2685_v0 }
 0x34b   :  { %2441 = vmatpush3.bf16.msra.mxu0 %v2643_v31  ;;  %2461 = vmatpush3.bf16.msra.mxu1 %v2644_v32  ;;  %v2672_v31 = vld [vmem:[%s3362_s3 + $0x30] sm:$0xff]   ;;  %v2673_v32 = vld [vmem:[%s3361_s2 + $0x28] sm:$0xff]  }
 0x34c   :  { %2442 = vmatprep.subr.bf16.mxu0 %v2685_v0  ;;  %2462 = vmatprep.subr.bf16.mxu1 %v2685_v0 }
 0x34f   :  { %2443 = vmatpush3.bf16.msra.mxu0 %v2645_v33  ;;  %2463 = vmatpush3.bf16.msra.mxu1 %v2646_v34  ;;  %v2674_v33 = vld [vmem:[%s3362_s3 + $0x28] sm:$0xff]   ;;  %v2675_v34 = vld [vmem:[%s3361_s2 + $0x20] sm:$0xff]  }
 0x350   :  { %2444 = vmatprep.subr.bf16.mxu0 %v2685_v0  ;;  %2464 = vmatprep.subr.bf16.mxu1 %v2685_v0 }
 0x353   :  { %2445 = vmatpush3.bf16.msra.mxu0 %v2647_v35  ;;  %2465 = vmatpush3.bf16.msra.mxu1 %v2648_v36  ;;  %v2676_v35 = vld [vmem:[%s3362_s3 + $0x20] sm:$0xff]   ;;  %v2677_v36 = vld [vmem:[%s3361_s2 + $0x18] sm:$0xff]  }
 0x354   :  { %2446 = vmatprep.subr.bf16.mxu0 %v2685_v0  ;;  %2466 = vmatprep.subr.bf16.mxu1 %v2685_v0 }
 0x357   :  { %2447 = vmatpush3.bf16.msra.mxu0 %v2649_v37  ;;  %2467 = vmatpush3.bf16.msra.mxu1 %v2650_v38  ;;  %v2678_v37 = vld [vmem:[%s3362_s3 + $0x18] sm:$0xff]   ;;  %v2679_v38 = vld [vmem:[%s3361_s2 + $0x10] sm:$0xff]  }
 0x358   :  { %2448 = vmatprep.subr.bf16.mxu0 %v2685_v0  ;;  %2468 = vmatprep.subr.bf16.mxu1 %v2685_v0 }
 0x35b   :  { %2449 = vmatpush3.bf16.msra.mxu0 %v2651_v39  ;;  %2469 = vmatpush3.bf16.msra.mxu1 %v2652_v40  ;;  %v2680_v39 = vld [vmem:[%s3362_s3 + $0x10] sm:$0xff]   ;;  %v2681_v40 = vld [vmem:[%s3361_s2 + $0x8] sm:$0xff]  }
 0x35c   :  { %2474 = vmatprep.subr.bf16.mxu0 %v2685_v0  ;;  %2494 = vmatprep.subr.bf16.mxu1 %v2685_v0 }
 0x3fe   :  { %v1083_v44 = vpop.f32.mrf.mxu0  ;;  %v1194_v46 = vpop.f32.mrf.mxu1 }
 0x3ff   :  { %v1089_v45 = vadd.f32 %v1083_v44, %v982_v42  ;;  %v1200_v47 = vadd.f32 %v1194_v46, %v1093_v43  ;;  %v2683_v42 = vld [vmem:[%s3361_s2] sm:$0xff]  }
 0x400   :  { %v2412_v48 = vpop.f32.mrf.mxu0  ;;  %v2432_v50 = vpop.f32.mrf.mxu1  ;;  %v2684_v43 = vld [vmem:[%s3362_s3] sm:$0xff]  }
 0x401   :  { %v1090_v49 = vmax.f32 %v1089_v45, 0.0  ;;  %v1201_v51 = vmax.f32 %v1200_v47, 0.0  ;;  %v2061_v44 = vld [vmem:[%s3364_s1] sm:$0xff]   ;;  %v1442_v45 = vunpack.c.h.bf16 %v3266_v11 }
 0x402   :  { %v1086_v52 = vpop.f32.mrf.mxu0  ;;  %v1197_v55 = vpop.f32.mrf.mxu1  ;;  %v1553_v46 = vunpack.c.h.bf16 %v2061_v44 }
 0x403   :  { %v1204_v54 = vpack.c.bf16 %v1090_v49, %v1090_v49  ;;  %v1207_v57 = vpack.c.bf16 %v1201_v51, %v1201_v51 }
 0x404   :  { %v2413_v58 = vpop.f32.mrf.mxu0  ;;  %v2433_v59 = vpop.f32.mrf.mxu1 }
 0x405   :  { %2030 = vst [vmem:[%s3365_s4 + $0x10] sm:$0xf] %v1204_v54  ;;  %2451 = vmatmul.mubr.bf16.vlgmr.msra.gmra.mxu0 %v1204_v54  ;;  %2031 = vst [vmem:[%s3366_s5 + $0xc] sm:$0xf] %v1207_v57  ;;  %2471 = vmatmul.mubr.bf16.vlgmr.msra.gmra.mxu1 %v1207_v57 }
 0x406   :  { %2475 = vmatpush3.bf16.msra.mxu0 %v2653_v53  ;;  %2495 = vmatpush3.bf16.msra.mxu1 %v2654_v56 }
 0x407   :  { %2476 = vmatprep.subr.bf16.mxu0 %v2685_v0  ;;  %2496 = vmatprep.subr.bf16.mxu1 %v2685_v0 }
 0x408   :  { %2490 = vmatprep.mubr.msk.bf16.mxu0 %vm2686_vm0, %v2685_v0  ;;  %2510 = vmatprep.mubr.msk.bf16.mxu1 %vm2686_vm0, %v2685_v0 }
 0x40a   :  { %2477 = vmatpush3.bf16.msra.mxu0 %v2655_v60  ;;  %2497 = vmatpush3.bf16.msra.mxu1 %v2656_v61  ;;  %v2072_v60 = vld [vmem:[%s3363_s0 + $0x1c] sm:$0xf] }
 0x40b   :  { %2478 = vmatprep.subr.bf16.mxu0 %v2685_v0  ;;  %2498 = vmatprep.subr.bf16.mxu1 %v2685_v0  ;;  %v1672_v61 = vunpack.c.l.bf16 %v2072_v60 }
 0x40e   :  { %2479 = vmatpush3.bf16.msra.mxu0 %v2657_v62  ;;  %2499 = vmatpush3.bf16.msra.mxu1 %v2658_v63  ;;  %v1782_v62 = vunpack.c.l.bf16 %v2061_v44 }
 0x40f   :  { %2480 = vmatprep.subr.bf16.mxu0 %v2685_v0  ;;  %2500 = vmatprep.subr.bf16.mxu1 %v2685_v0 }
 0x412   :  { %2481 = vmatpush3.bf16.msra.mxu0 %v2659_v1  ;;  %2501 = vmatpush3.bf16.msra.mxu1 %v2660_v2 }
 0x413   :  { %2482 = vmatprep.subr.bf16.mxu0 %v2685_v0  ;;  %2502 = vmatprep.subr.bf16.mxu1 %v2685_v0 }
 0x416   :  { %2483 = vmatpush3.bf16.msra.mxu0 %v2661_v3  ;;  %2503 = vmatpush3.bf16.msra.mxu1 %v2662_v4 }
 0x417   :  { %2484 = vmatprep.subr.bf16.mxu0 %v2685_v0  ;;  %2504 = vmatprep.subr.bf16.mxu1 %v2685_v0 }
 0x41a   :  { %2485 = vmatpush3.bf16.msra.mxu0 %v2663_v5  ;;  %2505 = vmatpush3.bf16.msra.mxu1 %v2664_v6 }
 0x41b   :  { %2486 = vmatprep.subr.bf16.mxu0 %v2685_v0  ;;  %2506 = vmatprep.subr.bf16.mxu1 %v2685_v0 }
 0x41e   :  { %2487 = vmatpush3.bf16.msra.mxu0 %v2665_v7  ;;  %2507 = vmatpush3.bf16.msra.mxu1 %v2666_v8 }
 0x41f   :  { %2488 = vmatprep.subr.bf16.mxu0 %v2685_v0  ;;  %2508 = vmatprep.subr.bf16.mxu1 %v2685_v0 }
 0x422   :  { %2489 = vmatpush3.bf16.msra.mxu0 %v2667_v9  ;;  %2509 = vmatpush3.bf16.msra.mxu1 %v2668_v10 }
 0x423   :  { %2514 = vmatprep.subr.bf16.mxu0 %v2685_v0  ;;  %2534 = vmatprep.subr.bf16.mxu1 %v2685_v0 }
 0x4c5   :  { %v1313_v14 = vpop.f32.mrf.mxu0  ;;  %v1424_v16 = vpop.f32.mrf.mxu1 }
 0x4c6   :  { %v1319_v15 = vadd.f32 %v1313_v14, %v1212_v12  ;;  %v1430_v17 = vadd.f32 %v1424_v16, %v1323_v13 }
 0x4c7   :  { %v2452_v18 = vpop.f32.mrf.mxu0  ;;  %v2472_v20 = vpop.f32.mrf.mxu1 }
 0x4c8   :  { %v1320_v19 = vmax.f32 %v1319_v15, 0.0  ;;  %v1431_v21 = vmax.f32 %v1430_v17, 0.0 }
 0x4c9   :  { %v1316_v22 = vpop.f32.mrf.mxu0  ;;  %v1427_v25 = vpop.f32.mrf.mxu1 }
 0x4ca   :  { %v1434_v24 = vpack.c.bf16 %v1320_v19, %v1320_v19  ;;  %v1437_v27 = vpack.c.bf16 %v1431_v21, %v1431_v21 }
 0x4cb   :  { %v2453_v28 = vpop.f32.mrf.mxu0  ;;  %v2473_v29 = vpop.f32.mrf.mxu1 }
 0x4cc   :  { %2050 = vst [vmem:[%s3365_s4 + $0x14] sm:$0xf] %v1434_v24  ;;  %2491 = vmatmul.mubr.bf16.vlgmr.msra.gmra.mxu0 %v1434_v24  ;;  %2051 = vst [vmem:[%s3366_s5 + $0x8] sm:$0xf] %v1437_v27  ;;  %2511 = vmatmul.mubr.bf16.vlgmr.msra.gmra.mxu1 %v1437_v27 }
 0x4cd   :  { %2515 = vmatpush3.bf16.msra.mxu0 %v2669_v23  ;;  %2535 = vmatpush3.bf16.msra.mxu1 %v2670_v26 }
 0x4ce   :  { %2516 = vmatprep.subr.bf16.mxu0 %v2685_v0  ;;  %2536 = vmatprep.subr.bf16.mxu1 %v2685_v0 }
 0x4cf   :  { %2530 = vmatprep.mubr.msk.bf16.mxu0 %vm2686_vm0, %v2685_v0  ;;  %2550 = vmatprep.mubr.msk.bf16.mxu1 %vm2686_vm0, %v2685_v0 }
 0x4d1   :  { %2517 = vmatpush3.bf16.msra.mxu0 %v2671_v30  ;;  %2537 = vmatpush3.bf16.msra.mxu1 %v2672_v31 }
 0x4d2   :  { %2518 = vmatprep.subr.bf16.mxu0 %v2685_v0  ;;  %2538 = vmatprep.subr.bf16.mxu1 %v2685_v0 }
 0x4d5   :  { %2519 = vmatpush3.bf16.msra.mxu0 %v2673_v32  ;;  %2539 = vmatpush3.bf16.msra.mxu1 %v2674_v33 }
 0x4d6   :  { %2520 = vmatprep.subr.bf16.mxu0 %v2685_v0  ;;  %2540 = vmatprep.subr.bf16.mxu1 %v2685_v0 }
 0x4d9   :  { %2521 = vmatpush3.bf16.msra.mxu0 %v2675_v34  ;;  %2541 = vmatpush3.bf16.msra.mxu1 %v2676_v35 }
 0x4da   :  { %2522 = vmatprep.subr.bf16.mxu0 %v2685_v0  ;;  %2542 = vmatprep.subr.bf16.mxu1 %v2685_v0 }
 0x4dd   :  { %2523 = vmatpush3.bf16.msra.mxu0 %v2677_v36  ;;  %2543 = vmatpush3.bf16.msra.mxu1 %v2678_v37 }
 0x4de   :  { %2524 = vmatprep.subr.bf16.mxu0 %v2685_v0  ;;  %2544 = vmatprep.subr.bf16.mxu1 %v2685_v0 }
 0x4e1   :  { %2525 = vmatpush3.bf16.msra.mxu0 %v2679_v38  ;;  %2545 = vmatpush3.bf16.msra.mxu1 %v2680_v39 }
 0x4e2   :  { %2526 = vmatprep.subr.bf16.mxu0 %v2685_v0  ;;  %2546 = vmatprep.subr.bf16.mxu1 %v2685_v0 }
 0x4e5   :  { %2527 = vmatpush3.bf16.msra.mxu0 %v2681_v40  ;;  %2547 = vmatpush3.bf16.msra.mxu1 %v2682_v41 }
 0x4e6   :  { %2528 = vmatprep.subr.bf16.mxu0 %v2685_v0  ;;  %2548 = vmatprep.subr.bf16.mxu1 %v2685_v0 }
 0x4e9   :  { %2529 = vmatpush3.bf16.msra.mxu0 %v2683_v42  ;;  %2549 = vmatpush3.bf16.msra.mxu1 %v2684_v43 }
 0x58c   :  { %v1543_v47 = vpop.f32.mrf.mxu0  ;;  %v1654_v0 = vpop.f32.mrf.mxu1 }
 0x58d   :  { %v1549_v48 = vadd.f32 %v1543_v47, %v1442_v45  ;;  %v1660_v49 = vadd.f32 %v1654_v0, %v1553_v46 }
 0x58e   :  { %v2492_v50 = vpop.f32.mrf.mxu0  ;;  %v2512_v52 = vpop.f32.mrf.mxu1 }
 0x58f   :  { %v1550_v51 = vmax.f32 %v1549_v48, 0.0  ;;  %v1661_v53 = vmax.f32 %v1660_v49, 0.0 }
 0x590   :  { %v1546_v54 = vpop.f32.mrf.mxu0  ;;  %v1657_v56 = vpop.f32.mrf.mxu1 }
 0x591   :  { %v1664_v55 = vpack.c.bf16 %v1550_v51, %v1550_v51  ;;  %v1667_v57 = vpack.c.bf16 %v1661_v53, %v1661_v53 }
 0x592   :  { %v2493_v58 = vpop.f32.mrf.mxu0  ;;  %v2513_v59 = vpop.f32.mrf.mxu1 }
 0x593   :  { %2070 = vst [vmem:[%s3365_s4 + $0x18] sm:$0xf] %v1664_v55  ;;  %2531 = vmatmul.mubr.bf16.vlgmr.msra.gmra.mxu0 %v1664_v55  ;;  %2071 = vst [vmem:[%s3366_s5 + $0x4] sm:$0xf] %v1667_v57  ;;  %2551 = vmatmul.mubr.bf16.vlgmr.msra.gmra.mxu1 %v1667_v57 }
 0x653   :  { %v1773_v63 = vpop.f32.mrf.mxu0  ;;  %v1883_v2 = vpop.f32.mrf.mxu1 }
 0x654   :  { %v1779_v1 = vadd.f32 %v1773_v63, %v1672_v61  ;;  %v1889_v3 = vadd.f32 %v1883_v2, %v1782_v62 }
 0x655   :  { %v2532_v4 = vpop.f32.mrf.mxu0  ;;  %v2552_v6 = vpop.f32.mrf.mxu1 }
 0x656   :  { %v1780_v5 = vmax.f32 %v1779_v1, 0.0  ;;  %v1890_v7 = vmax.f32 %v1889_v3, 0.0 }
 0x657   :  { %v1776_v8 = vpop.f32.mrf.mxu0  ;;  %v1886_v10 = vpop.f32.mrf.mxu1 }
 0x658   :  { %v1893_v9 = vpack.c.bf16 %v1780_v5, %v1780_v5  ;;  %v1896_v11 = vpack.c.bf16 %v1890_v7, %v1890_v7 }
 0x659   :  { %v2533_v12 = vpop.f32.mrf.mxu0  ;;  %v2553_v13 = vpop.f32.mrf.mxu1 }
 0x65a   :  { %2089 = vst [vmem:[%s3365_s4 + $0x1c] sm:$0xf] %v1893_v9  ;;  %1897 = vst [vmem:[%s3366_s5] sm:$0xf] %v1896_v11 }

</bundles_post_ra>
